<compile_context>
chip_gen: v7x
topology: tpu7x:2x2x1
jax: 0.10.0
libtpu: 0.0.40
codegen_flags: <defaults>
</compile_context>

<pallas_src>
import functools

import jax
import jax.numpy as jnp
import numpy as np
from jax import lax
from jax.experimental import pallas as pl
from jax.experimental.pallas import tpu as pltpu


# ----------------------------- kernel helpers ------------------------------


def _hardswish(x):
    # x * hardtanh(x + 3, 0, 6) / 6  (exactly the module's Hardswish), f32.
    return x * jnp.clip(x + 3.0, 0.0, 6.0) * (1.0 / 6.0)


# --------------------------------- kernel ----------------------------------


def _spp_kernel(x_ref, w1_ref, b1_ref, w2_ref, b2_ref, o_ref, pad_ref, *,
                H, Wp, w_valid, incs, lpad):
    """One batch element.

    x_ref  : (1, H*Wp, C1)  bf16/f32, NHWC flattened outside the kernel
    w1_ref : (C1, C_)       folded cv1 weight
    b1_ref : (1, C_)        folded cv1 bias (f32)
    w2_ref : (L+1, C_, C2)  folded cv2 weight, one block per pyramid level
    b2_ref : (1, C2)        folded cv2 bias (f32)
    o_ref  : (1, H*Wp, C2)
    pad_ref: (H + 2*max_p, lpad + Wp + rpad, C_) pool-dtype halo scratch
    """
    f32 = jnp.float32
    mxu_dt = w1_ref.dtype
    pool_dt = pad_ref.dtype
    c_ = w1_ref.shape[1]
    max_p = max(inc // 2 for inc in incs)
    neg = jnp.array(-jnp.inf, dtype=pool_dt)

    # ---- cv1: 1x1 conv (+ folded BN) as one lane-dense MXU matmul ----------
    x = x_ref[0]                                              # (H*Wp, C1)
    y = jnp.dot(x, w1_ref[...], preferred_element_type=f32)   # f32 accumulate
    y = _hardswish(y + b1_ref[...])                           # (H*Wp, C_) f32

    # ---- cv2 level 0 (identity branch): start the f32 accumulator ----------
    z = jnp.dot(y.astype(mxu_dt), w2_ref[0], preferred_element_type=f32)

    # ---- pooling input; right-pad columns forced to -inf -------------------
    cur = y.astype(pool_dt).reshape(H, Wp, c_)    # free: Wp % 8 == 0
    if w_valid < Wp:
        col = lax.broadcasted_iota(jnp.int32, (H, Wp, c_), 1)
        cur = jnp.where(col < w_valid, cur, neg)

    # -inf borders of the halo scratch persist across all cascade stages
    # (only the center region is overwritten below).
    pad_ref[...] = jnp.full(pad_ref.shape, -jnp.inf, pool_dt)

    # ---- SPP pyramid: cascade of small stride-1 'same' max pools -----------
    # pool_k = pool_inc o pool_prev with inc = k - prev + 1; each stage is a
    # separable (row then column) pass over the -inf-bordered scratch.
    for li, inc in enumerate(incs):
        p = inc // 2
        # Stage input -> center of the halo scratch (aligned store).
        pad_ref[pl.ds(max_p, H), pl.ds(lpad, Wp), :] = cur

        # W (sublane) pass: 2p+1 shifted static loads over an H range extended
        # by the halo needed for the H pass.  No concatenate, no padded copy.
        r0, rows = max_p - p, H + 2 * p
        rowp = pad_ref[pl.ds(r0, rows), pl.ds(lpad - p, Wp), :]
        for dw in range(1, 2 * p + 1):
            rowp = jnp.maximum(
                rowp, pad_ref[pl.ds(r0, rows), pl.ds(lpad - p + dw, Wp), :])

        # H (major-dim) pass: free vreg-granular slices of the value.
        cur = rowp[0:H]
        for dh in range(1, 2 * p + 1):
            cur = jnp.maximum(cur, rowp[dh:dh + H])

        # Fused cv2 partial matmul for this pyramid level (f32 accumulate);
        # the level is dropped immediately afterwards.
        z = z + jnp.dot(cur.reshape(H * Wp, c_).astype(mxu_dt),
                        w2_ref[li + 1], preferred_element_type=f32)

    z = _hardswish(z + b2_ref[...])
    o_ref[0] = z.astype(o_ref.dtype)


# -------------------------------- wrappers ---------------------------------


def fold_conv_bn(w_conv, gamma, beta, mean, var, eps=1e-5):
    """Fold eval-mode BatchNorm2d into a preceding bias-free 1x1 conv.

    w_conv: (C_out, C_in)  (torch Conv2d weight with the 1x1 spatial squeezed)
    Returns (w, b) laid out for NHWC `x @ w + b`:
      w: (C_in, C_out), b: (1, C_out)
    """
    scale = gamma / jnp.sqrt(var + eps)
    w = (w_conv * scale[:, None]).T
    b = (beta - mean * scale)[None, :]
    return w, b


def spp_forward_nhwc(x_nhwc, w1, b1, w2, b2, *, ks=(5, 9, 13),
                     compute_dtype=jnp.bfloat16, pool_dtype=jnp.float32,
                     out_dtype=None):
    """SPP forward on NHWC input.

    compute_dtype: MXU operand dtype (bf16 recommended on every generation).
    pool_dtype   : dtype of the pool cascade; f32 is portable (and correct for
                   v5e's no-bf16 VALU); use jnp.bfloat16 on v6e/v7x.
    """
    N, H, W, C1 = x_nhwc.shape
    C_ = w1.shape[1]
    C2 = w2.shape[1]
    L = len(ks)
    assert w1.shape == (C1, C_)
    assert w2.shape == ((L + 1) * C_, C2)
    assert all(k % 2 == 1 for k in ks) and list(ks) == sorted(set(ks))

    # Cascade increments: pool_k = pool_inc o pool_prev.
    incs, prev = [], 1
    for k in ks:
        inc = k - prev + 1
        assert inc % 2 == 1 and inc >= 3
        incs.append(inc)
        prev = k
    max_p = max(inc // 2 for inc in incs)
    out_dtype = x_nhwc.dtype if out_dtype is None else out_dtype

    # Pad W to a multiple of 8 so every in-kernel (H, Wp, C) <-> (H*Wp, C)
    # view is a layout no-op; padded columns are masked to -inf in the kernel.
    Wp = ((W + 7) // 8) * 8
    xi = x_nhwc.astype(compute_dtype)
    if Wp != W:
        xi = jnp.pad(xi, ((0, 0), (0, 0), (0, Wp - W), (0, 0)))
    xi = xi.reshape(N, H * Wp, C1)                     # flatten outside kernel

    w1c = w1.astype(compute_dtype)
    w2c = w2.astype(compute_dtype).reshape(L + 1, C_, C2)   # per-level blocks
    b1c = b1.reshape(1, C_).astype(jnp.float32)
    b2c = b2.reshape(1, C2).astype(jnp.float32)

    # Halo-scratch geometry: left pad aligned to the pool-dtype sublane tile,
    # right pad rounded up to 8.
    pool_isz = jnp.dtype(pool_dtype).itemsize
    lpad = 8 * max(1, 4 // pool_isz)
    rpad = ((max_p + 7) // 8) * 8

    mm_flops = 2 * N * H * Wp * (C1 * C_ + (L + 1) * C_ * C2)
    pool_flops = N * H * Wp * C_ * sum(2 * (inc - 1) for inc in incs)
    bytes_accessed = (
        xi.size * jnp.dtype(compute_dtype).itemsize
        + N * H * Wp * C2 * jnp.dtype(out_dtype).itemsize
        + (w1c.size + w2c.size) * jnp.dtype(compute_dtype).itemsize
        + (b1c.size + b2c.size) * 4)

    out = pl.pallas_call(
        functools.partial(_spp_kernel, H=H, Wp=Wp, w_valid=W,
                          incs=tuple(incs), lpad=lpad),
        out_shape=jax.ShapeDtypeStruct((N, H * Wp, C2), out_dtype),
        grid=(N,),
        in_specs=[
            pl.BlockSpec((1, H * Wp, C1), lambda n: (n, 0, 0)),
            pl.BlockSpec((C1, C_), lambda n: (0, 0)),              # resident
            pl.BlockSpec((1, C_), lambda n: (0, 0)),               # resident
            pl.BlockSpec((L + 1, C_, C2), lambda n: (0, 0, 0)),    # resident
            pl.BlockSpec((1, C2), lambda n: (0, 0)),               # resident
        ],
        out_specs=pl.BlockSpec((1, H * Wp, C2), lambda n: (n, 0, 0)),
        scratch_shapes=[
            pltpu.VMEM((H + 2 * max_p, lpad + Wp + rpad, C_), pool_dtype)],
        compiler_params=pltpu.CompilerParams(
            dimension_semantics=("parallel",),
            vmem_limit_bytes=48 * 1024 * 1024),
        cost_estimate=pl.CostEstimate(
            flops=int(mm_flops + pool_flops),
            transcendentals=0,
            bytes_accessed=int(bytes_accessed)),
    )(xi, w1c, b1c, w2c, b2c)

    out = out.reshape(N, H, Wp, C2)
    if Wp != W:
        out = out[:, :, :W, :]
    return out


def spp_forward_nchw(x_nchw, w1, b1, w2, b2, **kw):
    """PyTorch-boundary (NCHW) wrapper.  In an NHWC model call
    spp_forward_nhwc directly and these edge transposes disappear."""
    x = jnp.transpose(x_nchw, (0, 2, 3, 1))
    out = spp_forward_nhwc(x, w1, b1, w2, b2, **kw)
    return jnp.transpose(out, (0, 3, 1, 2))


# ------------------------------ pure-JAX ref --------------------------------


def spp_reference_nchw(x, w1c, bn1, w2c, bn2, ks):
    """Un-fused f32 reference mirroring the PyTorch module op-by-op (NCHW)."""
    def conv_bn_act(t, wc, bn):
        gamma, beta, mean, var, eps = bn
        y = jnp.einsum('nchw,oc->nohw', t, wc)
        scale = gamma / jnp.sqrt(var + eps)
        y = (y - mean[None, :, None, None]) * scale[None, :, None, None] \
            + beta[None, :, None, None]
        return y * jnp.clip(y + 3.0, 0.0, 6.0) / 6.0

    y = conv_bn_act(x, w1c, bn1)
    pools = []
    for k in ks:
        p = k // 2
        pools.append(lax.reduce_window(
            y, -jnp.inf, lax.max,
            window_dimensions=(1, 1, k, k),
            window_strides=(1, 1, 1, 1),
            padding=((0, 0), (0, 0), (p, p), (p, p))))
    cat = jnp.concatenate([y] + pools, axis=1)
    return conv_bn_act(cat, w2c, bn2)


# ---------------------------------- main ------------------------------------


if __name__ == "__main__":
    ks = (5, 9, 13)
    eps = 1e-5

    def make_case(key, N, C1, H, W, C2):
        C_ = C1 // 2
        cin2 = C_ * (len(ks) + 1)
        kk = jax.random.split(key, 11)
        x = jax.random.normal(kk[0], (N, C1, H, W), jnp.float32)
        w1c = jax.random.normal(kk[1], (C_, C1), jnp.float32) * 0.5
        g1 = jax.random.uniform(kk[2], (C_,), jnp.float32, 0.5, 1.5)
        be1 = jax.random.normal(kk[3], (C_,), jnp.float32) * 0.1
        mu1 = jax.random.normal(kk[4], (C_,), jnp.float32) * 0.1
        v1 = jax.random.uniform(kk[5], (C_,), jnp.float32, 0.5, 1.5)
        w2c = jax.random.normal(kk[6], (C2, cin2), jnp.float32) * 0.2
        g2 = jax.random.uniform(kk[7], (C2,), jnp.float32, 0.5, 1.5)
        be2 = jax.random.normal(kk[8], (C2,), jnp.float32) * 0.1
        mu2 = jax.random.normal(kk[9], (C2,), jnp.float32) * 0.1
        v2 = jax.random.uniform(kk[10], (C2,), jnp.float32, 0.5, 1.5)
        return x, (w1c, (g1, be1, mu1, v1, eps)), (w2c, (g2, be2, mu2, v2, eps))

    # ---- primary case: small demo shapes (N=2, C1=4, 16x16, C2=8) ----------
    x, (w1c, bn1), (w2c, bn2) = make_case(jax.random.PRNGKey(0), 2, 4, 16, 16, 8)
    w1, b1 = fold_conv_bn(w1c, *bn1)
    w2, b2 = fold_conv_bn(w2c, *bn2)
    ref = spp_reference_nchw(x, w1c, bn1, w2c, bn2, ks)

    # Default path: bf16 MXU operands + f32 accumulation (loose tolerance
    # versus the pure-f32 reference, per the review's correctness note).
    out = jax.block_until_ready(spp_forward_nchw(x, w1, b1, w2, b2, ks=ks))
    assert out.shape == ref.shape, (out.shape, ref.shape)
    np.testing.assert_allclose(np.asarray(out), np.asarray(ref),
                               rtol=1.5e-1, atol=1.5e-1)

    # f32 verification path of the same kernel: tight structural check.
    out32 = jax.block_until_ready(
        spp_forward_nchw(x, w1, b1, w2, b2, ks=ks, compute_dtype=jnp.float32))
    np.testing.assert_allclose(np.asarray(out32), np.asarray(ref),
                               rtol=2e-3, atol=2e-3)

    # ---- secondary case: W=20 (YOLOP-like) exercises the W-padding / -inf
    #      column-masking path (checked tightly in f32).
    x2, (w1c2, bn12), (w2c2, bn22) = make_case(
        jax.random.PRNGKey(1), 1, 8, 12, 20, 8)
    w12, b12 = fold_conv_bn(w1c2, *bn12)
    w22, b22 = fold_conv_bn(w2c2, *bn22)
    ref2 = spp_reference_nchw(x2, w1c2, bn12, w2c2, bn22, ks)
    out2 = jax.block_until_ready(
        spp_forward_nchw(x2, w12, b12, w22, b22, ks=ks,
                         compute_dtype=jnp.float32))
    np.testing.assert_allclose(np.asarray(out2), np.asarray(ref2),
                               rtol=2e-3, atol=2e-3)

    print("KERNEL_OK")
</pallas_src>

<mosaic_0001>
module attributes {stable_mosaic.version = 11 : i64} {
  func.func @_spp_kernel(%arg0: i32, %arg1: memref<1x256x4xbf16, #tpu.memory_space<vmem>>, %arg2: memref<4x2xbf16, #tpu.memory_space<vmem>>, %arg3: memref<1x2xf32, #tpu.memory_space<vmem>>, %arg4: memref<4x2x8xbf16, #tpu.memory_space<vmem>>, %arg5: memref<1x8xf32, #tpu.memory_space<vmem>>, %arg6: memref<1x256x8xf32, #tpu.memory_space<vmem>>, %arg7: memref<20x32x2xf32, #tpu.memory_space<vmem>>) attributes {dimension_semantics = [#tpu.dimension_semantics<parallel>], iteration_bounds = array<i64: 2>, scalar_prefetch = 0 : i64, scratch_operands = 1 : i64, tpu.core_type = #tpu.core_type<tc>, window_params = [{transform_indices = @transform_0, window_bounds = array<i64: 1, 256, 4>}, {pipeline_mode = #tpu.pipeline_mode<synchronous>, transform_indices = @transform_1, window_bounds = array<i64: 4, 2>}, {pipeline_mode = #tpu.pipeline_mode<synchronous>, transform_indices = @transform_2, window_bounds = array<i64: 1, 2>}, {pipeline_mode = #tpu.pipeline_mode<synchronous>, transform_indices = @transform_3, window_bounds = array<i64: 4, 2, 8>}, {pipeline_mode = #tpu.pipeline_mode<synchronous>, transform_indices = @transform_4, window_bounds = array<i64: 1, 8>}, {transform_indices = @transform_5, window_bounds = array<i64: 1, 256, 8>}]} {
    %c0 = arith.constant 0 : index
    %c0_0 = arith.constant 0 : index
    %c0_1 = arith.constant 0 : index
    %0 = vector.load %arg1[%c0, %c0_0, %c0_1] : memref<1x256x4xbf16, #tpu.memory_space<vmem>>, vector<1x256x4xbf16>
    %1 = vector.shape_cast %0 : vector<1x256x4xbf16> to vector<256x4xbf16>
    %c0_2 = arith.constant 0 : index
    %c0_3 = arith.constant 0 : index
    %2 = vector.load %arg2[%c0_2, %c0_3] : memref<4x2xbf16, #tpu.memory_space<vmem>>, vector<4x2xbf16>
    %cst = arith.constant dense<0.000000e+00> : vector<256x2xf32>
    %3 = tpu.matmul %1, %2, %cst {dimension_numbers = #tpu.dot_dimension_numbers<[1], [0], [0], [1], [0, 0, 1, 1], [], []>} : vector<256x4xbf16>, vector<4x2xbf16>, vector<256x2xf32> -> vector<256x2xf32>
    %c0_4 = arith.constant 0 : index
    %c0_5 = arith.constant 0 : index
    %4 = vector.load %arg3[%c0_4, %c0_5] : memref<1x2xf32, #tpu.memory_space<vmem>>, vector<1x2xf32>
    %5 = vector.broadcast %4 : vector<1x2xf32> to vector<256x2xf32>
    %6 = arith.addf %3, %5 : vector<256x2xf32>
    %cst_6 = arith.constant 3.000000e+00 : f32
    %7 = vector.broadcast %cst_6 : f32 to vector<256x2xf32>
    %8 = arith.addf %6, %7 : vector<256x2xf32>
    %cst_7 = arith.constant 0.000000e+00 : f32
    %cst_8 = arith.constant 6.000000e+00 : f32
    %9 = vector.broadcast %cst_7 : f32 to vector<256x2xf32>
    %10 = arith.maximumf %9, %8 : vector<256x2xf32>
    %11 = vector.broadcast %cst_8 : f32 to vector<256x2xf32>
    %12 = arith.minimumf %11, %10 : vector<256x2xf32>
    %13 = arith.mulf %6, %12 : vector<256x2xf32>
    %cst_9 = arith.constant 0.166666672 : f32
    %14 = vector.broadcast %cst_9 : f32 to vector<256x2xf32>
    %15 = arith.mulf %13, %14 : vector<256x2xf32>
    %16 = arith.truncf %15 : vector<256x2xf32> to vector<256x2xbf16>
    %c0_10 = arith.constant 0 : index
    %c0_11 = arith.constant 0 : index
    %c0_12 = arith.constant 0 : index
    %17 = vector.load %arg4[%c0_10, %c0_11, %c0_12] : memref<4x2x8xbf16, #tpu.memory_space<vmem>>, vector<1x2x8xbf16>
    %18 = vector.shape_cast %17 : vector<1x2x8xbf16> to vector<2x8xbf16>
    %cst_13 = arith.constant dense<0.000000e+00> : vector<256x8xf32>
    %19 = tpu.matmul %16, %18, %cst_13 {dimension_numbers = #tpu.dot_dimension_numbers<[1], [0], [0], [1], [0, 0, 1, 1], [], []>} : vector<256x2xbf16>, vector<2x8xbf16>, vector<256x8xf32> -> vector<256x8xf32>
    %20 = vector.shape_cast %15 : vector<256x2xf32> to vector<16x16x2xf32>
    %cst_14 = arith.constant 0xFF800000 : f32
    %21 = vector.broadcast %cst_14 : f32 to vector<20x32x2xf32>
    %c0_15 = arith.constant 0 : index
    %c0_16 = arith.constant 0 : index
    %c0_17 = arith.constant 0 : index
    %22 = vector.load %arg7[%c0_15, %c0_16, %c0_17] : memref<20x32x2xf32, #tpu.memory_space<vmem>>, vector<20x32x2xf32>
    tpu.vector_store %arg7[%c0_15, %c0_16, %c0_17], %21 {strides = array<i32>} : memref<20x32x2xf32, #tpu.memory_space<vmem>>, vector<20x32x2xf32>,
    %c2 = arith.constant 2 : index
    %c8 = arith.constant 8 : index
    %c0_18 = arith.constant 0 : index
    %23 = vector.load %arg7[%c2, %c8, %c0_18] : memref<20x32x2xf32, #tpu.memory_space<vmem>>, vector<16x16x2xf32>
    tpu.vector_store %arg7[%c2, %c8, %c0_18], %20 {strides = array<i32>} : memref<20x32x2xf32, #tpu.memory_space<vmem>>, vector<16x16x2xf32>,
    %c0_19 = arith.constant 0 : index
    %c6 = arith.constant 6 : index
    %c0_20 = arith.constant 0 : index
    %24 = vector.load %arg7[%c0_19, %c6, %c0_20] : memref<20x32x2xf32, #tpu.memory_space<vmem>>, vector<20x16x2xf32>
    %c0_21 = arith.constant 0 : index
    %c7 = arith.constant 7 : index
    %c0_22 = arith.constant 0 : index
    %25 = vector.load %arg7[%c0_21, %c7, %c0_22] : memref<20x32x2xf32, #tpu.memory_space<vmem>>, vector<20x16x2xf32>
    %26 = arith.maximumf %24, %25 : vector<20x16x2xf32>
    %c0_23 = arith.constant 0 : index
    %c8_24 = arith.constant 8 : index
    %c0_25 = arith.constant 0 : index
    %27 = vector.load %arg7[%c0_23, %c8_24, %c0_25] : memref<20x32x2xf32, #tpu.memory_space<vmem>>, vector<20x16x2xf32>
    %28 = arith.maximumf %26, %27 : vector<20x16x2xf32>
    %c0_26 = arith.constant 0 : index
    %c9 = arith.constant 9 : index
    %c0_27 = arith.constant 0 : index
    %29 = vector.load %arg7[%c0_26, %c9, %c0_27] : memref<20x32x2xf32, #tpu.memory_space<vmem>>, vector<20x16x2xf32>
    %30 = arith.maximumf %28, %29 : vector<20x16x2xf32>
    %c0_28 = arith.constant 0 : index
    %c10 = arith.constant 10 : index
    %c0_29 = arith.constant 0 : index
    %31 = vector.load %arg7[%c0_28, %c10, %c0_29] : memref<20x32x2xf32, #tpu.memory_space<vmem>>, vector<20x16x2xf32>
    %32 = arith.maximumf %30, %31 : vector<20x16x2xf32>
    %33 = vector.extract_strided_slice %32 {offsets = [0, 0, 0], sizes = [16, 16, 2], strides = [1, 1, 1]} : vector<20x16x2xf32> to vector<16x16x2xf32>
    %34 = vector.extract_strided_slice %32 {offsets = [1, 0, 0], sizes = [16, 16, 2], strides = [1, 1, 1]} : vector<20x16x2xf32> to vector<16x16x2xf32>
    %35 = arith.maximumf %33, %34 : vector<16x16x2xf32>
    %36 = vector.extract_strided_slice %32 {offsets = [2, 0, 0], sizes = [16, 16, 2], strides = [1, 1, 1]} : vector<20x16x2xf32> to vector<16x16x2xf32>
    %37 = arith.maximumf %35, %36 : vector<16x16x2xf32>
    %38 = vector.extract_strided_slice %32 {offsets = [3, 0, 0], sizes = [16, 16, 2], strides = [1, 1, 1]} : vector<20x16x2xf32> to vector<16x16x2xf32>
    %39 = arith.maximumf %37, %38 : vector<16x16x2xf32>
    %40 = vector.extract_strided_slice %32 {offsets = [4, 0, 0], sizes = [16, 16, 2], strides = [1, 1, 1]} : vector<20x16x2xf32> to vector<16x16x2xf32>
    %41 = arith.maximumf %39, %40 : vector<16x16x2xf32>
    %42 = vector.shape_cast %41 : vector<16x16x2xf32> to vector<256x2xf32>
    %43 = arith.truncf %42 : vector<256x2xf32> to vector<256x2xbf16>
    %c1 = arith.constant 1 : index
    %c0_30 = arith.constant 0 : index
    %c0_31 = arith.constant 0 : index
    %44 = vector.load %arg4[%c1, %c0_30, %c0_31] : memref<4x2x8xbf16, #tpu.memory_space<vmem>>, vector<1x2x8xbf16>
    %45 = vector.shape_cast %44 : vector<1x2x8xbf16> to vector<2x8xbf16>
    %cst_32 = arith.constant dense<0.000000e+00> : vector<256x8xf32>
    %46 = tpu.matmul %43, %45, %cst_32 {dimension_numbers = #tpu.dot_dimension_numbers<[1], [0], [0], [1], [0, 0, 1, 1], [], []>} : vector<256x2xbf16>, vector<2x8xbf16>, vector<256x8xf32> -> vector<256x8xf32>
    %47 = arith.addf %19, %46 : vector<256x8xf32>
    %c2_33 = arith.constant 2 : index
    %c8_34 = arith.constant 8 : index
    %c0_35 = arith.constant 0 : index
    %48 = vector.load %arg7[%c2_33, %c8_34, %c0_35] : memref<20x32x2xf32, #tpu.memory_space<vmem>>, vector<16x16x2xf32>
    tpu.vector_store %arg7[%c2_33, %c8_34, %c0_35], %41 {strides = array<i32>} : memref<20x32x2xf32, #tpu.memory_space<vmem>>, vector<16x16x2xf32>,
    %c0_36 = arith.constant 0 : index
    %c6_37 = arith.constant 6 : index
    %c0_38 = arith.constant 0 : index
    %49 = vector.load %arg7[%c0_36, %c6_37, %c0_38] : memref<20x32x2xf32, #tpu.memory_space<vmem>>, vector<20x16x2xf32>
    %c0_39 = arith.constant 0 : index
    %c7_40 = arith.constant 7 : index
    %c0_41 = arith.constant 0 : index
    %50 = vector.load %arg7[%c0_39, %c7_40, %c0_41] : memref<20x32x2xf32, #tpu.memory_space<vmem>>, vector<20x16x2xf32>
    %51 = arith.maximumf %49, %50 : vector<20x16x2xf32>
    %c0_42 = arith.constant 0 : index
    %c8_43 = arith.constant 8 : index
    %c0_44 = arith.constant 0 : index
    %52 = vector.load %arg7[%c0_42, %c8_43, %c0_44] : memref<20x32x2xf32, #tpu.memory_space<vmem>>, vector<20x16x2xf32>
    %53 = arith.maximumf %51, %52 : vector<20x16x2xf32>
    %c0_45 = arith.constant 0 : index
    %c9_46 = arith.constant 9 : index
    %c0_47 = arith.constant 0 : index
    %54 = vector.load %arg7[%c0_45, %c9_46, %c0_47] : memref<20x32x2xf32, #tpu.memory_space<vmem>>, vector<20x16x2xf32>
    %55 = arith.maximumf %53, %54 : vector<20x16x2xf32>
    %c0_48 = arith.constant 0 : index
    %c10_49 = arith.constant 10 : index
    %c0_50 = arith.constant 0 : index
    %56 = vector.load %arg7[%c0_48, %c10_49, %c0_50] : memref<20x32x2xf32, #tpu.memory_space<vmem>>, vector<20x16x2xf32>
    %57 = arith.maximumf %55, %56 : vector<20x16x2xf32>
    %58 = vector.extract_strided_slice %57 {offsets = [0, 0, 0], sizes = [16, 16, 2], strides = [1, 1, 1]} : vector<20x16x2xf32> to vector<16x16x2xf32>
    %59 = vector.extract_strided_slice %57 {offsets = [1, 0, 0], sizes = [16, 16, 2], strides = [1, 1, 1]} : vector<20x16x2xf32> to vector<16x16x2xf32>
    %60 = arith.maximumf %58, %59 : vector<16x16x2xf32>
    %61 = vector.extract_strided_slice %57 {offsets = [2, 0, 0], sizes = [16, 16, 2], strides = [1, 1, 1]} : vector<20x16x2xf32> to vector<16x16x2xf32>
    %62 = arith.maximumf %60, %61 : vector<16x16x2xf32>
    %63 = vector.extract_strided_slice %57 {offsets = [3, 0, 0], sizes = [16, 16, 2], strides = [1, 1, 1]} : vector<20x16x2xf32> to vector<16x16x2xf32>
    %64 = arith.maximumf %62, %63 : vector<16x16x2xf32>
    %65 = vector.extract_strided_slice %57 {offsets = [4, 0, 0], sizes = [16, 16, 2], strides = [1, 1, 1]} : vector<20x16x2xf32> to vector<16x16x2xf32>
    %66 = arith.maximumf %64, %65 : vector<16x16x2xf32>
    %67 = vector.shape_cast %66 : vector<16x16x2xf32> to vector<256x2xf32>
    %68 = arith.truncf %67 : vector<256x2xf32> to vector<256x2xbf16>
    %c2_51 = arith.constant 2 : index
    %c0_52 = arith.constant 0 : index
    %c0_53 = arith.constant 0 : index
    %69 = vector.load %arg4[%c2_51, %c0_52, %c0_53] : memref<4x2x8xbf16, #tpu.memory_space<vmem>>, vector<1x2x8xbf16>
    %70 = vector.shape_cast %69 : vector<1x2x8xbf16> to vector<2x8xbf16>
    %cst_54 = arith.constant dense<0.000000e+00> : vector<256x8xf32>
    %71 = tpu.matmul %68, %70, %cst_54 {dimension_numbers = #tpu.dot_dimension_numbers<[1], [0], [0], [1], [0, 0, 1, 1], [], []>} : vector<256x2xbf16>, vector<2x8xbf16>, vector<256x8xf32> -> vector<256x8xf32>
    %72 = arith.addf %47, %71 : vector<256x8xf32>
    %c2_55 = arith.constant 2 : index
    %c8_56 = arith.constant 8 : index
    %c0_57 = arith.constant 0 : index
    %73 = vector.load %arg7[%c2_55, %c8_56, %c0_57] : memref<20x32x2xf32, #tpu.memory_space<vmem>>, vector<16x16x2xf32>
    tpu.vector_store %arg7[%c2_55, %c8_56, %c0_57], %66 {strides = array<i32>} : memref<20x32x2xf32, #tpu.memory_space<vmem>>, vector<16x16x2xf32>,
    %c0_58 = arith.constant 0 : index
    %c6_59 = arith.constant 6 : index
    %c0_60 = arith.constant 0 : index
    %74 = vector.load %arg7[%c0_58, %c6_59, %c0_60] : memref<20x32x2xf32, #tpu.memory_space<vmem>>, vector<20x16x2xf32>
    %c0_61 = arith.constant 0 : index
    %c7_62 = arith.constant 7 : index
    %c0_63 = arith.constant 0 : index
    %75 = vector.load %arg7[%c0_61, %c7_62, %c0_63] : memref<20x32x2xf32, #tpu.memory_space<vmem>>, vector<20x16x2xf32>
    %76 = arith.maximumf %74, %75 : vector<20x16x2xf32>
    %c0_64 = arith.constant 0 : index
    %c8_65 = arith.constant 8 : index
    %c0_66 = arith.constant 0 : index
    %77 = vector.load %arg7[%c0_64, %c8_65, %c0_66] : memref<20x32x2xf32, #tpu.memory_space<vmem>>, vector<20x16x2xf32>
    %78 = arith.maximumf %76, %77 : vector<20x16x2xf32>
    %c0_67 = arith.constant 0 : index
    %c9_68 = arith.constant 9 : index
    %c0_69 = arith.constant 0 : index
    %79 = vector.load %arg7[%c0_67, %c9_68, %c0_69] : memref<20x32x2xf32, #tpu.memory_space<vmem>>, vector<20x16x2xf32>
    %80 = arith.maximumf %78, %79 : vector<20x16x2xf32>
    %c0_70 = arith.constant 0 : index
    %c10_71 = arith.constant 10 : index
    %c0_72 = arith.constant 0 : index
    %81 = vector.load %arg7[%c0_70, %c10_71, %c0_72] : memref<20x32x2xf32, #tpu.memory_space<vmem>>, vector<20x16x2xf32>
    %82 = arith.maximumf %80, %81 : vector<20x16x2xf32>
    %83 = vector.extract_strided_slice %82 {offsets = [0, 0, 0], sizes = [16, 16, 2], strides = [1, 1, 1]} : vector<20x16x2xf32> to vector<16x16x2xf32>
    %84 = vector.extract_strided_slice %82 {offsets = [1, 0, 0], sizes = [16, 16, 2], strides = [1, 1, 1]} : vector<20x16x2xf32> to vector<16x16x2xf32>
    %85 = arith.maximumf %83, %84 : vector<16x16x2xf32>
    %86 = vector.extract_strided_slice %82 {offsets = [2, 0, 0], sizes = [16, 16, 2], strides = [1, 1, 1]} : vector<20x16x2xf32> to vector<16x16x2xf32>
    %87 = arith.maximumf %85, %86 : vector<16x16x2xf32>
    %88 = vector.extract_strided_slice %82 {offsets = [3, 0, 0], sizes = [16, 16, 2], strides = [1, 1, 1]} : vector<20x16x2xf32> to vector<16x16x2xf32>
    %89 = arith.maximumf %87, %88 : vector<16x16x2xf32>
    %90 = vector.extract_strided_slice %82 {offsets = [4, 0, 0], sizes = [16, 16, 2], strides = [1, 1, 1]} : vector<20x16x2xf32> to vector<16x16x2xf32>
    %91 = arith.maximumf %89, %90 : vector<16x16x2xf32>
    %92 = vector.shape_cast %91 : vector<16x16x2xf32> to vector<256x2xf32>
    %93 = arith.truncf %92 : vector<256x2xf32> to vector<256x2xbf16>
    %c3 = arith.constant 3 : index
    %c0_73 = arith.constant 0 : index
    %c0_74 = arith.constant 0 : index
    %94 = vector.load %arg4[%c3, %c0_73, %c0_74] : memref<4x2x8xbf16, #tpu.memory_space<vmem>>, vector<1x2x8xbf16>
    %95 = vector.shape_cast %94 : vector<1x2x8xbf16> to vector<2x8xbf16>
    %cst_75 = arith.constant dense<0.000000e+00> : vector<256x8xf32>
    %96 = tpu.matmul %93, %95, %cst_75 {dimension_numbers = #tpu.dot_dimension_numbers<[1], [0], [0], [1], [0, 0, 1, 1], [], []>} : vector<256x2xbf16>, vector<2x8xbf16>, vector<256x8xf32> -> vector<256x8xf32>
    %97 = arith.addf %72, %96 : vector<256x8xf32>
    %c0_76 = arith.constant 0 : index
    %c0_77 = arith.constant 0 : index
    %98 = vector.load %arg5[%c0_76, %c0_77] : memref<1x8xf32, #tpu.memory_space<vmem>>, vector<1x8xf32>
    %99 = vector.broadcast %98 : vector<1x8xf32> to vector<256x8xf32>
    %100 = arith.addf %97, %99 : vector<256x8xf32>
    %cst_78 = arith.constant 3.000000e+00 : f32
    %101 = vector.broadcast %cst_78 : f32 to vector<256x8xf32>
    %102 = arith.addf %100, %101 : vector<256x8xf32>
    %cst_79 = arith.constant 0.000000e+00 : f32
    %cst_80 = arith.constant 6.000000e+00 : f32
    %103 = vector.broadcast %cst_79 : f32 to vector<256x8xf32>
    %104 = arith.maximumf %103, %102 : vector<256x8xf32>
    %105 = vector.broadcast %cst_80 : f32 to vector<256x8xf32>
    %106 = arith.minimumf %105, %104 : vector<256x8xf32>
    %107 = arith.mulf %100, %106 : vector<256x8xf32>
    %cst_81 = arith.constant 0.166666672 : f32
    %108 = vector.broadcast %cst_81 : f32 to vector<256x8xf32>
    %109 = arith.mulf %107, %108 : vector<256x8xf32>
    %c0_82 = arith.constant 0 : index
    %c0_83 = arith.constant 0 : index
    %c0_84 = arith.constant 0 : index
    %110 = vector.load %arg6[%c0_82, %c0_83, %c0_84] : memref<1x256x8xf32, #tpu.memory_space<vmem>>, vector<1x256x8xf32>
    %111 = vector.shape_cast %110 : vector<1x256x8xf32> to vector<256x8xf32>
    %112 = vector.shape_cast %109 : vector<256x8xf32> to vector<1x256x8xf32>
    tpu.vector_store %arg6[%c0_82, %c0_83, %c0_84], %112 {strides = array<i32>} : memref<1x256x8xf32, #tpu.memory_space<vmem>>, vector<1x256x8xf32>,
    return
  }
  func.func @transform_0(%arg0: i32) -> (i32, i32, i32) {
    %c0_i32 = arith.constant 0 : i32
    %c0_i32_0 = arith.constant 0 : i32
    %c0_i32_1 = arith.constant 0 : i32
    return %arg0, %c0_i32, %c0_i32_0 : i32, i32, i32
  }
  func.func @transform_1(%arg0: i32) -> (i32, i32) {
    %c0_i32 = arith.constant 0 : i32
    %c0_i32_0 = arith.constant 0 : i32
    %c0_i32_1 = arith.constant 0 : i32
    return %c0_i32, %c0_i32_0 : i32, i32
  }
  func.func @transform_2(%arg0: i32) -> (i32, i32) {
    %c0_i32 = arith.constant 0 : i32
    %c0_i32_0 = arith.constant 0 : i32
    %c0_i32_1 = arith.constant 0 : i32
    return %c0_i32, %c0_i32_0 : i32, i32
  }
  func.func @transform_3(%arg0: i32) -> (i32, i32, i32) {
    %c0_i32 = arith.constant 0 : i32
    %c0_i32_0 = arith.constant 0 : i32
    %c0_i32_1 = arith.constant 0 : i32
    %c0_i32_2 = arith.constant 0 : i32
    return %c0_i32, %c0_i32_0, %c0_i32_1 : i32, i32, i32
  }
  func.func @transform_4(%arg0: i32) -> (i32, i32) {
    %c0_i32 = arith.constant 0 : i32
    %c0_i32_0 = arith.constant 0 : i32
    %c0_i32_1 = arith.constant 0 : i32
    return %c0_i32, %c0_i32_0 : i32, i32
  }
  func.func @transform_5(%arg0: i32) -> (i32, i32, i32) {
    %c0_i32 = arith.constant 0 : i32
    %c0_i32_0 = arith.constant 0 : i32
    %c0_i32_1 = arith.constant 0 : i32
    return %arg0, %c0_i32, %c0_i32_0 : i32, i32, i32
  }
}

</mosaic_0001>

<bundles_post_ra>
// kernel: tpu_custom_call.1
= control target key start
LH: loop header
LB: loop body
LE: loop exit
PB: predicated region body
PF: predicated region fallthrough
CT: control target
= control target key end

     0   :  { %s4170_s18 = smov 0   ;;  %s5664_s0 = inlined_call_operand.vmem [shape: bf16[2,256,4], index: 0, kind: input, shape index: {}]   ;;  %s5665_s1 = inlined_call_operand.vmem [shape: bf16[4,2], index: 1, kind: input, shape index: {}]   ;;  %s5666_s2 = inlined_call_operand.vmem [shape: f32[1,2], index: 2, kind: input, shape index: {}]   ;;  %s5667_s3 = inlined_call_operand.vmem [shape: bf16[4,2,8], index: 3, kind: input, shape index: {}]   ;;  %s5668_s4 = inlined_call_operand.vmem [shape: f32[1,8], index: 4, kind: input, shape index: {}]   ;;  %s5669_s5 = inlined_call_operand.vmem [shape: f32[2,256,8], index: 5, kind: output, shape index: {}]  }
   0x1 LB: > { %s3633_s19 = sadd.s32 4294967295, %s4137_s18   ;;  %p3637_p0 = scmp.ge.s32.totalorder %s4137_s18, 1  ;;  %s4137_s18 = sphi %s4170_s18, %s15_s18  }
   0x2   : > { %p187_p1 = scmp.lt.s32.totalorder %s4137_s18, 3 }
   0x4   : > { %p188_p2 = pnand %p3637_p0, %p187_p1 }
   0x6   : > { %191 = sbr.rel (%p188_p2) target bundleno = 789 (0x315), region = 40 }
   0xd   : > { %v258_v0 = vld [vmem:[%s5665_s1] sm:$0x3]  ;;  %vm395_vm0 = vcmask 1041408   ;;  %p215_p3 = scmp.lt.s32.totalorder %s3633_s19, 1  ;;  %vm346_vm1 = vcmask 31744   ;;  %vm737_vm2 = vcmask 15360  }
   0xe   : > { %4100 = vmatprep.subr.msk.bf16.mxu0 %vm395_vm0, %v258_v0  ;;  %v397_v1 = vsel %vm395_vm0, %v258_v0, 0  ;;  %v4139_v18 = vmov -inf   ;;  %v3675_v19 = vld [vmem:[%s5667_s3 + $0x1] sm:$0x1]  ;;  %vm1405_vm3 = vcmask 1040384   ;;  %vm3545_vm4 = vcmask 64512  }
   0xf   : > { %3833 = vmatpush3.bf16.msra.mxu0 %v397_v1  ;;  %s5693_s19 = smov (!%p215_p3, %s3633_s19), 1  ;;  %751 = vst.msk [vmem:[#allocation2 + $0x68] sm:$0xff] %vm737_vm2, %v4139_v18  ;;  %738 = vst.msk [vmem:[#allocation2] sm:$0xff] %vm737_vm2, %v4139_v18  ;;  %v1407_v20 = vsel %vm1405_vm3, %v3675_v19, 0  ;;  %v736_v21 = vld [vmem:[%s5667_s3] sm:$0x1] }
  0x10   : > { %s3745_s22 = sshll.u32 %s5693_s19, 7  ;;  %739 = vst.msk [vmem:[#allocation2 + $0x8] sm:$0xff] %vm737_vm2, %v4139_v18  ;;  %740 = vst.msk [vmem:[#allocation2 + $0x10] sm:$0xff] %vm737_vm2, %v4139_v18  ;;  %4101 = vmatprep.subr.msk.bf16.mxu0 %vm1405_vm3, %v3675_v19  ;;  %4103 = vmatprep.subr.msk.bf16.mxu1 %vm1405_vm3, %v736_v21  ;;  %v4391_v22 = vsel %vm1405_vm3, %v736_v21, 0  ;;  %v4398_v23 = vld [vmem:[%s5667_s3 + $0x2] sm:$0x1] }
  0x11   : > { %s4187_s25 = scalar_lea.vmem %s5664_s0, %s3745_s22  ;;  %741 = vst.msk [vmem:[#allocation2 + $0x18] sm:$0xff] %vm737_vm2, %v4139_v18  ;;  %742 = vst.msk [vmem:[#allocation2 + $0x20] sm:$0xff] %vm737_vm2, %v4139_v18  ;;  %4003 = vmatpush3.bf16.msra.mxu1 %v4391_v22  ;;  %v4405_v37 = vld [vmem:[%s5666_s2] ss:$0 sm:$0xff]  ;;  %s3746_s13 = sshll.u32 %s5693_s19, 8 }
  0x12   : > { %v4115_v2 = vld [vmem:[%s4187_s25] sm:$0xff]   ;;  %v4116_v3 = vld [vmem:[%s4187_s25 + $0x8] sm:$0xff]   ;;  %v4117_v4 = vld [vmem:[%s4187_s25 + $0x10] sm:$0xff]   ;;  %743 = vst.msk [vmem:[#allocation2 + $0x28] sm:$0xff] %vm737_vm2, %v4139_v18  ;;  %4104 = vmatprep.subr.msk.bf16.mxu1 %vm1405_vm3, %v4398_v23  ;;  %s5544_s16 = scalar_lea.vmem %s5669_s5, %s3746_s13 }
  0x13   : > { %3834 = vmatprep.mubr.msk.bf16.mxu0 %vm346_vm1, %v4115_v2  ;;  %v4118_v5 = vld [vmem:[%s4187_s25 + $0x18] sm:$0xff]   ;;  %v4119_v6 = vld [vmem:[%s4187_s25 + $0x20] sm:$0xff]   ;;  %v4120_v7 = vld [vmem:[%s4187_s25 + $0x28] sm:$0xff]   ;;  %744 = vst.msk [vmem:[#allocation2 + $0x30] sm:$0xff] %vm737_vm2, %v4139_v18 }
  0x14   : > { %3835 = vmatmul.mubr.msk.bf16.vlgmr.msra.gmra.mrb[0].mxu0 %vm346_vm1, %v4116_v3  ;;  %v4121_v8 = vld [vmem:[%s4187_s25 + $0x30] sm:$0xff]   ;;  %v4122_v9 = vld [vmem:[%s4187_s25 + $0x38] sm:$0xff]   ;;  %v4123_v10 = vld [vmem:[%s4187_s25 + $0x40] sm:$0xff]   ;;  %745 = vst.msk [vmem:[#allocation2 + $0x38] sm:$0xff] %vm737_vm2, %v4139_v18 }
  0x15   : > { %3838 = vmatprep.mubr.msk.bf16.mxu0 %vm346_vm1, %v4117_v4  ;;  %v4124_v11 = vld [vmem:[%s4187_s25 + $0x48] sm:$0xff]   ;;  %v4125_v12 = vld [vmem:[%s4187_s25 + $0x50] sm:$0xff]   ;;  %v4126_v13 = vld [vmem:[%s4187_s25 + $0x58] sm:$0xff]   ;;  %746 = vst.msk [vmem:[#allocation2 + $0x40] sm:$0xff] %vm737_vm2, %v4139_v18  ;;  %3867 = vmatpush3.bf16.msra.mxu0 %v1407_v20 }
  0x16   : > { %v4127_v14 = vld [vmem:[%s4187_s25 + $0x60] sm:$0xff]   ;;  %v4128_v15 = vld [vmem:[%s4187_s25 + $0x68] sm:$0xff]   ;;  %v4129_v16 = vld [vmem:[%s4187_s25 + $0x70] sm:$0xff]   ;;  %747 = vst.msk [vmem:[#allocation2 + $0x48] sm:$0xff] %vm737_vm2, %v4139_v18  ;;  %4102 = vmatprep.subr.msk.bf16.mxu0 %vm1405_vm3, %v736_v21 }
  0x17   : > { %v4130_v17 = vld [vmem:[%s4187_s25 + $0x78] sm:$0xff]   ;;  %748 = vst.msk [vmem:[#allocation2 + $0x50] sm:$0xff] %vm737_vm2, %v4139_v18  ;;  %749 = vst.msk [vmem:[#allocation2 + $0x58] sm:$0xff] %vm737_vm2, %v4139_v18  ;;  %v851_v24 = vld [vmem:[#allocation2 + $0x6] sm:$0xff] }
  0x18   : > { %750 = vst.msk [vmem:[#allocation2 + $0x60] sm:$0xff] %vm737_vm2, %v4139_v18  ;;  %752 = vst.msk [vmem:[#allocation2 + $0x70] sm:$0xff] %vm737_vm2, %v4139_v18  ;;  %v891_v26 = vld [vmem:[#allocation2 + $0x7] sm:$0xff]  ;;  %v892_v29 = vld [vmem:[#allocation2 + $0xf] sm:$0xff] }
  0x19   : > { %753 = vst.msk [vmem:[#allocation2 + $0x78] sm:$0xff] %vm737_vm2, %v4139_v18  ;;  %754 = vst.msk [vmem:[#allocation2 + $0x80] sm:$0xff] %vm737_vm2, %v4139_v18  ;;  %v853_v25 = vld [vmem:[#allocation2 + $0x26] sm:$0xff]  ;;  %v852_v28 = vld [vmem:[#allocation2 + $0xe] sm:$0xff]  ;;  %v931_v32 = vmax.f32 %v851_v24, %v891_v26 }
  0x1a   : > { %755 = vst.msk [vmem:[#allocation2 + $0x88] sm:$0xff] %vm737_vm2, %v4139_v18  ;;  %756 = vst.msk [vmem:[#allocation2 + $0x90] sm:$0xff] %vm737_vm2, %v4139_v18  ;;  %v893_v27 = vld [vmem:[#allocation2 + $0x27] sm:$0xff]  ;;  %v894_v31 = vld [vmem:[#allocation2 + $0x2f] sm:$0xff]  ;;  %v932_v34 = vmax.f32 %v852_v28, %v892_v29 }
  0x1b   : > { %757 = vst.msk [vmem:[#allocation2 + $0x98] sm:$0xff] %vm737_vm2, %v4139_v18  ;;  %758 = vst.msk [vmem:[#allocation2 + $0xa0] sm:$0xff] %vm737_vm2, %v4139_v18  ;;  %v854_v30 = vld [vmem:[#allocation2 + $0x2e] sm:$0xff]  ;;  %v933_v33 = vmax.f32 %v853_v25, %v893_v27 }
  0x1c   : > { %3839 = vmatmul.mubr.msk.bf16.gmra.mrb[4].mxu0 %vm346_vm1, %v4118_v5  ;;  %759 = vst.msk [vmem:[#allocation2 + $0xa8] sm:$0xff] %vm737_vm2, %v4139_v18  ;;  %760 = vst.msk [vmem:[#allocation2 + $0xb0] sm:$0xff] %vm737_vm2, %v4139_v18  ;;  %v971_v35 = vld [vmem:[#allocation2 + $0x8] sm:$0xff]  ;;  %v934_v38 = vmax.f32 %v854_v30, %v894_v31  ;;  %v972_v39 = vld [vmem:[#allocation2 + $0x10] sm:$0xff] }
  0x1d   : > { %3842 = vmatprep.mubr.msk.bf16.mxu0 %vm346_vm1, %v4119_v6  ;;  %761 = vst.msk [vmem:[#allocation2 + $0xb8] sm:$0xff] %vm737_vm2, %v4139_v18  ;;  %762 = vst.msk [vmem:[#allocation2 + $0xc0] sm:$0xff] %vm737_vm2, %v4139_v18  ;;  %v973_v36 = vld [vmem:[#allocation2 + $0x28] sm:$0xff]  ;;  %v974_v40 = vld [vmem:[#allocation2 + $0x30] sm:$0xff]  ;;  %v1011_v42 = vmax.f32 %v931_v32, %v971_v35  ;;  %v1012_v46 = vmax.f32 %v932_v34, %v972_v39 }
  0x1e   : > { %763 = vst.msk [vmem:[#allocation2 + $0xc8] sm:$0xff] %vm737_vm2, %v4139_v18  ;;  %764 = vst.msk [vmem:[#allocation2 + $0xd0] sm:$0xff] %vm737_vm2, %v4139_v18  ;;  %v1013_v43 = vmax.f32 %v933_v33, %v973_v36  ;;  %v1051_v47 = vld [vmem:[#allocation2 + $0x9] sm:$0xff]  ;;  %v1014_v51 = vmax.f32 %v934_v38, %v974_v40  ;;  %v1052_v52 = vld [vmem:[#allocation2 + $0x11] sm:$0xff] }
  0x1f   : > { %765 = vst.msk [vmem:[#allocation2 + $0xd8] sm:$0xff] %vm737_vm2, %v4139_v18  ;;  %766 = vst.msk [vmem:[#allocation2 + $0xe0] sm:$0xff] %vm737_vm2, %v4139_v18  ;;  %v1053_v48 = vld [vmem:[#allocation2 + $0x29] sm:$0xff]  ;;  %v1054_v56 = vld [vmem:[#allocation2 + $0x31] sm:$0xff]  ;;  %v1091_v59 = vmax.f32 %v1011_v42, %v1051_v47  ;;  %v1092_v63 = vmax.f32 %v1012_v46, %v1052_v52 }
  0x20   : > { %767 = vst.msk [vmem:[#allocation2 + $0xe8] sm:$0xff] %vm737_vm2, %v4139_v18  ;;  %768 = vst.msk [vmem:[#allocation2 + $0xf0] sm:$0xff] %vm737_vm2, %v4139_v18  ;;  %v1093_v60 = vmax.f32 %v1013_v43, %v1053_v48  ;;  %v1131_v0 = vld [vmem:[#allocation2 + $0xa] sm:$0xff]  ;;  %v1094_v4 = vmax.f32 %v1014_v51, %v1054_v56  ;;  %v1132_v5 = vld [vmem:[#allocation2 + $0x12] sm:$0xff]  ;;  %v4453_v56 = vsel %vm1405_vm3, %v4398_v23, 0 }
  0x21   : > { %769 = vst.msk [vmem:[#allocation2 + $0xf8] sm:$0xff] %vm737_vm2, %v4139_v18  ;;  %770 = vst.msk [vmem:[#allocation2 + $0x100] sm:$0xff] %vm737_vm2, %v4139_v18  ;;  %v1133_v1 = vld [vmem:[#allocation2 + $0x2a] sm:$0xff]  ;;  %v4441_v46 = vld [vmem:[%s5667_s3 + $0x3] sm:$0x1] }
  0x22   : > { %771 = vst.msk [vmem:[#allocation2 + $0x108] sm:$0xff] %vm737_vm2, %v4139_v18  ;;  %772 = vst.msk [vmem:[#allocation2 + $0x110] sm:$0xff] %vm737_vm2, %v4139_v18 }
  0x23   : > { %773 = vst.msk [vmem:[#allocation2 + $0x118] sm:$0xff] %vm737_vm2, %v4139_v18  ;;  %774 = vst.msk [vmem:[#allocation2 + $0x120] sm:$0xff] %vm737_vm2, %v4139_v18 }
  0x24   : > { %3843 = vmatmul.mubr.msk.bf16.gmra.mrb[8].mxu0 %vm346_vm1, %v4120_v7  ;;  %775 = vst.msk [vmem:[#allocation2 + $0x128] sm:$0xff] %vm737_vm2, %v4139_v18  ;;  %776 = vst.msk [vmem:[#allocation2 + $0x130] sm:$0xff] %vm737_vm2, %v4139_v18 }
  0x25   : > { %3846 = vmatprep.mubr.msk.bf16.mxu0 %vm346_vm1, %v4121_v8  ;;  %777 = vst.msk [vmem:[#allocation2 + $0x138] sm:$0xff] %vm737_vm2, %v4139_v18  ;;  %778 = vst.msk [vmem:[#allocation2 + $0x140] sm:$0xff] %vm737_vm2, %v4139_v18  ;;  %v1134_v8 = vld [vmem:[#allocation2 + $0x32] sm:$0xff] }
  0x26   : > { %779 = vst.msk [vmem:[#allocation2 + $0x148] sm:$0xff] %vm737_vm2, %v4139_v18  ;;  %780 = vst.msk [vmem:[#allocation2 + $0x150] sm:$0xff] %vm737_vm2, %v4139_v18  ;;  %v4415_v25 = vmax.f32 %v1094_v4, %v1134_v8 }
  0x27   : > { %781 = vst.msk [vmem:[#allocation2 + $0x158] sm:$0xff] %vm737_vm2, %v4139_v18  ;;  %782 = vst.msk [vmem:[#allocation2 + $0x160] sm:$0xff] %vm737_vm2, %v4139_v18 }
  0x28   : > { %783 = vst.msk [vmem:[#allocation2 + $0x168] sm:$0xff] %vm737_vm2, %v4139_v18  ;;  %784 = vst.msk [vmem:[#allocation2 + $0x170] sm:$0xff] %vm737_vm2, %v4139_v18 }
  0x29   : > { %785 = vst.msk [vmem:[#allocation2 + $0x178] sm:$0xff] %vm737_vm2, %v4139_v18  ;;  %786 = vst.msk [vmem:[#allocation2 + $0x180] sm:$0xff] %vm737_vm2, %v4139_v18 }
  0x2a   : > { %787 = vst.msk [vmem:[#allocation2 + $0x188] sm:$0xff] %vm737_vm2, %v4139_v18  ;;  %788 = vst.msk [vmem:[#allocation2 + $0x190] sm:$0xff] %vm737_vm2, %v4139_v18 }
  0x2b   : > { %789 = vst.msk [vmem:[#allocation2 + $0x198] sm:$0xff] %vm737_vm2, %v4139_v18  ;;  %790 = vst.msk [vmem:[#allocation2 + $0x1a0] sm:$0xff] %vm737_vm2, %v4139_v18 }
  0x2c   : > { %3847 = vmatmul.mubr.msk.bf16.gmra.mrb[12].mxu0 %vm346_vm1, %v4122_v9  ;;  %791 = vst.msk [vmem:[#allocation2 + $0x1a8] sm:$0xff] %vm737_vm2, %v4139_v18  ;;  %792 = vst.msk [vmem:[#allocation2 + $0x1b0] sm:$0xff] %vm737_vm2, %v4139_v18 }
  0x2d   : > { %3850 = vmatprep.mubr.msk.bf16.mxu0 %vm346_vm1, %v4123_v10  ;;  %793 = vst.msk [vmem:[#allocation2 + $0x1b8] sm:$0xff] %vm737_vm2, %v4139_v18  ;;  %794 = vst.msk [vmem:[#allocation2 + $0x1c0] sm:$0xff] %vm737_vm2, %v4139_v18 }
  0x2e   : > { %795 = vst.msk [vmem:[#allocation2 + $0x1c8] sm:$0xff] %vm737_vm2, %v4139_v18  ;;  %796 = vst.msk [vmem:[#allocation2 + $0x1d0] sm:$0xff] %vm737_vm2, %v4139_v18 }
  0x2f   : > { %797 = vst.msk [vmem:[#allocation2 + $0x1d8] sm:$0xff] %vm737_vm2, %v4139_v18  ;;  %798 = vst.msk [vmem:[#allocation2 + $0x1e0] sm:$0xff] %vm737_vm2, %v4139_v18 }
  0x30   : > { %799 = vst.msk [vmem:[#allocation2 + $0x1e8] sm:$0xff] %vm737_vm2, %v4139_v18  ;;  %800 = vst.msk [vmem:[#allocation2 + $0x1f0] sm:$0xff] %vm737_vm2, %v4139_v18 }
  0x31   : > { %801 = vst.msk [vmem:[#allocation2 + $0x1f8] sm:$0xff] %vm737_vm2, %v4139_v18  ;;  %802 = vst.msk [vmem:[#allocation2 + $0x200] sm:$0xff] %vm737_vm2, %v4139_v18 }
  0x32   : > { %803 = vst.msk [vmem:[#allocation2 + $0x208] sm:$0xff] %vm737_vm2, %v4139_v18  ;;  %804 = vst.msk [vmem:[#allocation2 + $0x210] sm:$0xff] %vm737_vm2, %v4139_v18 }
  0x33   : > { %805 = vst.msk [vmem:[#allocation2 + $0x218] sm:$0xff] %vm737_vm2, %v4139_v18  ;;  %806 = vst.msk [vmem:[#allocation2 + $0x220] sm:$0xff] %vm737_vm2, %v4139_v18 }
  0x34   : > { %3851 = vmatmul.mubr.msk.bf16.gmra.mrb[16].mxu0 %vm346_vm1, %v4124_v11  ;;  %807 = vst.msk [vmem:[#allocation2 + $0x228] sm:$0xff] %vm737_vm2, %v4139_v18  ;;  %808 = vst.msk [vmem:[#allocation2 + $0x230] sm:$0xff] %vm737_vm2, %v4139_v18 }
  0x35   : > { %3854 = vmatprep.mubr.msk.bf16.mxu0 %vm346_vm1, %v4125_v12  ;;  %809 = vst.msk [vmem:[#allocation2 + $0x238] sm:$0xff] %vm737_vm2, %v4139_v18  ;;  %810 = vst.msk [vmem:[#allocation2 + $0x240] sm:$0xff] %vm737_vm2, %v4139_v18  ;;  %v1171_v12 = vmax.f32 %v1091_v59, %v1131_v0 }
  0x36   : > { %811 = vst.msk [vmem:[#allocation2 + $0x248] sm:$0xff] %vm737_vm2, %v4139_v18  ;;  %812 = vst.msk [vmem:[#allocation2 + $0x250] sm:$0xff] %vm737_vm2, %v4139_v18 }
  0x37   : > { %813 = vst.msk [vmem:[#allocation2 + $0x258] sm:$0xff] %vm737_vm2, %v4139_v18  ;;  %814 = vst.msk [vmem:[#allocation2 + $0x260] sm:$0xff] %vm737_vm2, %v4139_v18 }
  0x38   : > { %815 = vst.msk [vmem:[#allocation2 + $0x268] sm:$0xff] %vm737_vm2, %v4139_v18  ;;  %816 = vst.msk [vmem:[#allocation2 + $0x270] sm:$0xff] %vm737_vm2, %v4139_v18 }
  0x39   : > { %817 = vst.msk [vmem:[#allocation2 + $0x278] sm:$0xff] %vm737_vm2, %v4139_v18  ;;  %v1172_v18 = vmax.f32 %v1092_v63, %v1132_v5 }
  0x3b   : > { %v4448_v51 = vmax.f32 %v1172_v18, %v4415_v25 }
  0x3c   : > { %3855 = vmatmul.mubr.msk.bf16.gmra.mrb[20].mxu0 %vm346_vm1, %v4126_v13  ;;  %v4411_v13 = vmax.f32 %v1093_v60, %v1133_v1 }
  0x3d   : > { %3858 = vmatprep.mubr.msk.bf16.mxu0 %vm346_vm1, %v4127_v14 }
  0x44   : > { %3859 = vmatmul.mubr.msk.bf16.gmra.mrb[24].mxu0 %vm346_vm1, %v4128_v15 }
  0x45   : > { %3862 = vmatprep.mubr.msk.bf16.mxu0 %vm346_vm1, %v4129_v16 }
  0x4c   : > { %3863 = vmatmul.mubr.msk.bf16.gmra.mrb[28].mxu0 %vm346_vm1, %v4130_v17 }
  0xe7   : > { %v3836_v41 = vpop.f32.mrb[0].mxu0 }
  0xe8   : > { %v442_v44 = vadd.f32 %v3836_v41, %v4405_v37  ;;  %v433_v45 = vpop.f32.mrb[1].mxu0 }
  0xe9   : > { %v434_v49 = vadd.f32 %v4405_v37, %v433_v45  ;;  %v3837_v50 = vpop.f32.mrb[2].mxu0  ;;  %v4436_v45 = vmax.f32 %v1171_v12, %v4411_v13 }
  0xea   : > { %v562_v53 = vadd.f32 3.0, %v442_v44  ;;  %v445_v54 = vadd.f32 %v3837_v50, %v4405_v37  ;;  %v436_v55 = vpop.f32.mrb[3].mxu0 }
  0xeb   : > { %v560_v57 = vadd.f32 3.0, %v434_v49  ;;  %v437_v58 = vadd.f32 %v4405_v37, %v436_v55 }
  0xec   : > { %v594_v61 = vmax.f32 %v562_v53, 0.0  ;;  %v563_v62 = vadd.f32 3.0, %v445_v54 }
  0xed   : > { %v592_v2 = vmax.f32 %v560_v57, 0.0  ;;  %v561_v3 = vadd.f32 3.0, %v437_v58 }
  0xee   : > { %v626_v6 = vmin.f32 %v594_v61, 6.0  ;;  %v595_v7 = vmax.f32 %v563_v62, 0.0  ;;  %v4458_v61 = vsel %vm1405_vm3, %v4441_v46, 0 }
  0xef   : > { %v624_v9 = vmin.f32 %v592_v2, 6.0  ;;  %v593_v10 = vmax.f32 %v561_v3, 0.0  ;;  %v3840_v11 = vpop.f32.mrb[4].mxu0 }
  0xf0   : > { %v658_v14 = vmul.f32 %v626_v6, %v442_v44  ;;  %v627_v15 = vmin.f32 %v595_v7, 6.0  ;;  %v458_v16 = vadd.f32 %v3840_v11, %v4405_v37  ;;  %v449_v17 = vpop.f32.mrb[5].mxu0 }
  0xf1   : > { %v656_v19 = vmul.f32 %v624_v9, %v434_v49  ;;  %v625_v20 = vmin.f32 %v593_v10, 6.0  ;;  %v450_v21 = vadd.f32 %v4405_v37, %v449_v17  ;;  %v3841_v24 = vpop.f32.mrb[6].mxu0 }
  0xf2   : > { %v4417_v26 = vmul.f32 0.16666667, %v658_v14  ;;  %v659_v27 = vmul.f32 %v627_v15, %v445_v54  ;;  %v566_v28 = vadd.f32 3.0, %v458_v16  ;;  %v461_v29 = vadd.f32 %v3841_v24, %v4405_v37  ;;  %v452_v30 = vpop.f32.mrb[7].mxu0 }
  0xf3   : > { %v4420_v31 = vmul.f32 0.16666667, %v656_v19  ;;  %v657_v32 = vmul.f32 %v625_v20, %v437_v58  ;;  %v564_v33 = vadd.f32 3.0, %v450_v21  ;;  %v453_v34 = vadd.f32 %v4405_v37, %v452_v30 }
  0xf4   : > { %821 = vst.msk [vmem:[#allocation2 + $0x68] sm:$0xff] %vm737_vm2, %v4417_v26  ;;  %v4425_v35 = vmul.f32 0.16666667, %v659_v27  ;;  %v598_v36 = vmax.f32 %v566_v28, 0.0  ;;  %v567_v38 = vadd.f32 3.0, %v461_v29 }
  0xf5   : > { %819 = vst.msk [vmem:[#allocation2 + $0x48] sm:$0xff] %vm737_vm2, %v4420_v31  ;;  %v4429_v39 = vmul.f32 0.16666667, %v657_v32  ;;  %v596_v40 = vmax.f32 %v564_v33, 0.0  ;;  %v565_v41 = vadd.f32 3.0, %v453_v34 }
  0xf6   : > { %822 = vst.msk [vmem:[#allocation2 + $0x70] sm:$0xff] %vm737_vm2, %v4425_v35  ;;  %v630_v43 = vmin.f32 %v598_v36, 6.0  ;;  %v599_v44 = vmax.f32 %v567_v38, 0.0 }
  0xf7   : > { %820 = vst.msk [vmem:[#allocation2 + $0x50] sm:$0xff] %vm737_vm2, %v4429_v39  ;;  %v628_v48 = vmin.f32 %v596_v40, 6.0  ;;  %v597_v49 = vmax.f32 %v565_v41, 0.0  ;;  %v3844_v50 = vpop.f32.mrb[8].mxu0 }
  0xf8   : > { %v662_v52 = vmul.f32 %v630_v43, %v458_v16  ;;  %v631_v53 = vmin.f32 %v599_v44, 6.0  ;;  %v474_v54 = vadd.f32 %v3844_v50, %v4405_v37  ;;  %v465_v55 = vpop.f32.mrb[9].mxu0 }
  0xf9   : > { %v660_v57 = vmul.f32 %v628_v48, %v450_v21  ;;  %v629_v58 = vmin.f32 %v597_v49, 6.0  ;;  %v466_v59 = vadd.f32 %v4405_v37, %v465_v55  ;;  %v3845_v60 = vpop.f32.mrb[10].mxu0 }
  0xfa   : > { %v4460_v62 = vmul.f32 0.16666667, %v662_v52  ;;  %v663_v63 = vmul.f32 %v631_v53, %v461_v29  ;;  %v570_v0 = vadd.f32 3.0, %v474_v54  ;;  %v477_v1 = vadd.f32 %v3845_v60, %v4405_v37  ;;  %v468_v2 = vpop.f32.mrb[11].mxu0 }
  0xfb   : > { %v4463_v3 = vmul.f32 0.16666667, %v660_v57  ;;  %v661_v23 = vmul.f32 %v629_v58, %v453_v34  ;;  %v568_v4 = vadd.f32 3.0, %v466_v59  ;;  %v469_v5 = vadd.f32 %v4405_v37, %v468_v2  ;;  %v857_v6 = vld [vmem:[#allocation2 + $0x66] sm:$0xff] }
  0xfc   : > { %v897_v7 = vld [vmem:[#allocation2 + $0x67] sm:$0xff]  ;;  %825 = vst.msk [vmem:[#allocation2 + $0xa8] sm:$0xff] %vm737_vm2, %v4460_v62  ;;  %v4468_v8 = vmul.f32 0.16666667, %v663_v63  ;;  %v602_v9 = vmax.f32 %v570_v0, 0.0  ;;  %v571_v10 = vadd.f32 3.0, %v477_v1 }
  0xfd   : > { %v855_v11 = vld [vmem:[#allocation2 + $0x46] sm:$0xff]  ;;  %v937_v14 = vmax.f32 %v857_v6, %v897_v7  ;;  %823 = vst.msk [vmem:[#allocation2 + $0x88] sm:$0xff] %vm737_vm2, %v4463_v3  ;;  %v4472_v15 = vmul.f32 0.16666667, %v661_v23  ;;  %v600_v16 = vmax.f32 %v568_v4, 0.0  ;;  %v569_v17 = vadd.f32 3.0, %v469_v5 }
  0xfe   : > { %v895_v12 = vld [vmem:[#allocation2 + $0x47] sm:$0xff]  ;;  %v898_v19 = vld [vmem:[#allocation2 + $0x6f] sm:$0xff]  ;;  %826 = vst.msk [vmem:[#allocation2 + $0xb0] sm:$0xff] %vm737_vm2, %v4468_v8  ;;  %v634_v24 = vmin.f32 %v602_v9, 6.0  ;;  %v603_v27 = vmax.f32 %v571_v10, 0.0 }
  0xff   : > { %v858_v18 = vld [vmem:[#allocation2 + $0x6e] sm:$0xff]  ;;  %v935_v20 = vmax.f32 %v855_v11, %v895_v12  ;;  %824 = vst.msk [vmem:[#allocation2 + $0x90] sm:$0xff] %vm737_vm2, %v4472_v15  ;;  %v632_v33 = vmin.f32 %v600_v16, 6.0  ;;  %v601_v34 = vmax.f32 %v569_v17, 0.0  ;;  %v3848_v36 = vpop.f32.mrb[12].mxu0 }
 0x100   : > { %v856_v28 = vld [vmem:[#allocation2 + $0x4e] sm:$0xff]  ;;  %v938_v30 = vmax.f32 %v858_v18, %v898_v19  ;;  %v666_v41 = vmul.f32 %v634_v24, %v474_v54  ;;  %v635_v43 = vmin.f32 %v603_v27, 6.0  ;;  %v490_v44 = vadd.f32 %v3848_v36, %v4405_v37  ;;  %v481_v48 = vpop.f32.mrb[13].mxu0 }
 0x101   : > { %v896_v29 = vld [vmem:[#allocation2 + $0x4f] sm:$0xff]  ;;  %v664_v52 = vmul.f32 %v632_v33, %v466_v59  ;;  %v633_v53 = vmin.f32 %v601_v34, 6.0  ;;  %v482_v55 = vadd.f32 %v4405_v37, %v481_v48  ;;  %v3849_v57 = vpop.f32.mrb[14].mxu0 }
 0x102   : > { %v936_v38 = vmax.f32 %v856_v28, %v896_v29  ;;  %v975_v40 = vld [vmem:[#allocation2 + $0x48] sm:$0xff]  ;;  %v976_v49 = vld [vmem:[#allocation2 + $0x50] sm:$0xff]  ;;  %v4488_v60 = vmul.f32 0.16666667, %v666_v41  ;;  %v667_v63 = vmul.f32 %v635_v43, %v477_v1  ;;  %v574_v0 = vadd.f32 3.0, %v490_v44  ;;  %v484_v2 = vpop.f32.mrb[15].mxu0 }
 0x103   : > { %v4483_v50 = vmax.f32 %v935_v20, %v975_v40  ;;  %v493_v54 = vadd.f32 %v3849_v57, %v4405_v37  ;;  %v4491_v23 = vmul.f32 0.16666667, %v664_v52  ;;  %v665_v4 = vmul.f32 %v633_v53, %v469_v5  ;;  %v977_v59 = vld [vmem:[#allocation2 + $0x68] sm:$0xff]  ;;  %v978_v9 = vld [vmem:[#allocation2 + $0x70] sm:$0xff] }
 0x104   : > { %v4486_v58 = vmax.f32 %v936_v38, %v976_v49  ;;  %v572_v6 = vadd.f32 3.0, %v482_v55  ;;  %v485_v7 = vadd.f32 %v4405_v37, %v484_v2  ;;  %829 = vst.msk [vmem:[#allocation2 + $0xe8] sm:$0xff] %vm737_vm2, %v4488_v60  ;;  %v4496_v10 = vmul.f32 0.16666667, %v667_v63  ;;  %v859_v1 = vld [vmem:[#allocation2 + $0x86] sm:$0xff] }
 0x105   : > { %v606_v11 = vmax.f32 %v574_v0, 0.0  ;;  %v575_v12 = vadd.f32 3.0, %v493_v54  ;;  %v899_v16 = vld [vmem:[#allocation2 + $0x87] sm:$0xff]  ;;  %v4498_v17 = vmax.f32 %v937_v14, %v977_v59  ;;  %827 = vst.msk [vmem:[#allocation2 + $0xc8] sm:$0xff] %vm737_vm2, %v4491_v23  ;;  %v4502_v5 = vmul.f32 0.16666667, %v665_v4 }
 0x106   : > { %v604_v18 = vmax.f32 %v572_v6, 0.0  ;;  %v939_v19 = vmax.f32 %v859_v1, %v899_v16  ;;  %v4504_v20 = vmax.f32 %v938_v30, %v978_v9  ;;  %830 = vst.msk [vmem:[#allocation2 + $0xf0] sm:$0xff] %vm737_vm2, %v4496_v10  ;;  %v573_v29 = vadd.f32 3.0, %v485_v7  ;;  %v860_v14 = vld [vmem:[#allocation2 + $0x8e] sm:$0xff] }
 0x107   : > { %v638_v27 = vmin.f32 %v606_v11, 6.0  ;;  %v607_v28 = vmax.f32 %v575_v12, 0.0  ;;  %v900_v33 = vld [vmem:[#allocation2 + $0x8f] sm:$0xff]  ;;  %828 = vst.msk [vmem:[#allocation2 + $0xd0] sm:$0xff] %vm737_vm2, %v4502_v5  ;;  %v3852_v38 = vpop.f32.mrb[16].mxu0 }
 0x108   : > { %v979_v34 = vld [vmem:[#allocation2 + $0x88] sm:$0xff]  ;;  %v636_v30 = vmin.f32 %v604_v18, 6.0  ;;  %v940_v40 = vmax.f32 %v860_v14, %v900_v33  ;;  %v605_v49 = vmax.f32 %v573_v29, 0.0  ;;  %v506_v52 = vadd.f32 %v3852_v38, %v4405_v37  ;;  %v497_v53 = vpop.f32.mrb[17].mxu0  ;;  %v980_v57 = vld [vmem:[#allocation2 + $0x90] sm:$0xff] }
 0x109   : > { %v4514_v41 = vmax.f32 %v939_v19, %v979_v34  ;;  %v670_v43 = vmul.f32 %v638_v27, %v490_v44  ;;  %v639_v48 = vmin.f32 %v607_v28, 6.0  ;;  %v1055_v63 = vld [vmem:[#allocation2 + $0x49] sm:$0xff]  ;;  %v498_v2 = vadd.f32 %v4405_v37, %v497_v53  ;;  %v3853_v4 = vpop.f32.mrb[18].mxu0  ;;  %v1056_v27 = vld [vmem:[#allocation2 + $0x51] sm:$0xff] }
 0x10a   : > { %v668_v0 = vmul.f32 %v636_v30, %v482_v55  ;;  %v4518_v6 = vmax.f32 %v940_v40, %v980_v57  ;;  %v1095_v59 = vmax.f32 %v4483_v50, %v1055_v63  ;;  %v637_v12 = vmin.f32 %v605_v49, 6.0  ;;  %v500_v1 = vpop.f32.mrb[19].mxu0  ;;  %v1057_v14 = vld [vmem:[#allocation2 + $0x69] sm:$0xff]  ;;  %v1058_v38 = vld [vmem:[#allocation2 + $0x71] sm:$0xff] }
 0x10b   : > { %v4521_v9 = vmul.f32 0.16666667, %v670_v43  ;;  %v671_v11 = vmul.f32 %v639_v48, %v493_v54  ;;  %v578_v44 = vadd.f32 3.0, %v506_v52  ;;  %v576_v18 = vadd.f32 3.0, %v498_v2  ;;  %v1059_v49 = vld [vmem:[#allocation2 + $0x89] sm:$0xff] }
 0x10c   : > { %v4523_v16 = vmul.f32 0.16666667, %v668_v0  ;;  %v509_v19 = vadd.f32 %v3853_v4, %v4405_v37  ;;  %v501_v55 = vadd.f32 %v4405_v37, %v500_v1  ;;  %v669_v50 = vmul.f32 %v637_v12, %v485_v7  ;;  %v1060_v4 = vld [vmem:[#allocation2 + $0x91] sm:$0xff]  ;;  %v901_v43 = vld [vmem:[#allocation2 + $0xa7] sm:$0xff] }
 0x10d   : > { %5674 = vst [vmem:[#allocation3_spill] sm:$0xff] %v4521_v9  ;;  %833 = vst.msk [vmem:[#allocation2 + $0x128] sm:$0xff] %vm737_vm2, %v4521_v9  ;;  %v4529_v28 = vmul.f32 0.16666667, %v671_v11  ;;  %v610_v29 = vmax.f32 %v578_v44, 0.0  ;;  %v1096_v54 = vmax.f32 %v4486_v58, %v1056_v27  ;;  %v608_v33 = vmax.f32 %v576_v18, 0.0 }
 0x10e   : > { %5675 = vst [vmem:[#allocation4_spill] sm:$0xff] %v4523_v16  ;;  %831 = vst.msk [vmem:[#allocation2 + $0x108] sm:$0xff] %vm737_vm2, %v4523_v16  ;;  %v579_v34 = vadd.f32 3.0, %v509_v19  ;;  %v577_v30 = vadd.f32 3.0, %v501_v55  ;;  %v1097_v40 = vmax.f32 %v4498_v17, %v1057_v14  ;;  %v4539_v7 = vmul.f32 0.16666667, %v669_v50 }
 0x10f   : > { %5676 = vst [vmem:[#allocation5_spill] sm:$0xff] %v4529_v28  ;;  %834 = vst.msk [vmem:[#allocation2 + $0x130] sm:$0xff] %vm737_vm2, %v4529_v28  ;;  %v642_v48 = vmin.f32 %v610_v29, 6.0  ;;  %v1098_v58 = vmax.f32 %v4504_v20, %v1058_v38  ;;  %v640_v53 = vmin.f32 %v608_v33, 6.0  ;;  %v3856_v0 = vpop.f32.mrb[20].mxu0  ;;  %v1099_v11 = vmax.f32 %v4514_v41, %v1059_v49  ;;  %v1135_v33 = vld [vmem:[#allocation2 + $0x4a] sm:$0xff] }
 0x110   : > { %5677 = vst [vmem:[#allocation6_spill] sm:$0xff] %v4539_v7  ;;  %v611_v57 = vmax.f32 %v579_v34, 0.0  ;;  %v609_v63 = vmax.f32 %v577_v30, 0.0  ;;  %832 = vst.msk [vmem:[#allocation2 + $0x110] sm:$0xff] %vm737_vm2, %v4539_v7  ;;  %v522_v44 = vadd.f32 %v3856_v0, %v4405_v37  ;;  %v513_v1 = vpop.f32.mrb[21].mxu0  ;;  %v1100_v18 = vmax.f32 %v4518_v6, %v1060_v4  ;;  %v1137_v4 = vld [vmem:[#allocation2 + $0x6a] sm:$0xff] }
 0x111   : > { %v674_v12 = vmul.f32 %v642_v48, %v506_v52  ;;  %v672_v20 = vmul.f32 %v640_v53, %v498_v2  ;;  %v514_v29 = vadd.f32 %v4405_v37, %v513_v1  ;;  %v3857_v14 = vpop.f32.mrb[22].mxu0  ;;  %v4553_v49 = vmax.f32 %v1095_v59, %v1135_v33  ;;  %v1136_v2 = vld [vmem:[#allocation2 + $0x52] sm:$0xff]  ;;  %v1139_v33 = vld [vmem:[#allocation2 + $0x8a] sm:$0xff] }
 0x112   : > { %v643_v27 = vmin.f32 %v611_v57, 6.0  ;;  %v641_v50 = vmin.f32 %v609_v63, 6.0  ;;  %v582_v34 = vadd.f32 3.0, %v522_v44  ;;  %v525_v30 = vadd.f32 %v3857_v14, %v4405_v37  ;;  %v516_v38 = vpop.f32.mrb[23].mxu0  ;;  %v862_v17 = vld [vmem:[#allocation2 + $0xae] sm:$0xff] }
 0x113   : > { %v4550_v41 = vmul.f32 0.16666667, %v674_v12  ;;  %v4555_v52 = vmul.f32 0.16666667, %v672_v20  ;;  %v580_v6 = vadd.f32 3.0, %v514_v29  ;;  %v517_v63 = vadd.f32 %v4405_v37, %v516_v38  ;;  %v902_v24 = vld [vmem:[#allocation2 + $0xaf] sm:$0xff] }
 0x114   : > { %v675_v48 = vmul.f32 %v643_v27, %v509_v19  ;;  %v673_v0 = vmul.f32 %v641_v50, %v501_v55  ;;  %v614_v53 = vmax.f32 %v582_v34, 0.0  ;;  %v583_v57 = vadd.f32 3.0, %v525_v30  ;;  %v1138_v55 = vld [vmem:[#allocation2 + $0x72] sm:$0xff]  ;;  %v1061_v47 = vld [vmem:[#allocation2 + $0xa9] sm:$0xff] }
 0x115   : > { %837 = vst.msk [vmem:[#allocation2 + $0x168] sm:$0xff] %vm737_vm2, %v4550_v41  ;;  %v4560_v12 = vmax.f32 %v1096_v54, %v1136_v2  ;;  %835 = vst.msk [vmem:[#allocation2 + $0x148] sm:$0xff] %vm737_vm2, %v4555_v52  ;;  %v612_v19 = vmax.f32 %v580_v6, 0.0  ;;  %v4568_v20 = vmax.f32 %v1097_v40, %v1137_v4  ;;  %v581_v14 = vadd.f32 3.0, %v517_v63  ;;  %v1140_v34 = vld [vmem:[#allocation2 + $0x92] sm:$0xff]  ;;  %v861_v2 = vld [vmem:[#allocation2 + $0xa6] sm:$0xff] }
 0x116   : > { %v4564_v59 = vmul.f32 0.16666667, %v675_v48  ;;  %v4566_v1 = vmul.f32 0.16666667, %v673_v0  ;;  %v646_v27 = vmin.f32 %v614_v53, 6.0  ;;  %v615_v50 = vmax.f32 %v583_v57, 0.0 }
 0x117   : > { %v4570_v38 = vmax.f32 %v1098_v58, %v1138_v55  ;;  %v644_v48 = vmin.f32 %v612_v19, 6.0  ;;  %v4578_v0 = vmax.f32 %v1099_v11, %v1139_v33  ;;  %v4580_v40 = vmax.f32 %v1100_v18, %v1140_v34  ;;  %v3860_v6 = vpop.f32.mrb[24].mxu0  ;;  %v904_v54 = vld [vmem:[#allocation2 + $0xcf] sm:$0xff] }
 0x118   : > { %838 = vst.msk [vmem:[#allocation2 + $0x170] sm:$0xff] %vm737_vm2, %v4564_v59  ;;  %836 = vst.msk [vmem:[#allocation2 + $0x150] sm:$0xff] %vm737_vm2, %v4566_v1  ;;  %v678_v53 = vmul.f32 %v646_v27, %v522_v44  ;;  %v647_v57 = vmin.f32 %v615_v50, 6.0  ;;  %v613_v58 = vmax.f32 %v581_v14, 0.0  ;;  %v1213_v4 = vmax.f32 %v4411_v13, %v4553_v49  ;;  %v529_v55 = vpop.f32.mrb[25].mxu0 }
 0x119   : > { %v676_v36 = vmul.f32 %v644_v48, %v514_v29  ;;  %v1214_v19 = vmax.f32 %v4415_v25, %v4560_v12  ;;  %v1243_v11 = vmax.f32 %v4436_v45, %v4553_v49  ;;  %v1244_v18 = vmax.f32 %v4448_v51, %v4560_v12  ;;  %v3861_v44 = vpop.f32.mrb[26].mxu0 }
 0x11a   : > { %v4590_v27 = vmul.f32 0.16666667, %v678_v53  ;;  %v679_v50 = vmul.f32 %v647_v57, %v525_v30  ;;  %v645_v14 = vmin.f32 %v613_v58, 6.0  ;;  %v4593_v33 = vmax.f32 %v1213_v4, %v4568_v20  ;;  %v532_v34 = vpop.f32.mrb[27].mxu0  ;;  %v981_v4 = vld [vmem:[#allocation2 + $0xa8] sm:$0xff] }
 0x11b   : > { %v4595_v21 = vmul.f32 0.16666667, %v676_v36  ;;  %v1246_v29 = vmax.f32 %v1214_v19, %v4570_v38  ;;  %v1275_v48 = vmax.f32 %v1243_v11, %v4568_v20  ;;  %v1276_v32 = vmax.f32 %v1244_v18, %v4570_v38  ;;  %v982_v19 = vld [vmem:[#allocation2 + $0xb0] sm:$0xff] }
 0x11c   : > { %841 = vst.msk [vmem:[#allocation2 + $0x1a8] sm:$0xff] %vm737_vm2, %v4590_v27  ;;  %v4602_v42 = vmul.f32 0.16666667, %v679_v50  ;;  %v677_v53 = vmul.f32 %v645_v14, %v517_v63  ;;  %v941_v30 = vmax.f32 %v861_v2, %v901_v43  ;;  %v942_v57 = vmax.f32 %v862_v17, %v902_v24  ;;  %v1062_v2 = vld [vmem:[#allocation2 + $0xb1] sm:$0xff]  ;;  %v863_v50 = vld [vmem:[#allocation2 + $0xc6] sm:$0xff] }
 0x11d   : > { %839 = vst.msk [vmem:[#allocation2 + $0x188] sm:$0xff] %vm737_vm2, %v4595_v21  ;;  %v1307_v36 = vmax.f32 %v1275_v48, %v4578_v0  ;;  %v1308_v58 = vmax.f32 %v1276_v32, %v4580_v40  ;;  %v1277_v11 = vmax.f32 %v4593_v33, %v4578_v0  ;;  %v1278_v18 = vmax.f32 %v1246_v29, %v4580_v40  ;;  %v864_v48 = vld [vmem:[#allocation2 + $0xce] sm:$0xff] }
 0x11e   : > { %842 = vst.msk [vmem:[#allocation2 + $0x1b0] sm:$0xff] %vm737_vm2, %v4602_v42  ;;  %v709_v24 = vmul.f32 0.16666667, %v677_v53  ;;  %v1021_v43 = vmax.f32 %v941_v30, %v981_v4  ;;  %v1022_v17 = vmax.f32 %v942_v57, %v982_v19  ;;  %v538_v14 = vadd.f32 %v3860_v6, %v4405_v37  ;;  %v903_v63 = vld [vmem:[#allocation2 + $0xc7] sm:$0xff] }
 0x11f   : > { %v1339_v32 = vpack.c.bf16 %v1308_v58, %v1307_v36  ;;  %1782 = vst.msk [vmem:[#allocation2 + $0x48] sm:$0xff] %vm737_vm2, %v1307_v36  ;;  %1783 = vst.msk [vmem:[#allocation2 + $0x50] sm:$0xff] %vm737_vm2, %v1308_v58  ;;  %v530_v33 = vadd.f32 %v4405_v37, %v529_v55  ;;  %v541_v29 = vadd.f32 %v3861_v44, %v4405_v37  ;;  %v4620_v9 = vpop.f32.mrb[28].mxu0  ;;  %v1141_v6 = vld [vmem:[#allocation2 + $0xaa] sm:$0xff]  ;;  %v1142_v55 = vld [vmem:[#allocation2 + $0xb2] sm:$0xff] }
 0x120   : > { %v730_v53 = vpack.c.bf16 %v709_v24, %v4595_v21  ;;  %840 = vst.msk [vmem:[#allocation2 + $0x190] sm:$0xff] %vm737_vm2, %v709_v24  ;;  %v1101_v30 = vmax.f32 %v1021_v43, %v1061_v47  ;;  %v1102_v57 = vmax.f32 %v1022_v17, %v1062_v2  ;;  %v728_v36 = vpack.c.bf16 %v4566_v1, %v4555_v52  ;;  %v4626_v58 = vpop.f32.mrb[29].mxu0 }
 0x121   : > { %3868 = vmatprep.mubr.msk.bf16.mxu0 %vm737_vm2, %v1339_v32  ;;  %v586_v44 = vadd.f32 3.0, %v538_v14  ;;  %v584_v4 = vadd.f32 3.0, %v530_v33  ;;  %v587_v19 = vadd.f32 3.0, %v541_v29  ;;  %v533_v28 = vadd.f32 %v4405_v37, %v532_v34  ;;  %v4630_v16 = vpop.f32.mrb[30].mxu0  ;;  %v983_v34 = vld [vmem:[#allocation2 + $0xc8] sm:$0xff] }
 0x122   : > { %v4632_v21 = vmax.f32 %v1101_v30, %v1141_v6  ;;  %v4634_v47 = vmax.f32 %v1102_v57, %v1142_v55  ;;  %3918 = vmatprep.mubr.msk.bf16.mxu1 %vm737_vm2, %v728_v36  ;;  %v943_v52 = vmax.f32 %v863_v50, %v903_v63  ;;  %v944_v1 = vmax.f32 %v864_v48, %v904_v54  ;;  %v4637_v24 = vpop.f32.mrb[31].mxu0  ;;  %v984_v30 = vld [vmem:[#allocation2 + $0xd0] sm:$0xff] }
 0x123   : > { %v618_v43 = vmax.f32 %v586_v44, 0.0  ;;  %v616_v17 = vmax.f32 %v584_v4, 0.0  ;;  %v619_v2 = vmax.f32 %v587_v19, 0.0  ;;  %v585_v32 = vadd.f32 3.0, %v533_v28  ;;  %v1063_v44 = vld [vmem:[#allocation2 + $0xc9] sm:$0xff]  ;;  %v1064_v4 = vld [vmem:[#allocation2 + $0xd1] sm:$0xff] }
 0x124   : > { %v5678_v7 = vpack.c.bf16 %v4564_v59, %v4550_v41  ;;  %v1309_v57 = vmax.f32 %v1277_v11, %v4632_v21  ;;  %v1310_v6 = vmax.f32 %v1278_v18, %v4634_v47  ;;  %v1023_v54 = vmax.f32 %v943_v52, %v983_v34  ;;  %v865_v11 = vld [vmem:[#allocation2 + $0xe6] sm:$0xff]  ;;  %v866_v18 = vld [vmem:[#allocation2 + $0xee] sm:$0xff] }
 0x125   : > { %v1024_v63 = vmax.f32 %v944_v1, %v984_v30  ;;  %v650_v50 = vmin.f32 %v618_v43, 6.0  ;;  %v648_v48 = vmin.f32 %v616_v17, 6.0  ;;  %v651_v36 = vmin.f32 %v619_v2, 6.0  ;;  %v905_v19 = vld [vmem:[#allocation2 + $0xe7] sm:$0xff]  ;;  %v1144_v2 = vld [vmem:[#allocation2 + $0xd2] sm:$0xff] }
 0x126   : > { %3919 = vmatmul.mubr.msk.bf16.vlgmr.msra.gmra.mrb[0].mxu1 %vm737_vm2, %v5678_v7  ;;  %v617_v55 = vmax.f32 %v585_v32, 0.0  ;;  %v1340_v7 = vpack.c.bf16 %v1310_v6, %v1309_v57  ;;  %1784 = vst.msk [vmem:[#allocation2 + $0x68] sm:$0xff] %vm737_vm2, %v1309_v57  ;;  %1785 = vst.msk [vmem:[#allocation2 + $0x70] sm:$0xff] %vm737_vm2, %v1310_v6  ;;  %v1103_v41 = vmax.f32 %v1023_v54, %v1063_v44  ;;  %v1143_v17 = vld [vmem:[#allocation2 + $0xca] sm:$0xff] }
 0x127   : > { %3935 = vmatpush3.bf16.msra.mxu1 %v4453_v56  ;;  %3922 = vmatprep.mubr.msk.bf16.mxu1 %vm737_vm2, %v730_v53  ;;  %v1104_v56 = vmax.f32 %v1024_v63, %v1064_v4  ;;  %v1215_v59 = vmax.f32 %v4553_v49, %v4568_v20  ;;  %v682_v52 = vmul.f32 %v650_v50, %v538_v14 }
 0x128   : > { %4105 = vmatprep.subr.msk.bf16.mxu1 %vm1405_vm3, %v4441_v46  ;;  %v680_v1 = vmul.f32 %v648_v48, %v530_v33  ;;  %v683_v43 = vmul.f32 %v651_v36, %v541_v29  ;;  %v649_v53 = vmin.f32 %v617_v55, 6.0  ;;  %v906_v46 = vld [vmem:[#allocation2 + $0xef] sm:$0xff]  ;;  %3869 = vmatmul.mubr.msk.bf16.vlgmr.msra.gmra.mrb[32].mxu0 %vm737_vm2, %v1340_v7  ;;  %v4654_v32 = vmax.f32 %v1103_v41, %v1143_v17  ;;  %v907_v17 = vld [vmem:[#allocation2 + $0x107] sm:$0xff] }
 0x129   : > { %v4656_v34 = vmax.f32 %v1104_v56, %v1144_v2  ;;  %v1216_v30 = vmax.f32 %v4560_v12, %v4570_v38  ;;  %v1247_v49 = vmax.f32 %v1215_v59, %v4578_v0  ;;  %v4661_v57 = vmul.f32 0.16666667, %v682_v52  ;;  %3901 = vmatpush3.bf16.msra.mxu0 %v4391_v22  ;;  %v985_v48 = vld [vmem:[#allocation2 + $0xe8] sm:$0xff]  ;;  %v986_v22 = vld [vmem:[#allocation2 + $0xf0] sm:$0xff] }
 0x12a   : > { %v712_v14 = vmul.f32 0.16666667, %v680_v1  ;;  %v4663_v33 = vmul.f32 0.16666667, %v683_v43  ;;  %v681_v29 = vmul.f32 %v649_v53, %v533_v28  ;;  %v945_v63 = vmax.f32 %v865_v11, %v905_v19  ;;  %v1065_v11 = vld [vmem:[#allocation2 + $0xe9] sm:$0xff]  ;;  %v1146_v2 = vld [vmem:[#allocation2 + $0xf2] sm:$0xff] }
 0x12b   : > { %v1248_v6 = vmax.f32 %v1216_v30, %v4580_v40  ;;  %v1279_v54 = vmax.f32 %v1247_v49, %v4632_v21  ;;  %v946_v50 = vmax.f32 %v866_v18, %v906_v46  ;;  %845 = vst.msk [vmem:[#allocation2 + $0x1e8] sm:$0xff] %vm737_vm2, %v4661_v57  ;;  %v1217_v36 = vmax.f32 %v4568_v20, %v4578_v0  ;;  %v1066_v18 = vld [vmem:[#allocation2 + $0xf1] sm:$0xff]  ;;  %v867_v53 = vld [vmem:[#allocation2 + $0x106] sm:$0xff] }
 0x12c   : > { %843 = vst.msk [vmem:[#allocation2 + $0x1c8] sm:$0xff] %vm737_vm2, %v712_v14  ;;  %v733_v12 = vpack.c.bf16 %v4663_v33, %v4661_v57  ;;  %846 = vst.msk [vmem:[#allocation2 + $0x1f0] sm:$0xff] %vm737_vm2, %v4663_v33  ;;  %v713_v28 = vmul.f32 0.16666667, %v681_v29  ;;  %v1218_v55 = vmax.f32 %v4570_v38, %v4580_v40  ;;  %v5679_v44 = vpack.c.bf16 %v4602_v42, %v4590_v27  ;;  %v1145_v1 = vld [vmem:[#allocation2 + $0xea] sm:$0xff] }
 0x12d   : > { %v1280_v4 = vmax.f32 %v1248_v6, %v4634_v47  ;;  %v1311_v7 = vmax.f32 %v1279_v54, %v4654_v32  ;;  %v1025_v41 = vmax.f32 %v945_v63, %v985_v48  ;;  %v1026_v56 = vmax.f32 %v946_v50, %v986_v22  ;;  %v868_v57 = vld [vmem:[#allocation2 + $0x10e] sm:$0xff] }
 0x12e   : > { %3923 = vmatmul.mubr.msk.bf16.gmra.mrb[4].mxu1 %vm737_vm2, %v5679_v44  ;;  %v732_v59 = vpack.c.bf16 %v713_v28, %v712_v14  ;;  %844 = vst.msk [vmem:[#allocation2 + $0x1d0] sm:$0xff] %vm737_vm2, %v713_v28  ;;  %v1249_v20 = vmax.f32 %v1217_v36, %v4632_v21  ;;  %v1250_v38 = vmax.f32 %v1218_v55, %v4634_v47  ;;  %v908_v14 = vld [vmem:[#allocation2 + $0x10f] sm:$0xff] }
 0x12f   : > { %v554_v42 = vadd.f32 %v4620_v9, %v4405_v37  ;;  %v1312_v27 = vmax.f32 %v1280_v4, %v4656_v34  ;;  %1786 = vst.msk [vmem:[#allocation2 + $0x88] sm:$0xff] %vm737_vm2, %v1311_v7  ;;  %v1105_v19 = vmax.f32 %v1025_v41, %v1065_v11  ;;  %v1106_v52 = vmax.f32 %v1026_v56, %v1066_v18  ;;  %v987_v55 = vld [vmem:[#allocation2 + $0x108] sm:$0xff]  ;;  %v988_v41 = vld [vmem:[#allocation2 + $0x110] sm:$0xff] }
 0x130   : > { %v546_v43 = vadd.f32 %v4405_v37, %v4626_v58  ;;  %v1281_v46 = vmax.f32 %v1249_v20, %v4654_v32  ;;  %v1282_v30 = vmax.f32 %v1250_v38, %v4656_v34  ;;  %v557_v9 = vadd.f32 %v4630_v16, %v4405_v37  ;;  %3926 = vmatprep.mubr.msk.bf16.mxu1 %vm737_vm2, %v732_v59  ;;  %v1067_v11 = vld [vmem:[#allocation2 + $0x109] sm:$0xff] }
 0x131   : > { %v590_v49 = vadd.f32 3.0, %v554_v42  ;;  %v1341_v33 = vpack.c.bf16 %v1312_v27, %v1311_v7  ;;  %1787 = vst.msk [vmem:[#allocation2 + $0x90] sm:$0xff] %vm737_vm2, %v1312_v27  ;;  %v4700_v29 = vmax.f32 %v1105_v19, %v1145_v1  ;;  %v4702_v58 = vmax.f32 %v1106_v52, %v1146_v2  ;;  %v1068_v19 = vld [vmem:[#allocation2 + $0x111] sm:$0xff]  ;;  %v869_v1 = vld [vmem:[#allocation2 + $0x126] sm:$0xff] }
 0x132   : > { %v588_v6 = vadd.f32 3.0, %v546_v43  ;;  %v591_v63 = vadd.f32 3.0, %v557_v9  ;;  %v549_v50 = vadd.f32 %v4405_v37, %v4637_v24  ;;  %v947_v28 = vmax.f32 %v867_v53, %v907_v17  ;;  %v909_v53 = vld [vmem:[#allocation2 + $0x127] sm:$0xff] }
 0x133   : > { %v622_v54 = vmax.f32 %v590_v49, 0.0  ;;  %3872 = vmatprep.mubr.msk.bf16.mxu0 %vm737_vm2, %v1341_v33  ;;  %v1313_v16 = vmax.f32 %v1281_v46, %v4700_v29  ;;  %v1314_v48 = vmax.f32 %v1282_v30, %v4702_v58  ;;  %v948_v36 = vmax.f32 %v868_v57, %v908_v14  ;;  %v1147_v2 = vld [vmem:[#allocation2 + $0x10a] sm:$0xff]  ;;  %v1148_v33 = vld [vmem:[#allocation2 + $0x112] sm:$0xff] }
 0x134   : > { %v620_v22 = vmax.f32 %v588_v6, 0.0  ;;  %v623_v4 = vmax.f32 %v591_v63, 0.0  ;;  %v589_v7 = vadd.f32 3.0, %v549_v50  ;;  %v1027_v56 = vmax.f32 %v947_v28, %v987_v55  ;;  %v870_v49 = vld [vmem:[#allocation2 + $0x12e] sm:$0xff] }
 0x135   : > { %v654_v44 = vmin.f32 %v622_v54, 6.0  ;;  %v1342_v59 = vpack.c.bf16 %v1314_v48, %v1313_v16  ;;  %1788 = vst.msk [vmem:[#allocation2 + $0xa8] sm:$0xff] %vm737_vm2, %v1313_v16  ;;  %1789 = vst.msk [vmem:[#allocation2 + $0xb0] sm:$0xff] %vm737_vm2, %v1314_v48  ;;  %v1028_v24 = vmax.f32 %v948_v36, %v988_v41  ;;  %v1219_v18 = vmax.f32 %v4578_v0, %v4632_v21  ;;  %v910_v57 = vld [vmem:[#allocation2 + $0x12f] sm:$0xff]  ;;  %v871_v36 = vld [vmem:[#allocation2 + $0x146] sm:$0xff] }
 0x136   : > { %3927 = vmatmul.mubr.msk.bf16.gmra.mrb[8].mxu1 %vm737_vm2, %v733_v12  ;;  %v652_v37 = vmin.f32 %v620_v22, 6.0  ;;  %v655_v38 = vmin.f32 %v623_v4, 6.0  ;;  %v621_v27 = vmax.f32 %v589_v7, 0.0  ;;  %v1107_v52 = vmax.f32 %v1027_v56, %v1067_v11  ;;  %v911_v55 = vld [vmem:[#allocation2 + $0x147] sm:$0xff]  ;;  %v990_v7 = vld [vmem:[#allocation2 + $0x130] sm:$0xff] }
 0x137   : > { %v686_v20 = vmul.f32 %v654_v44, %v554_v42  ;;  %3873 = vmatmul.mubr.msk.bf16.gmra.mrb[36].mxu0 %vm737_vm2, %v1342_v59  ;;  %v1108_v17 = vmax.f32 %v1028_v24, %v1068_v19  ;;  %v1220_v46 = vmax.f32 %v4580_v40, %v4634_v47  ;;  %v1251_v30 = vmax.f32 %v1219_v18, %v4654_v32  ;;  %v872_v59 = vld [vmem:[#allocation2 + $0x14e] sm:$0xff] }
 0x138   : > { %v684_v12 = vmul.f32 %v652_v37, %v546_v43  ;;  %v687_v42 = vmul.f32 %v655_v38, %v557_v9  ;;  %v653_v14 = vmin.f32 %v621_v27, 6.0  ;;  %v4720_v6 = vmax.f32 %v1107_v52, %v1147_v2  ;;  %v989_v9 = vld [vmem:[#allocation2 + $0x128] sm:$0xff] }
 0x139   : > { %v4718_v0 = vmul.f32 0.16666667, %v686_v20  ;;  %v4722_v63 = vmax.f32 %v1108_v17, %v1148_v33  ;;  %v1252_v43 = vmax.f32 %v1220_v46, %v4656_v34  ;;  %v1283_v28 = vmax.f32 %v1251_v30, %v4700_v29  ;;  %v1069_v20 = vld [vmem:[#allocation2 + $0x129] sm:$0xff] }
 0x13a   : > { %v716_v54 = vmul.f32 0.16666667, %v684_v12  ;;  %v4728_v40 = vmul.f32 0.16666667, %v687_v42  ;;  %v685_v16 = vmul.f32 %v653_v14, %v549_v50  ;;  %v949_v48 = vmax.f32 %v869_v1, %v909_v53  ;;  %v912_v50 = vld [vmem:[#allocation2 + $0x14f] sm:$0xff]  ;;  %v873_v52 = vld [vmem:[#allocation2 + $0x166] sm:$0xff] }
 0x13b   : > { %849 = vst.msk [vmem:[#allocation2 + $0x228] sm:$0xff] %vm737_vm2, %v4718_v0  ;;  %v950_v22 = vmax.f32 %v870_v49, %v910_v57  ;;  %v1284_v44 = vmax.f32 %v1252_v43, %v4702_v58  ;;  %v1315_v4 = vmax.f32 %v1283_v28, %v4720_v6  ;;  %v1221_v41 = vmax.f32 %v4632_v21, %v4654_v32  ;;  %v1070_v21 = vld [vmem:[#allocation2 + $0x131] sm:$0xff]  ;;  %v913_v1 = vld [vmem:[#allocation2 + $0x167] sm:$0xff] }
 0x13c   : > { %847 = vst.msk [vmem:[#allocation2 + $0x208] sm:$0xff] %vm737_vm2, %v716_v54  ;;  %v1222_v56 = vmax.f32 %v4634_v47, %v4656_v34  ;;  %v735_v37 = vpack.c.bf16 %v4728_v40, %v4718_v0  ;;  %850 = vst.msk [vmem:[#allocation2 + $0x230] sm:$0xff] %vm737_vm2, %v4728_v40  ;;  %v717_v24 = vmul.f32 0.16666667, %v685_v16  ;;  %v1029_v11 = vmax.f32 %v949_v48, %v989_v9  ;;  %v991_v46 = vld [vmem:[#allocation2 + $0x148] sm:$0xff]  ;;  %v1150_v42 = vld [vmem:[#allocation2 + $0x132] sm:$0xff] }
 0x13d   : > { %v1030_v18 = vmax.f32 %v950_v22, %v990_v7  ;;  %v1316_v38 = vmax.f32 %v1284_v44, %v4722_v63  ;;  %1790 = vst.msk [vmem:[#allocation2 + $0xc8] sm:$0xff] %vm737_vm2, %v1315_v4  ;;  %v1253_v27 = vmax.f32 %v1221_v41, %v4700_v29  ;;  %v951_v19 = vmax.f32 %v871_v36, %v911_v55  ;;  %v874_v30 = vld [vmem:[#allocation2 + $0x16e] sm:$0xff] }
 0x13e   : > { %v1254_v47 = vmax.f32 %v1222_v56, %v4702_v58  ;;  %v734_v53 = vpack.c.bf16 %v717_v24, %v716_v54  ;;  %848 = vst.msk [vmem:[#allocation2 + $0x210] sm:$0xff] %vm737_vm2, %v717_v24  ;;  %v1109_v12 = vmax.f32 %v1029_v11, %v1069_v20  ;;  %v952_v2 = vmax.f32 %v872_v59, %v912_v50  ;;  %v914_v49 = vld [vmem:[#allocation2 + $0x16f] sm:$0xff] }
 0x13f   : > { %v1110_v17 = vmax.f32 %v1030_v18, %v1070_v21  ;;  %v1343_v57 = vpack.c.bf16 %v1316_v38, %v1315_v4  ;;  %1791 = vst.msk [vmem:[#allocation2 + $0xd0] sm:$0xff] %vm737_vm2, %v1316_v38  ;;  %v1149_v0 = vld [vmem:[#allocation2 + $0x12a] sm:$0xff]  ;;  %v1285_v14 = vmax.f32 %v1253_v27, %v4720_v6  ;;  %v1031_v28 = vmax.f32 %v951_v19, %v991_v46  ;;  %v1152_v24 = vld [vmem:[#allocation2 + $0x152] sm:$0xff] }
 0x140   : > { %v1286_v33 = vmax.f32 %v1254_v47, %v4722_v63  ;;  %v992_v43 = vld [vmem:[#allocation2 + $0x150] sm:$0xff]  ;;  %v4749_v54 = vmax.f32 %v1109_v12, %v1149_v0  ;;  %v1223_v22 = vmax.f32 %v4654_v32, %v4700_v29  ;;  %3930 = vmatprep.mubr.msk.bf16.mxu1 %vm737_vm2, %v734_v53  ;;  %v1224_v44 = vmax.f32 %v4656_v34, %v4702_v58  ;;  %v993_v41 = vld [vmem:[#allocation2 + $0x168] sm:$0xff] }
 0x141   : > { %v4751_v40 = vmax.f32 %v1110_v17, %v1150_v42  ;;  %v1032_v16 = vmax.f32 %v952_v2, %v992_v43  ;;  %v1071_v48 = vld [vmem:[#allocation2 + $0x149] sm:$0xff]  ;;  %3876 = vmatprep.mubr.msk.bf16.mxu0 %vm737_vm2, %v1343_v57  ;;  %v1072_v9 = vld [vmem:[#allocation2 + $0x151] sm:$0xff]  ;;  %v953_v4 = vmax.f32 %v873_v52, %v913_v1  ;;  %v954_v7 = vmax.f32 %v874_v30, %v914_v49 }
 0x142   : > { %v1111_v36 = vmax.f32 %v1031_v28, %v1071_v48  ;;  %v1151_v55 = vld [vmem:[#allocation2 + $0x14a] sm:$0xff]  ;;  %v1317_v56 = vmax.f32 %v1285_v14, %v4749_v54  ;;  %v1255_v32 = vmax.f32 %v1223_v22, %v4720_v6  ;;  %3931 = vmatmul.mubr.msk.bf16.gmra.mrb[12].mxu1 %vm737_vm2, %v735_v37  ;;  %v1256_v38 = vmax.f32 %v1224_v44, %v4722_v63  ;;  %v1154_v57 = vld [vmem:[#allocation2 + $0x172] sm:$0xff] }
 0x143   : > { %v1318_v59 = vmax.f32 %v1286_v33, %v4751_v40  ;;  %v1112_v50 = vmax.f32 %v1032_v16, %v1072_v9  ;;  %v994_v11 = vld [vmem:[#allocation2 + $0x170] sm:$0xff]  ;;  %v875_v18 = vld [vmem:[#allocation2 + $0x186] sm:$0xff]  ;;  %v1033_v34 = vmax.f32 %v953_v4, %v993_v41  ;;  %v1225_v17 = vmax.f32 %v4700_v29, %v4720_v6 }
 0x144   : > { %v4763_v20 = vmax.f32 %v1111_v36, %v1151_v55  ;;  %v1034_v21 = vmax.f32 %v954_v7, %v994_v11  ;;  %v876_v27 = vld [vmem:[#allocation2 + $0x18e] sm:$0xff]  ;;  %1792 = vst.msk [vmem:[#allocation2 + $0xe8] sm:$0xff] %vm737_vm2, %v1317_v56  ;;  %v1287_v53 = vmax.f32 %v1255_v32, %v4749_v54  ;;  %v1288_v2 = vmax.f32 %v1256_v38, %v4751_v40  ;;  %v4779_v16 = vld [vmem:[#allocation2 + $0x46] sm:$0xff] }
 0x145   : > { %v915_v47 = vld [vmem:[#allocation2 + $0x187] sm:$0xff]  ;;  %v916_v19 = vld [vmem:[#allocation2 + $0x18f] sm:$0xff]  ;;  %v1344_v52 = vpack.c.bf16 %v1318_v59, %v1317_v56  ;;  %1793 = vst.msk [vmem:[#allocation2 + $0xf0] sm:$0xff] %vm737_vm2, %v1318_v59  ;;  %v4768_v1 = vmax.f32 %v1112_v50, %v1152_v24  ;;  %v1226_v0 = vmax.f32 %v4702_v58, %v4722_v63  ;;  %v1257_v33 = vmax.f32 %v1225_v17, %v4749_v54 }
 0x146   : > { %v1073_v37 = vld [vmem:[#allocation2 + $0x169] sm:$0xff]  ;;  %v1074_v12 = vld [vmem:[#allocation2 + $0x171] sm:$0xff]  ;;  %v1319_v14 = vmax.f32 %v1287_v53, %v4763_v20  ;;  %v955_v43 = vmax.f32 %v875_v18, %v915_v47  ;;  %v956_v28 = vmax.f32 %v876_v27, %v916_v19  ;;  %v1227_v59 = vmax.f32 %v4720_v6, %v4749_v54 }
 0x147   : > { %v1113_v46 = vmax.f32 %v1033_v34, %v1073_v37  ;;  %v1114_v30 = vmax.f32 %v1034_v21, %v1074_v12  ;;  %v1153_v49 = vld [vmem:[#allocation2 + $0x16a] sm:$0xff]  ;;  %3877 = vmatmul.mubr.msk.bf16.gmra.mrb[40].mxu0 %vm737_vm2, %v1344_v52  ;;  %v1320_v22 = vmax.f32 %v1288_v2, %v4768_v1  ;;  %v1258_v58 = vmax.f32 %v1226_v0, %v4751_v40 }
 0x148   : > { %v995_v42 = vld [vmem:[#allocation2 + $0x188] sm:$0xff]  ;;  %v996_v55 = vld [vmem:[#allocation2 + $0x190] sm:$0xff]  ;;  %1794 = vst.msk [vmem:[#allocation2 + $0x108] sm:$0xff] %vm737_vm2, %v1319_v14  ;;  %v1289_v7 = vmax.f32 %v1257_v33, %v4763_v20  ;;  %v1228_v38 = vmax.f32 %v4722_v63, %v4751_v40  ;;  %v1259_v53 = vmax.f32 %v1227_v59, %v4763_v20 }
 0x149   : > { %v4781_v29 = vld [vmem:[#allocation2 + $0x4e] sm:$0xff]  ;;  %v4784_v9 = vmax.f32 %v1113_v46, %v1153_v49  ;;  %v4786_v36 = vmax.f32 %v1114_v30, %v1154_v57  ;;  %v1035_v41 = vmax.f32 %v955_v43, %v995_v42  ;;  %v1036_v56 = vmax.f32 %v956_v28, %v996_v55  ;;  %v1820_v50 = vld [vmem:[#allocation2 + $0x66] sm:$0xff]  ;;  %1795 = vst.msk [vmem:[#allocation2 + $0x110] sm:$0xff] %vm737_vm2, %v1320_v22 }
 0x14a   : > { %v1858_v48 = vld [vmem:[#allocation2 + $0x47] sm:$0xff]  ;;  %v1076_v4 = vld [vmem:[#allocation2 + $0x191] sm:$0xff]  ;;  %v1345_v11 = vpack.c.bf16 %v1320_v22, %v1319_v14  ;;  %v1290_v18 = vmax.f32 %v1258_v58, %v4768_v1  ;;  %v1260_v30 = vmax.f32 %v1228_v38, %v4768_v1 }
 0x14b   : > { %v1075_v44 = vld [vmem:[#allocation2 + $0x189] sm:$0xff]  ;;  %v1898_v47 = vmax.f32 %v4779_v16, %v1858_v48  ;;  %v1321_v19 = vmax.f32 %v1289_v7, %v4784_v9  ;;  %v1116_v6 = vmax.f32 %v1036_v56, %v1076_v4  ;;  %v1156_v63 = vld [vmem:[#allocation2 + $0x192] sm:$0xff]  ;;  %v1291_v14 = vmax.f32 %v1259_v53, %v4784_v9 }
 0x14c   : > { %v1859_v24 = vld [vmem:[#allocation2 + $0x4f] sm:$0xff]  ;;  %v1860_v32 = vld [vmem:[#allocation2 + $0x67] sm:$0xff]  ;;  %v1115_v52 = vmax.f32 %v1035_v41, %v1075_v44  ;;  %3880 = vmatprep.mubr.msk.bf16.mxu0 %vm737_vm2, %v1345_v11  ;;  %v1322_v2 = vmax.f32 %v1290_v18, %v4786_v36  ;;  %v1292_v22 = vmax.f32 %v1260_v30, %v4786_v36 }
 0x14d   : > { %v1821_v34 = vld [vmem:[#allocation2 + $0x6e] sm:$0xff]  ;;  %v1822_v21 = vld [vmem:[#allocation2 + $0x86] sm:$0xff]  ;;  %v1899_v49 = vmax.f32 %v4781_v29, %v1859_v24  ;;  %v1900_v57 = vmax.f32 %v1820_v50, %v1860_v32  ;;  %1796 = vst.msk [vmem:[#allocation2 + $0x128] sm:$0xff] %vm737_vm2, %v1321_v19  ;;  %v4807_v42 = vmax.f32 %v1116_v6, %v1156_v63 }
 0x14e   : > { %v1861_v27 = vld [vmem:[#allocation2 + $0x6f] sm:$0xff]  ;;  %v1862_v12 = vld [vmem:[#allocation2 + $0x87] sm:$0xff]  ;;  %v1346_v48 = vpack.c.bf16 %v1322_v2, %v1321_v19  ;;  %1797 = vst.msk [vmem:[#allocation2 + $0x130] sm:$0xff] %vm737_vm2, %v1322_v2 }
 0x14f   : > { %v1823_v37 = vld [vmem:[#allocation2 + $0x8e] sm:$0xff]  ;;  %v1901_v33 = vmax.f32 %v1821_v34, %v1861_v27  ;;  %v877_v28 = vld [vmem:[#allocation2 + $0x1a6] sm:$0xff]  ;;  %v1902_v58 = vmax.f32 %v1822_v21, %v1862_v12  ;;  %v1324_v38 = vmax.f32 %v1292_v22, %v4807_v42 }
 0x150   : > { %v1863_v17 = vld [vmem:[#allocation2 + $0x8f] sm:$0xff]  ;;  %v917_v16 = vld [vmem:[#allocation2 + $0x1a7] sm:$0xff]  ;;  %3881 = vmatmul.mubr.msk.bf16.gmra.mrb[44].mxu0 %vm737_vm2, %v1346_v48 }
 0x151   : > { %v1155_v46 = vld [vmem:[#allocation2 + $0x18a] sm:$0xff]  ;;  %v1903_v29 = vmax.f32 %v1823_v37, %v1863_v17  ;;  %1799 = vst.msk [vmem:[#allocation2 + $0x150] sm:$0xff] %vm737_vm2, %v1324_v38  ;;  %v2101_v48 = vld [vmem:[#allocation2 + $0x72] sm:$0xff] }
 0x152   : > { %v4805_v0 = vmax.f32 %v1115_v52, %v1155_v46  ;;  %v1938_v43 = vld [vmem:[#allocation2 + $0x48] sm:$0xff]  ;;  %v1939_v55 = vld [vmem:[#allocation2 + $0x50] sm:$0xff]  ;;  %v957_v46 = vmax.f32 %v877_v28, %v917_v16 }
 0x153   : > { %v1940_v44 = vld [vmem:[#allocation2 + $0x68] sm:$0xff]  ;;  %v1941_v59 = vld [vmem:[#allocation2 + $0x70] sm:$0xff]  ;;  %v1978_v32 = vmax.f32 %v1898_v47, %v1938_v43  ;;  %v1979_v11 = vmax.f32 %v1899_v49, %v1939_v55 }
 0x154   : > { %v2018_v4 = vld [vmem:[#allocation2 + $0x49] sm:$0xff]  ;;  %v1323_v56 = vmax.f32 %v1291_v14, %v4805_v0  ;;  %v1980_v18 = vmax.f32 %v1900_v57, %v1940_v44  ;;  %v1981_v34 = vmax.f32 %v1901_v33, %v1941_v59  ;;  %v2019_v19 = vld [vmem:[#allocation2 + $0x51] sm:$0xff] }
 0x155   : > { %v878_v7 = vld [vmem:[#allocation2 + $0x1ae] sm:$0xff]  ;;  %v2058_v17 = vmax.f32 %v1978_v32, %v2018_v4  ;;  %v2059_v2 = vmax.f32 %v1979_v11, %v2019_v19 }
 0x156   : > { %v918_v41 = vld [vmem:[#allocation2 + $0x1af] sm:$0xff]  ;;  %1798 = vst.msk [vmem:[#allocation2 + $0x148] sm:$0xff] %vm737_vm2, %v1323_v56  ;;  %v1347_v63 = vpack.c.bf16 %v1324_v38, %v1323_v56  ;;  %v1864_v19 = vld [vmem:[#allocation2 + $0xa7] sm:$0xff] }
 0x157   : > { %v1942_v50 = vld [vmem:[#allocation2 + $0x88] sm:$0xff]  ;;  %v1943_v24 = vld [vmem:[#allocation2 + $0x90] sm:$0xff]  ;;  %v958_v4 = vmax.f32 %v878_v7, %v918_v41 }
 0x158   : > { %v1982_v21 = vmax.f32 %v1902_v58, %v1942_v50  ;;  %v1983_v27 = vmax.f32 %v1903_v29, %v1943_v24  ;;  %v2020_v52 = vld [vmem:[#allocation2 + $0x69] sm:$0xff]  ;;  %v2021_v53 = vld [vmem:[#allocation2 + $0x71] sm:$0xff]  ;;  %3884 = vmatprep.mubr.msk.bf16.mxu0 %vm737_vm2, %v1347_v63 }
 0x159   : > { %v2098_v6 = vld [vmem:[#allocation2 + $0x4a] sm:$0xff]  ;;  %v2060_v47 = vmax.f32 %v1980_v18, %v2020_v52  ;;  %v2061_v30 = vmax.f32 %v1981_v34, %v2021_v53  ;;  %v2099_v14 = vld [vmem:[#allocation2 + $0x52] sm:$0xff] }
 0x15a   : > { %v2022_v37 = vld [vmem:[#allocation2 + $0x89] sm:$0xff]  ;;  %v2023_v12 = vld [vmem:[#allocation2 + $0x91] sm:$0xff]  ;;  %v4817_v29 = vmax.f32 %v2058_v17, %v2098_v6  ;;  %v4819_v55 = vmax.f32 %v2059_v2, %v2099_v14 }
 0x15b   : > { %v2062_v49 = vmax.f32 %v1982_v21, %v2022_v37  ;;  %v2063_v57 = vmax.f32 %v1983_v27, %v2023_v12  ;;  %v2100_v33 = vld [vmem:[#allocation2 + $0x6a] sm:$0xff]  ;;  %v2103_v58 = vld [vmem:[#allocation2 + $0x92] sm:$0xff]  ;;  %v4824_v28 = vmax.f32 %v2061_v30, %v2101_v48  ;;  %v1229_v21 = vmax.f32 %v4749_v54, %v4763_v20 }
 0x15c   : > { %v997_v43 = vld [vmem:[#allocation2 + $0x1a8] sm:$0xff]  ;;  %v4821_v44 = vmax.f32 %v2060_v47, %v2100_v33  ;;  %v2176_v50 = vmax.f32 %v4411_v13, %v4817_v29  ;;  %v2177_v24 = vmax.f32 %v4415_v25, %v4819_v55  ;;  %v2206_v32 = vmax.f32 %v4436_v45, %v4817_v29  ;;  %v998_v41 = vld [vmem:[#allocation2 + $0x1b0] sm:$0xff] }
 0x15d   : > { %v2102_v22 = vld [vmem:[#allocation2 + $0x8a] sm:$0xff]  ;;  %v4828_v56 = vmax.f32 %v2063_v57, %v2103_v58  ;;  %v1037_v59 = vmax.f32 %v957_v46, %v997_v43  ;;  %v2207_v7 = vmax.f32 %v4448_v51, %v4819_v55  ;;  %v1038_v38 = vmax.f32 %v958_v4, %v998_v41  ;;  %v1158_v54 = vld [vmem:[#allocation2 + $0x1b2] sm:$0xff] }
 0x15e   : > { %v4826_v16 = vmax.f32 %v2062_v49, %v2102_v22  ;;  %v1077_v11 = vld [vmem:[#allocation2 + $0x1a9] sm:$0xff]  ;;  %v1230_v13 = vmax.f32 %v4751_v40, %v4768_v1  ;;  %v4843_v52 = vmax.f32 %v2176_v50, %v4821_v44  ;;  %v4846_v45 = vmax.f32 %v2177_v24, %v4824_v28  ;;  %v1078_v53 = vld [vmem:[#allocation2 + $0x1b1] sm:$0xff] }
 0x15f   : > { %v1824_v18 = vld [vmem:[#allocation2 + $0xa6] sm:$0xff]  ;;  %v1117_v34 = vmax.f32 %v1037_v59, %v1077_v11  ;;  %v1825_v27 = vld [vmem:[#allocation2 + $0xae] sm:$0xff]  ;;  %v2238_v51 = vmax.f32 %v2206_v32, %v4821_v44  ;;  %v2239_v6 = vmax.f32 %v2207_v7, %v4824_v28  ;;  %v1118_v12 = vmax.f32 %v1038_v38, %v1078_v53 }
 0x160   : > { %v1865_v25 = vld [vmem:[#allocation2 + $0xaf] sm:$0xff]  ;;  %v1261_v40 = vmax.f32 %v1229_v21, %v4784_v9  ;;  %v1262_v2 = vmax.f32 %v1230_v13, %v4786_v36  ;;  %v879_v47 = vld [vmem:[#allocation2 + $0x1c6] sm:$0xff]  ;;  %v1904_v30 = vmax.f32 %v1824_v18, %v1864_v19  ;;  %v2240_v59 = vmax.f32 %v4843_v52, %v4826_v16 }
 0x161   : > { %v1157_v37 = vld [vmem:[#allocation2 + $0x1aa] sm:$0xff]  ;;  %v2270_v46 = vmax.f32 %v2238_v51, %v4826_v16  ;;  %v2271_v63 = vmax.f32 %v2239_v6, %v4828_v56  ;;  %v1905_v49 = vmax.f32 %v1825_v27, %v1865_v25  ;;  %v4856_v43 = vmax.f32 %v1118_v12, %v1158_v54 }
 0x162   : > { %v4850_v17 = vmax.f32 %v1117_v34, %v1157_v37  ;;  %v880_v57 = vld [vmem:[#allocation2 + $0x1ce] sm:$0xff]  ;;  %v1293_v48 = vmax.f32 %v1261_v40, %v4805_v0  ;;  %v1294_v22 = vmax.f32 %v1262_v2, %v4807_v42  ;;  %v2241_v7 = vmax.f32 %v4846_v45, %v4828_v56  ;;  %v1826_v41 = vld [vmem:[#allocation2 + $0xc6] sm:$0xff] }
 0x163   : > { %v919_v14 = vld [vmem:[#allocation2 + $0x1c7] sm:$0xff]  ;;  %v920_v33 = vld [vmem:[#allocation2 + $0x1cf] sm:$0xff]  ;;  %v2302_v50 = vpack.c.bf16 %v2271_v63, %v2270_v46  ;;  %2564 = vst.msk [vmem:[#allocation2 + $0x48] sm:$0xff] %vm737_vm2, %v2270_v46  ;;  %2565 = vst.msk [vmem:[#allocation2 + $0x50] sm:$0xff] %vm737_vm2, %v2271_v63  ;;  %v1231_v6 = vmax.f32 %v4763_v20, %v4784_v9  ;;  %v1232_v45 = vmax.f32 %v4768_v1, %v4786_v36 }
 0x164   : > { %v1944_v58 = vld [vmem:[#allocation2 + $0xa8] sm:$0xff]  ;;  %v1945_v4 = vld [vmem:[#allocation2 + $0xb0] sm:$0xff]  ;;  %v1325_v18 = vmax.f32 %v1293_v48, %v4850_v17  ;;  %v1326_v38 = vmax.f32 %v1294_v22, %v4856_v43  ;;  %v959_v13 = vmax.f32 %v879_v47, %v919_v14  ;;  %v960_v27 = vmax.f32 %v880_v57, %v920_v33 }
 0x165   : > { %v1984_v24 = vmax.f32 %v1904_v30, %v1944_v58  ;;  %v1985_v32 = vmax.f32 %v1905_v49, %v1945_v4  ;;  %v1866_v11 = vld [vmem:[#allocation2 + $0xc7] sm:$0xff]  ;;  %v2025_v21 = vld [vmem:[#allocation2 + $0xb1] sm:$0xff]  ;;  %3936 = vmatprep.mubr.msk.bf16.mxu1 %vm737_vm2, %v2302_v50  ;;  %v1263_v1 = vmax.f32 %v1231_v6, %v4805_v0  ;;  %v1264_v57 = vmax.f32 %v1232_v45, %v4807_v42 }
 0x166   : > { %v2024_v34 = vld [vmem:[#allocation2 + $0xa9] sm:$0xff]  ;;  %v1348_v12 = vpack.c.bf16 %v1326_v38, %v1325_v18  ;;  %1800 = vst.msk [vmem:[#allocation2 + $0x168] sm:$0xff] %vm737_vm2, %v1325_v18  ;;  %1801 = vst.msk [vmem:[#allocation2 + $0x170] sm:$0xff] %vm737_vm2, %v1326_v38  ;;  %v2105_v40 = vld [vmem:[#allocation2 + $0xb2] sm:$0xff]  ;;  %v1906_v46 = vmax.f32 %v1826_v41, %v1866_v11  ;;  %v2178_v45 = vmax.f32 %v4817_v29, %v4821_v44 }
 0x167   : > { %v999_v19 = vld [vmem:[#allocation2 + $0x1c8] sm:$0xff]  ;;  %v2064_v25 = vmax.f32 %v1984_v24, %v2024_v34  ;;  %v2065_v52 = vmax.f32 %v1985_v32, %v2025_v21  ;;  %v1000_v51 = vld [vmem:[#allocation2 + $0x1d0] sm:$0xff]  ;;  %v1295_v18 = vmax.f32 %v1263_v1, %v4850_v17  ;;  %v1296_v38 = vmax.f32 %v1264_v57, %v4856_v43 }
 0x168   : > { %v1827_v53 = vld [vmem:[#allocation2 + $0xce] sm:$0xff]  ;;  %v1039_v2 = vmax.f32 %v959_v13, %v999_v19  ;;  %v1040_v47 = vmax.f32 %v960_v27, %v1000_v51  ;;  %3885 = vmatmul.mubr.msk.bf16.gmra.mrb[48].mxu0 %vm737_vm2, %v1348_v12  ;;  %v881_v50 = vld [vmem:[#allocation2 + $0x1e6] sm:$0xff] }
 0x169   : > { %v1867_v37 = vld [vmem:[#allocation2 + $0xcf] sm:$0xff]  ;;  %v4877_v30 = vmax.f32 %v2065_v52, %v2105_v40  ;;  %v921_v24 = vld [vmem:[#allocation2 + $0x1e7] sm:$0xff] }
 0x16a   : > { %v2104_v54 = vld [vmem:[#allocation2 + $0xaa] sm:$0xff]  ;;  %v1907_v58 = vmax.f32 %v1827_v53, %v1867_v37  ;;  %v1160_v11 = vld [vmem:[#allocation2 + $0x1d2] sm:$0xff]  ;;  %v2179_v53 = vmax.f32 %v4819_v55, %v4824_v28  ;;  %v961_v37 = vmax.f32 %v881_v50, %v921_v24  ;;  %v1233_v50 = vmax.f32 %v4784_v9, %v4805_v0 }
 0x16b   : > { %v4875_v63 = vmax.f32 %v2064_v25, %v2104_v54  ;;  %v1079_v20 = vld [vmem:[#allocation2 + $0x1c9] sm:$0xff]  ;;  %v1080_v49 = vld [vmem:[#allocation2 + $0x1d1] sm:$0xff]  ;;  %v2273_v41 = vmax.f32 %v2241_v7, %v4877_v30  ;;  %v1234_v24 = vmax.f32 %v4786_v36, %v4807_v42 }
 0x16c   : > { %v1946_v14 = vld [vmem:[#allocation2 + $0xc8] sm:$0xff]  ;;  %v1119_v33 = vmax.f32 %v1039_v2, %v1079_v20  ;;  %v1120_v48 = vmax.f32 %v1040_v47, %v1080_v49  ;;  %v1947_v34 = vld [vmem:[#allocation2 + $0xd0] sm:$0xff]  ;;  %v2210_v49 = vmax.f32 %v2178_v45, %v4826_v16  ;;  %v2211_v29 = vmax.f32 %v2179_v53, %v4828_v56 }
 0x16d   : > { %v1159_v22 = vld [vmem:[#allocation2 + $0x1ca] sm:$0xff]  ;;  %v1986_v4 = vmax.f32 %v1906_v46, %v1946_v14  ;;  %v2272_v32 = vmax.f32 %v2240_v59, %v4875_v63  ;;  %v1987_v19 = vmax.f32 %v1907_v58, %v1947_v34  ;;  %2567 = vst.msk [vmem:[#allocation2 + $0x70] sm:$0xff] %vm737_vm2, %v2273_v41  ;;  %v2107_v2 = vld [vmem:[#allocation2 + $0xd2] sm:$0xff]  ;;  %v1265_v34 = vmax.f32 %v1233_v50, %v4850_v17 }
 0x16e   : > { %v2026_v21 = vld [vmem:[#allocation2 + $0xc9] sm:$0xff]  ;;  %v4886_v13 = vmax.f32 %v1119_v33, %v1159_v22  ;;  %v4888_v27 = vmax.f32 %v1120_v48, %v1160_v11  ;;  %v2027_v59 = vld [vmem:[#allocation2 + $0xd1] sm:$0xff] }
 0x16f   : > { %v2066_v25 = vmax.f32 %v1986_v4, %v2026_v21  ;;  %v882_v52 = vld [vmem:[#allocation2 + $0x1ee] sm:$0xff]  ;;  %v2303_v6 = vpack.c.bf16 %v2273_v41, %v2272_v32  ;;  %2566 = vst.msk [vmem:[#allocation2 + $0x68] sm:$0xff] %vm737_vm2, %v2272_v32  ;;  %v2067_v40 = vmax.f32 %v1987_v19, %v2027_v59  ;;  %v1828_v20 = vld [vmem:[#allocation2 + $0xe6] sm:$0xff]  ;;  %v2242_v32 = vmax.f32 %v2210_v49, %v4875_v63 }
 0x170   : > { %v922_v51 = vld [vmem:[#allocation2 + $0x1ef] sm:$0xff]  ;;  %v1327_v12 = vmax.f32 %v1295_v18, %v4886_v13  ;;  %v1328_v54 = vmax.f32 %v1296_v38, %v4888_v27  ;;  %v1868_v14 = vld [vmem:[#allocation2 + $0xe7] sm:$0xff]  ;;  %v2243_v41 = vmax.f32 %v2211_v29, %v4877_v30  ;;  %v1266_v21 = vmax.f32 %v1234_v24, %v4856_v43 }
 0x171   : > { %v2106_v7 = vld [vmem:[#allocation2 + $0xca] sm:$0xff]  ;;  %3937 = vmatmul.mubr.msk.bf16.vlgmr.msra.gmra.mrb[16].mxu1 %vm737_vm2, %v2303_v6  ;;  %v962_v1 = vmax.f32 %v882_v52, %v922_v51  ;;  %v4906_v22 = vmax.f32 %v2067_v40, %v2107_v2  ;;  %v1908_v19 = vmax.f32 %v1828_v20, %v1868_v14  ;;  %v1162_v53 = vld [vmem:[#allocation2 + $0x1f2] sm:$0xff] }
 0x172   : > { %v4898_v47 = vmax.f32 %v2066_v25, %v2106_v7  ;;  %v1001_v46 = vld [vmem:[#allocation2 + $0x1e8] sm:$0xff]  ;;  %3969 = vmatpush3.bf16.msra.mxu1 %v4458_v61  ;;  %v1349_v48 = vpack.c.bf16 %v1328_v54, %v1327_v12  ;;  %1802 = vst.msk [vmem:[#allocation2 + $0x188] sm:$0xff] %vm737_vm2, %v1327_v12  ;;  %1803 = vst.msk [vmem:[#allocation2 + $0x190] sm:$0xff] %vm737_vm2, %v1328_v54  ;;  %v1002_v58 = vld [vmem:[#allocation2 + $0x1f0] sm:$0xff]  ;;  %v1298_v12 = vmax.f32 %v1266_v21, %v4888_v27 }
 0x173   : > { %v1041_v57 = vmax.f32 %v961_v37, %v1001_v46  ;;  %v1829_v55 = vld [vmem:[#allocation2 + $0xee] sm:$0xff]  ;;  %v1042_v61 = vmax.f32 %v962_v1, %v1002_v58  ;;  %v883_v9 = vld [vmem:[#allocation2 + $0x206] sm:$0xff]  ;;  %v2275_v36 = vmax.f32 %v2243_v41, %v4906_v22  ;;  %v1297_v37 = vmax.f32 %v1265_v34, %v4886_v13 }
 0x174   : > { %v1869_v33 = vld [vmem:[#allocation2 + $0xef] sm:$0xff]  ;;  %3888 = vmatprep.mubr.msk.bf16.mxu0 %vm737_vm2, %v1349_v48  ;;  %v2274_v52 = vmax.f32 %v2242_v32, %v4898_v47  ;;  %v923_v45 = vld [vmem:[#allocation2 + $0x207] sm:$0xff] }
 0x175   : > { %v1081_v4 = vld [vmem:[#allocation2 + $0x1e9] sm:$0xff]  ;;  %v1082_v18 = vld [vmem:[#allocation2 + $0x1f1] sm:$0xff]  ;;  %v1909_v25 = vmax.f32 %v1829_v55, %v1869_v33  ;;  %2569 = vst.msk [vmem:[#allocation2 + $0x90] sm:$0xff] %vm737_vm2, %v2275_v36  ;;  %v2181_v55 = vmax.f32 %v4824_v28, %v4828_v56 }
 0x176   : > { %v1121_v11 = vmax.f32 %v1041_v57, %v1081_v4  ;;  %v1161_v38 = vld [vmem:[#allocation2 + $0x1ea] sm:$0xff]  ;;  %v1122_v51 = vmax.f32 %v1042_v61, %v1082_v18  ;;  %v2304_v20 = vpack.c.bf16 %v2275_v36, %v2274_v52  ;;  %2568 = vst.msk [vmem:[#allocation2 + $0x88] sm:$0xff] %vm737_vm2, %v2274_v52  ;;  %v2180_v57 = vmax.f32 %v4821_v44, %v4826_v16  ;;  %v2109_v32 = vld [vmem:[#allocation2 + $0xf2] sm:$0xff] }
 0x177   : > { %v1948_v59 = vld [vmem:[#allocation2 + $0xe8] sm:$0xff]  ;;  %v1949_v7 = vld [vmem:[#allocation2 + $0xf0] sm:$0xff]  ;;  %v963_v4 = vmax.f32 %v883_v9, %v923_v45  ;;  %v2213_v61 = vmax.f32 %v2181_v55, %v4877_v30 }
 0x178   : > { %v4919_v6 = vmax.f32 %v1121_v11, %v1161_v38  ;;  %v1988_v54 = vmax.f32 %v1908_v19, %v1948_v59  ;;  %v1989_v40 = vmax.f32 %v1909_v25, %v1949_v7  ;;  %v884_v2 = vld [vmem:[#allocation2 + $0x20e] sm:$0xff]  ;;  %v4925_v49 = vmax.f32 %v1122_v51, %v1162_v53  ;;  %3940 = vmatprep.mubr.msk.bf16.mxu1 %vm737_vm2, %v2304_v20  ;;  %v1830_v11 = vld [vmem:[#allocation2 + $0x106] sm:$0xff] }
 0x179   : > { %v924_v46 = vld [vmem:[#allocation2 + $0x20f] sm:$0xff]  ;;  %v2212_v41 = vmax.f32 %v2180_v57, %v4875_v63  ;;  %v1870_v18 = vld [vmem:[#allocation2 + $0x107] sm:$0xff]  ;;  %v1235_v19 = vmax.f32 %v4805_v0, %v4850_v17  ;;  %v2245_v51 = vmax.f32 %v2213_v61, %v4906_v22 }
 0x17a   : > { %v2028_v29 = vld [vmem:[#allocation2 + $0xe9] sm:$0xff]  ;;  %v2029_v1 = vld [vmem:[#allocation2 + $0xf1] sm:$0xff]  ;;  %v1329_v14 = vmax.f32 %v1297_v37, %v4919_v6  ;;  %v1330_v24 = vmax.f32 %v1298_v12, %v4925_v49  ;;  %v964_v44 = vmax.f32 %v884_v2, %v924_v46  ;;  %v1236_v37 = vmax.f32 %v4807_v42, %v4856_v43 }
 0x17b   : > { %v2068_v33 = vmax.f32 %v1988_v54, %v2028_v29  ;;  %v2069_v48 = vmax.f32 %v1989_v40, %v2029_v1  ;;  %v2108_v58 = vld [vmem:[#allocation2 + $0xea] sm:$0xff]  ;;  %v2244_v36 = vmax.f32 %v2212_v41, %v4898_v47  ;;  %v1267_v12 = vmax.f32 %v1235_v19, %v4886_v13 }
 0x17c   : > { %v1003_v50 = vld [vmem:[#allocation2 + $0x208] sm:$0xff]  ;;  %1804 = vst.msk [vmem:[#allocation2 + $0x1a8] sm:$0xff] %vm737_vm2, %v1329_v14  ;;  %v1004_v34 = vld [vmem:[#allocation2 + $0x210] sm:$0xff]  ;;  %v1350_v52 = vpack.c.bf16 %v1330_v24, %v1329_v14  ;;  %1805 = vst.msk [vmem:[#allocation2 + $0x1b0] sm:$0xff] %vm737_vm2, %v1330_v24  ;;  %v1910_v54 = vmax.f32 %v1830_v11, %v1870_v18  ;;  %v1268_v42 = vmax.f32 %v1236_v37, %v4888_v27 }
 0x17d   : > { %v4937_v28 = vmax.f32 %v2068_v33, %v2108_v58  ;;  %v4939_v38 = vmax.f32 %v2069_v48, %v2109_v32  ;;  %v1043_v21 = vmax.f32 %v963_v4, %v1003_v50  ;;  %v1831_v25 = vld [vmem:[#allocation2 + $0x10e] sm:$0xff]  ;;  %v1044_v59 = vmax.f32 %v964_v44, %v1004_v34  ;;  %v885_v0 = vld [vmem:[#allocation2 + $0x226] sm:$0xff] }
 0x17e   : > { %v1871_v9 = vld [vmem:[#allocation2 + $0x10f] sm:$0xff]  ;;  %v925_v40 = vld [vmem:[#allocation2 + $0x227] sm:$0xff]  ;;  %3889 = vmatmul.mubr.msk.bf16.gmra.mrb[52].mxu0 %vm737_vm2, %v1350_v52  ;;  %v1299_v48 = vmax.f32 %v1267_v12, %v4919_v6  ;;  %v2182_v44 = vmax.f32 %v4826_v16, %v4875_v63  ;;  %v1300_v11 = vmax.f32 %v1268_v42, %v4925_v49  ;;  %v2183_v19 = vmax.f32 %v4828_v56, %v4877_v30 }
 0x17f   : > { %v1083_v7 = vld [vmem:[#allocation2 + $0x209] sm:$0xff]  ;;  %v1084_v45 = vld [vmem:[#allocation2 + $0x211] sm:$0xff]  ;;  %v2276_v2 = vmax.f32 %v2244_v36, %v4937_v28  ;;  %v2277_v46 = vmax.f32 %v2245_v51, %v4939_v38  ;;  %v1911_v1 = vmax.f32 %v1831_v25, %v1871_v9  ;;  %v965_v36 = vmax.f32 %v885_v0, %v925_v40 }
 0x180   : > { %v1123_v53 = vmax.f32 %v1043_v21, %v1083_v7  ;;  %v1124_v20 = vmax.f32 %v1044_v59, %v1084_v45  ;;  %v1163_v29 = vld [vmem:[#allocation2 + $0x20a] sm:$0xff]  ;;  %v1164_v14 = vld [vmem:[#allocation2 + $0x212] sm:$0xff]  ;;  %v2214_v52 = vmax.f32 %v2182_v44, %v4898_v47  ;;  %v2215_v37 = vmax.f32 %v2183_v19, %v4906_v22 }
 0x181   : > { %v1950_v57 = vld [vmem:[#allocation2 + $0x108] sm:$0xff]  ;;  %v1951_v58 = vld [vmem:[#allocation2 + $0x110] sm:$0xff]  ;;  %v2305_v24 = vpack.c.bf16 %v2277_v46, %v2276_v2  ;;  %2570 = vst.msk [vmem:[#allocation2 + $0xa8] sm:$0xff] %vm737_vm2, %v2276_v2  ;;  %2571 = vst.msk [vmem:[#allocation2 + $0xb0] sm:$0xff] %vm737_vm2, %v2277_v46  ;;  %v1238_v42 = vmax.f32 %v4856_v43, %v4888_v27 }
 0x182   : > { %v886_v55 = vld [vmem:[#allocation2 + $0x22e] sm:$0xff]  ;;  %v4952_v33 = vmax.f32 %v1123_v53, %v1163_v29  ;;  %v1990_v4 = vmax.f32 %v1910_v54, %v1950_v57  ;;  %v4958_v32 = vmax.f32 %v1124_v20, %v1164_v14  ;;  %v1991_v41 = vmax.f32 %v1911_v1, %v1951_v58  ;;  %v887_v59 = vld [vmem:[#allocation2 + $0x246] sm:$0xff] }
 0x183   : > { %v926_v50 = vld [vmem:[#allocation2 + $0x22f] sm:$0xff]  ;;  %3941 = vmatmul.mubr.msk.bf16.gmra.mrb[20].mxu1 %vm737_vm2, %v2305_v24  ;;  %v927_v7 = vld [vmem:[#allocation2 + $0x247] sm:$0xff]  ;;  %v1237_v54 = vmax.f32 %v4850_v17, %v4886_v13  ;;  %v2246_v0 = vmax.f32 %v2214_v52, %v4937_v28  ;;  %v2247_v57 = vmax.f32 %v2215_v37, %v4939_v38 }
 0x184   : > { %v2030_v61 = vld [vmem:[#allocation2 + $0x109] sm:$0xff]  ;;  %v1331_v18 = vmax.f32 %v1299_v48, %v4952_v33  ;;  %v2031_v34 = vld [vmem:[#allocation2 + $0x111] sm:$0xff]  ;;  %v966_v51 = vmax.f32 %v886_v55, %v926_v50  ;;  %v1332_v16 = vmax.f32 %v1300_v11, %v4958_v32 }
 0x185   : > { %v2070_v21 = vmax.f32 %v1990_v4, %v2030_v61  ;;  %v2071_v25 = vmax.f32 %v1991_v41, %v2031_v34  ;;  %v2110_v9 = vld [vmem:[#allocation2 + $0x10a] sm:$0xff]  ;;  %v2111_v45 = vld [vmem:[#allocation2 + $0x112] sm:$0xff]  ;;  %v1269_v17 = vmax.f32 %v1237_v54, %v4919_v6  ;;  %v967_v41 = vmax.f32 %v887_v59, %v927_v7 }
 0x186   : > { %1806 = vst.msk [vmem:[#allocation2 + $0x1c8] sm:$0xff] %vm737_vm2, %v1331_v18  ;;  %v1005_v56 = vld [vmem:[#allocation2 + $0x228] sm:$0xff]  ;;  %v1006_v12 = vld [vmem:[#allocation2 + $0x230] sm:$0xff]  ;;  %v1351_v1 = vpack.c.bf16 %v1332_v16, %v1331_v18  ;;  %1807 = vst.msk [vmem:[#allocation2 + $0x1d0] sm:$0xff] %vm737_vm2, %v1332_v16  ;;  %v1270_v34 = vmax.f32 %v1238_v42, %v4925_v49  ;;  %v1239_v59 = vmax.f32 %v4886_v13, %v4919_v6 }
 0x187   : > { %v4970_v53 = vmax.f32 %v2070_v21, %v2110_v9  ;;  %v4975_v2 = vmax.f32 %v2071_v25, %v2111_v45  ;;  %v1045_v40 = vmax.f32 %v965_v36, %v1005_v56  ;;  %v1046_v46 = vmax.f32 %v966_v51, %v1006_v12  ;;  %v888_v20 = vld [vmem:[#allocation2 + $0x24e] sm:$0xff]  ;;  %v1832_v19 = vld [vmem:[#allocation2 + $0x126] sm:$0xff] }
 0x188   : > { %v928_v29 = vld [vmem:[#allocation2 + $0x24f] sm:$0xff]  ;;  %3892 = vmatprep.mubr.msk.bf16.mxu0 %vm737_vm2, %v1351_v1  ;;  %v1301_v43 = vmax.f32 %v1269_v17, %v4952_v33  ;;  %v1872_v25 = vld [vmem:[#allocation2 + $0x127] sm:$0xff]  ;;  %v1302_v37 = vmax.f32 %v1270_v34, %v4958_v32  ;;  %v1240_v54 = vmax.f32 %v4888_v27, %v4925_v49 }
 0x189   : > { %v1085_v55 = vld [vmem:[#allocation2 + $0x229] sm:$0xff]  ;;  %v1086_v14 = vld [vmem:[#allocation2 + $0x231] sm:$0xff]  ;;  %v2278_v58 = vmax.f32 %v2246_v0, %v4970_v53  ;;  %v2279_v11 = vmax.f32 %v2247_v57, %v4975_v2  ;;  %v968_v21 = vmax.f32 %v888_v20, %v928_v29  ;;  %v1271_v20 = vmax.f32 %v1239_v59, %v4952_v33 }
 0x18a   : > { %v1007_v48 = vld [vmem:[#allocation2 + $0x248] sm:$0xff]  ;;  %v1125_v4 = vmax.f32 %v1045_v40, %v1085_v55  ;;  %v1126_v50 = vmax.f32 %v1046_v46, %v1086_v14  ;;  %v1008_v61 = vld [vmem:[#allocation2 + $0x250] sm:$0xff]  ;;  %v1912_v29 = vmax.f32 %v1832_v19, %v1872_v25  ;;  %v1272_v57 = vmax.f32 %v1240_v54, %v4958_v32 }
 0x18b   : > { %v1165_v24 = vld [vmem:[#allocation2 + $0x22a] sm:$0xff]  ;;  %v1166_v18 = vld [vmem:[#allocation2 + $0x232] sm:$0xff]  ;;  %2572 = vst.msk [vmem:[#allocation2 + $0xc8] sm:$0xff] %vm737_vm2, %v2278_v58  ;;  %v1047_v36 = vmax.f32 %v967_v41, %v1007_v48  ;;  %v2306_v45 = vpack.c.bf16 %v2279_v11, %v2278_v58  ;;  %2573 = vst.msk [vmem:[#allocation2 + $0xd0] sm:$0xff] %vm737_vm2, %v2279_v11  ;;  %v1048_v56 = vmax.f32 %v968_v21, %v1008_v61 }
 0x18c   : > { %v1087_v44 = vld [vmem:[#allocation2 + $0x249] sm:$0xff]  ;;  %v4989_v9 = vmax.f32 %v1125_v4, %v1165_v24  ;;  %v4991_v52 = vmax.f32 %v1126_v50, %v1166_v18  ;;  %v1088_v51 = vld [vmem:[#allocation2 + $0x251] sm:$0xff]  ;;  %v2184_v4 = vmax.f32 %v4875_v63, %v4898_v47  ;;  %v2185_v25 = vmax.f32 %v4877_v30, %v4906_v22 }
 0x18d   : > { %v1833_v7 = vld [vmem:[#allocation2 + $0x12e] sm:$0xff]  ;;  %v1127_v40 = vmax.f32 %v1047_v36, %v1087_v44  ;;  %3944 = vmatprep.mubr.msk.bf16.mxu1 %vm737_vm2, %v2306_v45  ;;  %v1128_v1 = vmax.f32 %v1048_v56, %v1088_v51  ;;  %v1834_v17 = vld [vmem:[#allocation2 + $0x146] sm:$0xff] }
 0x18e   : > { %v1873_v16 = vld [vmem:[#allocation2 + $0x12f] sm:$0xff]  ;;  %v1333_v0 = vmax.f32 %v1301_v43, %v4989_v9  ;;  %v1334_v13 = vmax.f32 %v1302_v37, %v4991_v52  ;;  %v1303_v48 = vmax.f32 %v1271_v20, %v4989_v9  ;;  %v1874_v24 = vld [vmem:[#allocation2 + $0x147] sm:$0xff]  ;;  %v1304_v11 = vmax.f32 %v1272_v57, %v4991_v52 }
 0x18f   : > { %v1167_v12 = vld [vmem:[#allocation2 + $0x24a] sm:$0xff]  ;;  %v1168_v46 = vld [vmem:[#allocation2 + $0x252] sm:$0xff]  ;;  %v1913_v55 = vmax.f32 %v1833_v7, %v1873_v16  ;;  %v2216_v63 = vmax.f32 %v2184_v4, %v4937_v28  ;;  %v1914_v45 = vmax.f32 %v1834_v17, %v1874_v24  ;;  %v2217_v30 = vmax.f32 %v2185_v25, %v4939_v38 }
 0x190   : > { %v1952_v14 = vld [vmem:[#allocation2 + $0x128] sm:$0xff]  ;;  %v1953_v42 = vld [vmem:[#allocation2 + $0x130] sm:$0xff]  ;;  %1808 = vst.msk [vmem:[#allocation2 + $0x1e8] sm:$0xff] %vm737_vm2, %v1333_v0  ;;  %v5005_v27 = vmax.f32 %v1127_v40, %v1167_v12  ;;  %v1352_v61 = vpack.c.bf16 %v1334_v13, %v1333_v0  ;;  %1809 = vst.msk [vmem:[#allocation2 + $0x1f0] sm:$0xff] %vm737_vm2, %v1334_v13  ;;  %v5011_v44 = vmax.f32 %v1128_v1, %v1168_v46 }
 0x191   : > { %v1992_v58 = vmax.f32 %v1912_v29, %v1952_v14  ;;  %v1835_v50 = vld [vmem:[#allocation2 + $0x14e] sm:$0xff]  ;;  %v1993_v18 = vmax.f32 %v1913_v55, %v1953_v42  ;;  %v889_v36 = vld [vmem:[#allocation2 + $0x266] sm:$0xff]  ;;  %v2248_v40 = vmax.f32 %v2216_v63, %v4970_v53  ;;  %v2186_v29 = vmax.f32 %v4898_v47, %v4937_v28 }
 0x192   : > { %v1875_v41 = vld [vmem:[#allocation2 + $0x14f] sm:$0xff]  ;;  %v1335_v43 = vmax.f32 %v1303_v48, %v5005_v27  ;;  %3893 = vmatmul.mubr.msk.bf16.gmra.mrb[56].mxu0 %vm737_vm2, %v1352_v61  ;;  %v1336_v59 = vmax.f32 %v1304_v11, %v5011_v44  ;;  %v929_v56 = vld [vmem:[#allocation2 + $0x267] sm:$0xff]  ;;  %v2249_v42 = vmax.f32 %v2217_v30, %v4975_v2  ;;  %v2187_v4 = vmax.f32 %v4906_v22, %v4939_v38 }
 0x193   : > { %v2032_v34 = vld [vmem:[#allocation2 + $0x129] sm:$0xff]  ;;  %v2033_v21 = vld [vmem:[#allocation2 + $0x131] sm:$0xff]  ;;  %v1915_v37 = vmax.f32 %v1835_v50, %v1875_v41  ;;  %v2218_v50 = vmax.f32 %v2186_v29, %v4970_v53  ;;  %v1241_v63 = vmax.f32 %v4919_v6, %v4952_v33  ;;  %v1242_v6 = vmax.f32 %v4925_v49, %v4958_v32 }
 0x194   : > { %v2072_v19 = vmax.f32 %v1992_v58, %v2032_v34  ;;  %v890_v51 = vld [vmem:[#allocation2 + $0x26e] sm:$0xff]  ;;  %v2073_v7 = vmax.f32 %v1993_v18, %v2033_v21  ;;  %1810 = vst.msk [vmem:[#allocation2 + $0x208] sm:$0xff] %vm737_vm2, %v1335_v43  ;;  %v1353_v13 = vpack.c.bf16 %v1336_v59, %v1335_v43  ;;  %1811 = vst.msk [vmem:[#allocation2 + $0x210] sm:$0xff] %vm737_vm2, %v1336_v59  ;;  %v1836_v59 = vld [vmem:[#allocation2 + $0x166] sm:$0xff] }
 0x195   : > { %v2112_v16 = vld [vmem:[#allocation2 + $0x12a] sm:$0xff]  ;;  %v2113_v54 = vld [vmem:[#allocation2 + $0x132] sm:$0xff]  ;;  %v969_v18 = vmax.f32 %v889_v36, %v929_v56  ;;  %v1273_v33 = vmax.f32 %v1241_v63, %v4989_v9 }
 0x196   : > { %v930_v12 = vld [vmem:[#allocation2 + $0x26f] sm:$0xff]  ;;  %v5021_v0 = vmax.f32 %v2072_v19, %v2112_v16  ;;  %v5028_v1 = vmax.f32 %v2073_v7, %v2113_v54  ;;  %3896 = vmatprep.mubr.msk.bf16.mxu0 %vm737_vm2, %v1353_v13  ;;  %v2219_v19 = vmax.f32 %v2187_v4, %v4975_v2  ;;  %v1876_v7 = vld [vmem:[#allocation2 + $0x167] sm:$0xff] }
 0x197   : > { %v1954_v46 = vld [vmem:[#allocation2 + $0x148] sm:$0xff]  ;;  %v1955_v20 = vld [vmem:[#allocation2 + $0x150] sm:$0xff]  ;;  %v970_v34 = vmax.f32 %v890_v51, %v930_v12  ;;  %v1916_v13 = vmax.f32 %v1836_v59, %v1876_v7 }
 0x198   : > { %v1994_v57 = vmax.f32 %v1914_v45, %v1954_v46  ;;  %v1995_v55 = vmax.f32 %v1915_v37, %v1955_v20  ;;  %v1009_v14 = vld [vmem:[#allocation2 + $0x268] sm:$0xff]  ;;  %v2280_v17 = vmax.f32 %v2248_v40, %v5021_v0  ;;  %v2035_v58 = vld [vmem:[#allocation2 + $0x151] sm:$0xff]  ;;  %v2281_v21 = vmax.f32 %v2249_v42, %v5028_v1 }
 0x199   : > { %v2034_v48 = vld [vmem:[#allocation2 + $0x149] sm:$0xff]  ;;  %v2115_v11 = vld [vmem:[#allocation2 + $0x152] sm:$0xff]  ;;  %v2250_v22 = vmax.f32 %v2218_v50, %v5021_v0  ;;  %v1049_v36 = vmax.f32 %v969_v18, %v1009_v14  ;;  %v2251_v54 = vmax.f32 %v2219_v19, %v5028_v1  ;;  %v1305_v14 = vmax.f32 %v1273_v33, %v5005_v27 }
 0x19a   : > { %v1010_v47 = vld [vmem:[#allocation2 + $0x270] sm:$0xff]  ;;  %v2074_v24 = vmax.f32 %v1994_v57, %v2034_v48  ;;  %v2075_v41 = vmax.f32 %v1995_v55, %v2035_v58  ;;  %2574 = vst.msk [vmem:[#allocation2 + $0xe8] sm:$0xff] %vm737_vm2, %v2280_v17  ;;  %v2307_v12 = vpack.c.bf16 %v2281_v21, %v2280_v17  ;;  %2575 = vst.msk [vmem:[#allocation2 + $0xf0] sm:$0xff] %vm737_vm2, %v2281_v21  ;;  %v1956_v17 = vld [vmem:[#allocation2 + $0x168] sm:$0xff] }
 0x19b   : > { %v2114_v61 = vld [vmem:[#allocation2 + $0x14a] sm:$0xff]  ;;  %v1050_v51 = vmax.f32 %v970_v34, %v1010_v47  ;;  %v1170_v40 = vld [vmem:[#allocation2 + $0x272] sm:$0xff]  ;;  %v1274_v55 = vmax.f32 %v1242_v6, %v4991_v52  ;;  %v1996_v4 = vmax.f32 %v1916_v13, %v1956_v17  ;;  %v2188_v50 = vmax.f32 %v4937_v28, %v4970_v53 }
 0x19c   : > { %v1089_v43 = vld [vmem:[#allocation2 + $0x269] sm:$0xff]  ;;  %v1090_v25 = vld [vmem:[#allocation2 + $0x271] sm:$0xff]  ;;  %v5042_v16 = vmax.f32 %v2074_v24, %v2114_v61  ;;  %v5044_v45 = vmax.f32 %v2075_v41, %v2115_v11  ;;  %3945 = vmatmul.mubr.msk.bf16.gmra.mrb[24].mxu1 %vm737_vm2, %v2307_v12  ;;  %v2189_v18 = vmax.f32 %v4939_v38, %v4975_v2 }
 0x19d   : > { %v1837_v37 = vld [vmem:[#allocation2 + $0x16e] sm:$0xff]  ;;  %v1129_v20 = vmax.f32 %v1049_v36, %v1089_v43  ;;  %v1130_v29 = vmax.f32 %v1050_v51, %v1090_v25  ;;  %v1838_v48 = vld [vmem:[#allocation2 + $0x186] sm:$0xff]  ;;  %v1306_v41 = vmax.f32 %v1274_v55, %v5011_v44  ;;  %v2220_v28 = vmax.f32 %v2188_v50, %v5021_v0 }
 0x19e   : > { %v1877_v56 = vld [vmem:[#allocation2 + $0x16f] sm:$0xff]  ;;  %v2282_v46 = vmax.f32 %v2250_v22, %v5042_v16  ;;  %v2283_v57 = vmax.f32 %v2251_v54, %v5044_v45  ;;  %v1878_v58 = vld [vmem:[#allocation2 + $0x187] sm:$0xff]  ;;  %v2221_v7 = vmax.f32 %v2189_v18, %v5028_v1 }
 0x19f   : > { %v1169_v30 = vld [vmem:[#allocation2 + $0x26a] sm:$0xff]  ;;  %v1917_v42 = vmax.f32 %v1837_v37, %v1877_v56  ;;  %v5059_v32 = vmax.f32 %v1130_v29, %v1170_v40  ;;  %v2117_v22 = vld [vmem:[#allocation2 + $0x172] sm:$0xff]  ;;  %v1918_v25 = vmax.f32 %v1838_v48, %v1878_v58  ;;  %v2252_v12 = vmax.f32 %v2220_v28, %v5042_v16 }
 0x1a0   : > { %2576 = vst.msk [vmem:[#allocation2 + $0x108] sm:$0xff] %vm737_vm2, %v2282_v46  ;;  %v5057_v49 = vmax.f32 %v1129_v20, %v1169_v30  ;;  %v1957_v9 = vld [vmem:[#allocation2 + $0x170] sm:$0xff]  ;;  %v2308_v52 = vpack.c.bf16 %v2283_v57, %v2282_v46  ;;  %2577 = vst.msk [vmem:[#allocation2 + $0x110] sm:$0xff] %vm737_vm2, %v2283_v57  ;;  %v1958_v51 = vld [vmem:[#allocation2 + $0x188] sm:$0xff]  ;;  %v2190_v30 = vmax.f32 %v4970_v53, %v5021_v0 }
 0x1a1   : > { %v1839_v47 = vld [vmem:[#allocation2 + $0x18e] sm:$0xff]  ;;  %v1997_v61 = vmax.f32 %v1917_v42, %v1957_v9  ;;  %v1338_v63 = vmax.f32 %v1306_v41, %v5059_v32  ;;  %v1840_v38 = vld [vmem:[#allocation2 + $0x1a6] sm:$0xff]  ;;  %v1998_v54 = vmax.f32 %v1918_v25, %v1958_v51  ;;  %v2253_v29 = vmax.f32 %v2221_v7, %v5044_v45 }
 0x1a2   : > { %v1879_v24 = vld [vmem:[#allocation2 + $0x18f] sm:$0xff]  ;;  %v1337_v34 = vmax.f32 %v1305_v14, %v5057_v49  ;;  %3948 = vmatprep.mubr.msk.bf16.mxu1 %vm737_vm2, %v2308_v52  ;;  %v1880_v6 = vld [vmem:[#allocation2 + $0x1a7] sm:$0xff]  ;;  %v2191_v53 = vmax.f32 %v4975_v2, %v5028_v1  ;;  %v2222_v58 = vmax.f32 %v2190_v30, %v5042_v16 }
 0x1a3   : > { %v2036_v11 = vld [vmem:[#allocation2 + $0x169] sm:$0xff]  ;;  %v2037_v43 = vld [vmem:[#allocation2 + $0x171] sm:$0xff]  ;;  %v1919_v36 = vmax.f32 %v1839_v47, %v1879_v24  ;;  %1813 = vst.msk [vmem:[#allocation2 + $0x230] sm:$0xff] %vm737_vm2, %v1338_v63  ;;  %v1920_v50 = vmax.f32 %v1840_v38, %v1880_v6 }
 0x1a4   : > { %v2076_v21 = vmax.f32 %v1996_v4, %v2036_v11  ;;  %v2116_v19 = vld [vmem:[#allocation2 + $0x16a] sm:$0xff]  ;;  %v2077_v59 = vmax.f32 %v1997_v61, %v2037_v43  ;;  %1812 = vst.msk [vmem:[#allocation2 + $0x228] sm:$0xff] %vm737_vm2, %v1337_v34  ;;  %v1354_v46 = vpack.c.bf16 %v1338_v63, %v1337_v34  ;;  %v2119_v48 = vld [vmem:[#allocation2 + $0x192] sm:$0xff]  ;;  %v5680_v61 = vpack.c.bf16 %v4429_v39, %v4420_v31 }
 0x1a5   : > { %v1959_v37 = vld [vmem:[#allocation2 + $0x190] sm:$0xff]  ;;  %v1960_v24 = vld [vmem:[#allocation2 + $0x1a8] sm:$0xff]  ;;  %v2223_v11 = vmax.f32 %v2191_v53, %v5044_v45  ;;  %v2192_v34 = vmax.f32 %v5021_v0, %v5042_v16 }
 0x1a6   : > { %v5073_v56 = vmax.f32 %v2076_v21, %v2116_v19  ;;  %v1841_v40 = vld [vmem:[#allocation2 + $0x1ae] sm:$0xff]  ;;  %v5079_v20 = vmax.f32 %v2077_v59, %v2117_v22  ;;  %v1999_v13 = vmax.f32 %v1919_v36, %v1959_v37  ;;  %3897 = vmatmul.mubr.msk.bf16.gmra.mrb[60].mxu0 %vm737_vm2, %v1354_v46  ;;  %v1842_v41 = vld [vmem:[#allocation2 + $0x1c6] sm:$0xff]  ;;  %v2000_v39 = vmax.f32 %v1920_v50, %v1960_v24 }
 0x1a7   : > { %v1881_v33 = vld [vmem:[#allocation2 + $0x1af] sm:$0xff]  ;;  %3902 = vmatprep.mubr.msk.bf16.mxu0 %vm737_vm2, %v5680_v61  ;;  %v1882_v21 = vld [vmem:[#allocation2 + $0x1c7] sm:$0xff]  ;;  %v2193_v36 = vmax.f32 %v5028_v1, %v5044_v45  ;;  %v5681_v24 = vpack.c.bf16 %v4425_v35, %v4417_v26 }
 0x1a8   : > { %v2038_v57 = vld [vmem:[#allocation2 + $0x189] sm:$0xff]  ;;  %v2284_v55 = vmax.f32 %v2252_v12, %v5073_v56  ;;  %v2039_v14 = vld [vmem:[#allocation2 + $0x191] sm:$0xff]  ;;  %v2285_v9 = vmax.f32 %v2253_v29, %v5079_v20  ;;  %v1921_v47 = vmax.f32 %v1841_v40, %v1881_v33  ;;  %v2254_v18 = vmax.f32 %v2222_v58, %v5073_v56 }
 0x1a9   : > { %v2078_v42 = vmax.f32 %v1998_v54, %v2038_v57  ;;  %v2118_v17 = vld [vmem:[#allocation2 + $0x18a] sm:$0xff]  ;;  %v2079_v4 = vmax.f32 %v1999_v13, %v2039_v14  ;;  %v2255_v25 = vmax.f32 %v2223_v11, %v5079_v20  ;;  %v2224_v0 = vmax.f32 %v2192_v34, %v5073_v56  ;;  %v2121_v12 = vld [vmem:[#allocation2 + $0x1b2] sm:$0xff] }
 0x1aa   : > { %v1961_v52 = vld [vmem:[#allocation2 + $0x1b0] sm:$0xff]  ;;  %2578 = vst.msk [vmem:[#allocation2 + $0x128] sm:$0xff] %vm737_vm2, %v2284_v55  ;;  %v2309_v22 = vpack.c.bf16 %v2285_v9, %v2284_v55  ;;  %2579 = vst.msk [vmem:[#allocation2 + $0x130] sm:$0xff] %vm737_vm2, %v2285_v9  ;;  %v1922_v54 = vmax.f32 %v1842_v41, %v1882_v21  ;;  %v1962_v40 = vld [vmem:[#allocation2 + $0x1c8] sm:$0xff]  ;;  %v2225_v33 = vmax.f32 %v2193_v36, %v5079_v20 }
 0x1ab   : > { %v5093_v2 = vmax.f32 %v2078_v42, %v2118_v17  ;;  %v1843_v43 = vld [vmem:[#allocation2 + $0x1ce] sm:$0xff]  ;;  %v5100_v31 = vmax.f32 %v2079_v4, %v2119_v48  ;;  %v2001_v28 = vmax.f32 %v1921_v47, %v1961_v52  ;;  %v2194_v29 = vmax.f32 %v5042_v16, %v5073_v56  ;;  %v1844_v13 = vld [vmem:[#allocation2 + $0x1e6] sm:$0xff] }
 0x1ac   : > { %v1883_v19 = vld [vmem:[#allocation2 + $0x1cf] sm:$0xff]  ;;  %3949 = vmatmul.mubr.msk.bf16.gmra.mrb[28].mxu1 %vm737_vm2, %v2309_v22  ;;  %v1884_v57 = vld [vmem:[#allocation2 + $0x1e7] sm:$0xff]  ;;  %v2002_v42 = vmax.f32 %v1922_v54, %v1962_v40  ;;  %v2195_v4 = vmax.f32 %v5044_v45, %v5079_v20  ;;  %v5682_v45 = vpack.c.bf16 %v4472_v15, %v4463_v3 }
 0x1ad   : > { %v2286_v63 = vmax.f32 %v2254_v18, %v5093_v2  ;;  %v2040_v59 = vld [vmem:[#allocation2 + $0x1a9] sm:$0xff]  ;;  %v2041_v7 = vld [vmem:[#allocation2 + $0x1b1] sm:$0xff]  ;;  %v1923_v30 = vmax.f32 %v1843_v43, %v1883_v19  ;;  %v2287_v6 = vmax.f32 %v2255_v25, %v5100_v31  ;;  %v2256_v46 = vmax.f32 %v2224_v0, %v5093_v2 }
 0x1ae   : > { %v2080_v51 = vmax.f32 %v2000_v39, %v2040_v59  ;;  %v2081_v37 = vmax.f32 %v2001_v28, %v2041_v7  ;;  %v2120_v38 = vld [vmem:[#allocation2 + $0x1aa] sm:$0xff]  ;;  %v2257_v58 = vmax.f32 %v2225_v33, %v5100_v31  ;;  %v2226_v16 = vmax.f32 %v2194_v29, %v5093_v2  ;;  %3903 = vmatmul.mubr.msk.bf16.vlgmr.msra.gmra.mrb[32].mxu0 %vm737_vm2, %v5681_v24  ;;  %v2123_v18 = vld [vmem:[#allocation2 + $0x1d2] sm:$0xff] }
 0x1af   : > { %2580 = vst.msk [vmem:[#allocation2 + $0x148] sm:$0xff] %vm737_vm2, %v2286_v63  ;;  %v1963_v1 = vld [vmem:[#allocation2 + $0x1d0] sm:$0xff]  ;;  %v2310_v53 = vpack.c.bf16 %v2287_v6, %v2286_v63  ;;  %2581 = vst.msk [vmem:[#allocation2 + $0x150] sm:$0xff] %vm737_vm2, %v2287_v6  ;;  %v1924_v34 = vmax.f32 %v1844_v13, %v1884_v57  ;;  %3906 = vmatprep.mubr.msk.bf16.mxu0 %vm737_vm2, %v5682_v45  ;;  %v2227_v26 = vmax.f32 %v2195_v4, %v5100_v31  ;;  %v1964_v21 = vld [vmem:[#allocation2 + $0x1e8] sm:$0xff] }
 0x1b0   : > { %v5114_v55 = vmax.f32 %v2080_v51, %v2120_v38  ;;  %v5116_v14 = vmax.f32 %v2081_v37, %v2121_v12  ;;  %v2003_v17 = vmax.f32 %v1923_v30, %v1963_v1  ;;  %v2042_v48 = vld [vmem:[#allocation2 + $0x1c9] sm:$0xff]  ;;  %v2043_v9 = vld [vmem:[#allocation2 + $0x1d1] sm:$0xff]  ;;  %v2196_v51 = vmax.f32 %v5073_v56, %v5093_v2 }
 0x1b1   : > { %v1845_v50 = vld [vmem:[#allocation2 + $0x1ee] sm:$0xff]  ;;  %v2082_v41 = vmax.f32 %v2002_v42, %v2042_v48  ;;  %3952 = vmatprep.mubr.msk.bf16.mxu1 %vm737_vm2, %v2310_v53  ;;  %v1846_v19 = vld [vmem:[#allocation2 + $0x206] sm:$0xff]  ;;  %v2004_v63 = vmax.f32 %v1924_v34, %v1964_v21  ;;  %v2197_v37 = vmax.f32 %v5079_v20, %v5100_v31  ;;  %v5683_v24 = vpack.c.bf16 %v4468_v8, %v4460_v62 }
 0x1b2   : > { %v1885_v47 = vld [vmem:[#allocation2 + $0x1ef] sm:$0xff]  ;;  %v2288_v52 = vmax.f32 %v2256_v46, %v5114_v55  ;;  %v2083_v61 = vmax.f32 %v2003_v17, %v2043_v9  ;;  %v2289_v43 = vmax.f32 %v2257_v58, %v5116_v14  ;;  %v2258_v35 = vmax.f32 %v2226_v16, %v5114_v55  ;;  %v1886_v22 = vld [vmem:[#allocation2 + $0x207] sm:$0xff] }
 0x1b3   : > { %v2122_v11 = vld [vmem:[#allocation2 + $0x1ca] sm:$0xff]  ;;  %v1925_v25 = vmax.f32 %v1845_v50, %v1885_v47  ;;  %v2259_v7 = vmax.f32 %v2227_v26, %v5116_v14  ;;  %v1926_v30 = vmax.f32 %v1846_v19, %v1886_v22  ;;  %v2228_v46 = vmax.f32 %v2196_v51, %v5114_v55  ;;  %v2125_v9 = vld [vmem:[#allocation2 + $0x1f2] sm:$0xff] }
 0x1b4   : > { %2582 = vst.msk [vmem:[#allocation2 + $0x168] sm:$0xff] %vm737_vm2, %v2288_v52  ;;  %v5137_v39 = vmax.f32 %v2082_v41, %v2122_v11  ;;  %v5139_v28 = vmax.f32 %v2083_v61, %v2123_v18  ;;  %v1847_v3 = vld [vmem:[#allocation2 + $0x20e] sm:$0xff]  ;;  %v2311_v59 = vpack.c.bf16 %v2289_v43, %v2288_v52  ;;  %2583 = vst.msk [vmem:[#allocation2 + $0x170] sm:$0xff] %vm737_vm2, %v2289_v43  ;;  %v1848_v48 = vld [vmem:[#allocation2 + $0x226] sm:$0xff] }
 0x1b5   : > { %v1887_v15 = vld [vmem:[#allocation2 + $0x20f] sm:$0xff]  ;;  %v2229_v1 = vmax.f32 %v2197_v37, %v5116_v14  ;;  %v2198_v17 = vmax.f32 %v5093_v2, %v5114_v55  ;;  %v1888_v53 = vld [vmem:[#allocation2 + $0x227] sm:$0xff]  ;;  %v2199_v61 = vmax.f32 %v5100_v31, %v5116_v14  ;;  %v5684_v45 = vpack.c.bf16 %v4502_v5, %v4491_v23 }
 0x1b6   : > { %v1965_v36 = vld [vmem:[#allocation2 + $0x1f0] sm:$0xff]  ;;  %v2290_v38 = vmax.f32 %v2258_v35, %v5137_v39  ;;  %3953 = vmatmul.mubr.msk.bf16.gmra.mrb[0].mxu1 %vm737_vm2, %v2311_v59  ;;  %v2291_v40 = vmax.f32 %v2259_v7, %v5139_v28  ;;  %v1927_v29 = vmax.f32 %v1847_v3, %v1887_v15  ;;  %v1966_v56 = vld [vmem:[#allocation2 + $0x208] sm:$0xff]  ;;  %v2260_v4 = vmax.f32 %v2228_v46, %v5137_v39 }
 0x1b7   : > { %v2044_v0 = vld [vmem:[#allocation2 + $0x1e9] sm:$0xff]  ;;  %v2005_v12 = vmax.f32 %v1925_v25, %v1965_v36  ;;  %v2045_v6 = vld [vmem:[#allocation2 + $0x1f1] sm:$0xff]  ;;  %v2006_v42 = vmax.f32 %v1926_v30, %v1966_v56  ;;  %v2261_v16 = vmax.f32 %v2229_v1, %v5139_v28  ;;  %3907 = vmatmul.mubr.msk.bf16.gmra.mrb[36].mxu0 %vm737_vm2, %v5683_v24  ;;  %v2230_v11 = vmax.f32 %v2198_v17, %v5137_v39 }
 0x1b8   : > { %v2084_v54 = vmax.f32 %v2004_v63, %v2044_v0  ;;  %v2124_v33 = vld [vmem:[#allocation2 + $0x1ea] sm:$0xff]  ;;  %2584 = vst.msk [vmem:[#allocation2 + $0x188] sm:$0xff] %vm737_vm2, %v2290_v38  ;;  %v2312_v58 = vpack.c.bf16 %v2291_v40, %v2290_v38  ;;  %2585 = vst.msk [vmem:[#allocation2 + $0x190] sm:$0xff] %vm737_vm2, %v2291_v40  ;;  %3910 = vmatprep.mubr.msk.bf16.mxu0 %vm737_vm2, %v5684_v45  ;;  %v1928_v26 = vmax.f32 %v1848_v48, %v1888_v53  ;;  %v2127_v21 = vld [vmem:[#allocation2 + $0x212] sm:$0xff] }
 0x1b9   : > { %v2085_v20 = vmax.f32 %v2005_v12, %v2045_v6  ;;  %v1967_v57 = vld [vmem:[#allocation2 + $0x210] sm:$0xff]  ;;  %v2231_v19 = vmax.f32 %v2199_v61, %v5139_v28  ;;  %v1968_v25 = vld [vmem:[#allocation2 + $0x228] sm:$0xff]  ;;  %v2200_v3 = vmax.f32 %v5114_v55, %v5137_v39  ;;  %v2201_v51 = vmax.f32 %v5116_v14, %v5139_v28 }
 0x1ba   : > { %v5153_v13 = vmax.f32 %v2084_v54, %v2124_v33  ;;  %v2007_v50 = vmax.f32 %v1927_v29, %v1967_v57  ;;  %v2046_v47 = vld [vmem:[#allocation2 + $0x209] sm:$0xff]  ;;  %v2047_v2 = vld [vmem:[#allocation2 + $0x211] sm:$0xff]  ;;  %3956 = vmatprep.mubr.msk.bf16.mxu1 %vm737_vm2, %v2312_v58  ;;  %v2008_v5 = vmax.f32 %v1928_v26, %v1968_v25 }
 0x1bb   : > { %v5164_v52 = vmax.f32 %v2085_v20, %v2125_v9  ;;  %v2086_v41 = vmax.f32 %v2006_v42, %v2046_v47  ;;  %v1849_v18 = vld [vmem:[#allocation2 + $0x22e] sm:$0xff]  ;;  %v5190_v30 = vld [vmem:[#allocation2 + $0x6] sm:$0xff] }
 0x1bc   : > { %v1889_v34 = vld [vmem:[#allocation2 + $0x22f] sm:$0xff]  ;;  %v2292_v62 = vmax.f32 %v2260_v4, %v5153_v13  ;;  %v2087_v8 = vmax.f32 %v2007_v50, %v2047_v2  ;;  %v2262_v22 = vmax.f32 %v2230_v11, %v5153_v13  ;;  %v2232_v12 = vmax.f32 %v2200_v3, %v5153_v13  ;;  %v5194_v40 = vld [vmem:[#allocation2 + $0x26] sm:$0xff] }
 0x1bd   : > { %v2126_v43 = vld [vmem:[#allocation2 + $0x20a] sm:$0xff]  ;;  %v2293_v35 = vmax.f32 %v2261_v16, %v5164_v52  ;;  %v1929_v23 = vmax.f32 %v1849_v18, %v1889_v34  ;;  %v2263_v59 = vmax.f32 %v2231_v19, %v5164_v52  ;;  %v2202_v54 = vmax.f32 %v5137_v39, %v5153_v13 }
 0x1be   : > { %v2166_v31 = vmax.f32 %v2086_v41, %v2126_v43  ;;  %2586 = vst.msk [vmem:[#allocation2 + $0x1a8] sm:$0xff] %vm737_vm2, %v2292_v62  ;;  %v5179_v63 = vmax.f32 %v2087_v8, %v2127_v21  ;;  %v1969_v36 = vld [vmem:[#allocation2 + $0x230] sm:$0xff]  ;;  %v5198_v33 = vld [vmem:[#allocation2 + $0x7] sm:$0xff]  ;;  %v2233_v39 = vmax.f32 %v2201_v51, %v5164_v52  ;;  %v2203_v29 = vmax.f32 %v5139_v28, %v5164_v52  ;;  %v5686_v41 = vld [vmem:[#allocation6_spill] sm:$0xff] }
 0x1bf   : > { %v2313_v15 = vpack.c.bf16 %v2293_v35, %v2292_v62  ;;  %2587 = vst.msk [vmem:[#allocation2 + $0x1b0] sm:$0xff] %vm737_vm2, %v2293_v35  ;;  %v2048_v0 = vld [vmem:[#allocation2 + $0x229] sm:$0xff]  ;;  %v2009_v37 = vmax.f32 %v1929_v23, %v1969_v36  ;;  %v2049_v46 = vld [vmem:[#allocation2 + $0x231] sm:$0xff]  ;;  %v5685_v28 = vpack.c.bf16 %v4496_v10, %v4488_v60  ;;  %v2676_v21 = vmax.f32 %v5190_v30, %v5198_v33 }
 0x1c0   : > { %v2294_v7 = vmax.f32 %v2262_v22, %v2166_v31  ;;  %v2088_v38 = vmax.f32 %v2008_v5, %v2048_v0  ;;  %v5192_v55 = vld [vmem:[#allocation2 + $0xe] sm:$0xff]  ;;  %v2295_v14 = vmax.f32 %v2263_v59, %v5179_v63  ;;  %v2204_v56 = vmax.f32 %v5153_v13, %v2166_v31  ;;  %v5209_v53 = vld [vmem:[#allocation2 + $0x46] sm:$0xff] }
 0x1c1   : > { %v5196_v6 = vld [vmem:[#allocation2 + $0x2e] sm:$0xff]  ;;  %3957 = vmatmul.mubr.msk.bf16.gmra.mrb[4].mxu1 %vm737_vm2, %v2313_v15  ;;  %v2089_v57 = vmax.f32 %v2009_v37, %v2049_v46  ;;  %v2264_v17 = vmax.f32 %v2232_v12, %v2166_v31  ;;  %v2234_v48 = vmax.f32 %v2202_v54, %v2166_v31  ;;  %3911 = vmatmul.mubr.msk.bf16.gmra.mrb[40].mxu0 %vm737_vm2, %v5685_v28  ;;  %v2602_v45 = vld [vmem:[#allocation2 + $0x66] sm:$0xff] }
 0x1c2   : > { %2588 = vst.msk [vmem:[#allocation2 + $0x1c8] sm:$0xff] %vm737_vm2, %v2294_v7  ;;  %v2128_v1 = vld [vmem:[#allocation2 + $0x22a] sm:$0xff]  ;;  %v2314_v4 = vpack.c.bf16 %v2295_v14, %v2294_v7  ;;  %2589 = vst.msk [vmem:[#allocation2 + $0x1d0] sm:$0xff] %vm737_vm2, %v2295_v14  ;;  %v2129_v13 = vld [vmem:[#allocation2 + $0x232] sm:$0xff]  ;;  %v2265_v16 = vmax.f32 %v2233_v39, %v5179_v63  ;;  %v2235_v50 = vmax.f32 %v2203_v29, %v5179_v63 }
 0x1c3   : > { %v5207_v20 = vld [vmem:[#allocation2 + $0xf] sm:$0xff]  ;;  %v2168_v42 = vmax.f32 %v2088_v38, %v2128_v1  ;;  %v5211_v58 = vld [vmem:[#allocation2 + $0x27] sm:$0xff]  ;;  %v2205_v47 = vmax.f32 %v5164_v52, %v5179_v63  ;;  %v2169_v60 = vmax.f32 %v2089_v57, %v2129_v13 }
 0x1c4   : > { %v5213_v9 = vld [vmem:[#allocation2 + $0x2f] sm:$0xff]  ;;  %v5226_v2 = vld [vmem:[#allocation2 + $0x47] sm:$0xff]  ;;  %3960 = vmatprep.mubr.msk.bf16.mxu1 %vm737_vm2, %v2314_v4  ;;  %v2677_v31 = vmax.f32 %v5192_v55, %v5207_v20  ;;  %v2678_v19 = vmax.f32 %v5194_v40, %v5211_v58 }
 0x1c5   : > { %v5224_v24 = vld [vmem:[#allocation2 + $0x4e] sm:$0xff]  ;;  %v2296_v10 = vmax.f32 %v2264_v17, %v2168_v42  ;;  %v2266_v18 = vmax.f32 %v2234_v48, %v2168_v42  ;;  %v2236_v34 = vmax.f32 %v2204_v56, %v2168_v42  ;;  %v2604_v26 = vld [vmem:[#allocation2 + $0x86] sm:$0xff]  ;;  %v2679_v22 = vmax.f32 %v5196_v6, %v5213_v9 }
 0x1c6   : > { %v5687_v61 = vld [vmem:[#allocation4_spill] sm:$0xff]  ;;  %v2297_v25 = vmax.f32 %v2265_v16, %v2169_v60  ;;  %v2267_v63 = vmax.f32 %v2235_v50, %v2169_v60  ;;  %v2237_v5 = vmax.f32 %v2205_v47, %v2169_v60  ;;  %v2680_v36 = vmax.f32 %v5209_v53, %v5226_v2  ;;  %v2717_v37 = vld [vmem:[#allocation2 + $0x10] sm:$0xff]  ;;  %v5690_v9 = vld [vmem:[#allocation3_spill] sm:$0xff] }
 0x1c7   : > { %v5688_v11 = vpack.c.bf16 %v5686_v41, %v5687_v61  ;;  %v2641_v62 = vld [vmem:[#allocation2 + $0x4f] sm:$0xff]  ;;  %v2642_v8 = vld [vmem:[#allocation2 + $0x67] sm:$0xff]  ;;  %2590 = vst.msk [vmem:[#allocation2 + $0x1e8] sm:$0xff] %vm737_vm2, %v2296_v10  ;;  %v2298_v23 = vmax.f32 %v2266_v18, %v5005_v27  ;;  %v2268_v7 = vmax.f32 %v2236_v34, %v5005_v27  ;;  %v2757_v17 = vmax.f32 %v2677_v31, %v2717_v37 }
 0x1c8   : > { %v2716_v43 = vld [vmem:[#allocation2 + $0x8] sm:$0xff]  ;;  %v2681_v0 = vmax.f32 %v5224_v24, %v2641_v62  ;;  %v2682_v51 = vmax.f32 %v2602_v45, %v2642_v8  ;;  %v2719_v12 = vld [vmem:[#allocation2 + $0x30] sm:$0xff]  ;;  %v2315_v54 = vpack.c.bf16 %v2297_v25, %v2296_v10  ;;  %2591 = vst.msk [vmem:[#allocation2 + $0x1f0] sm:$0xff] %vm737_vm2, %v2297_v25  ;;  %v2299_v30 = vmax.f32 %v2267_v63, %v5011_v44 }
 0x1c9   : > { %3914 = vmatprep.mubr.msk.bf16.mxu0 %vm737_vm2, %v5688_v11  ;;  %v2603_v52 = vld [vmem:[#allocation2 + $0x6e] sm:$0xff]  ;;  %2592 = vst.msk [vmem:[#allocation2 + $0x208] sm:$0xff] %vm737_vm2, %v2298_v23  ;;  %v2269_v55 = vmax.f32 %v2237_v5, %v5011_v44  ;;  %v5254_v14 = vmax.f32 %v2268_v7, %v5057_v49  ;;  %v2756_v56 = vmax.f32 %v2676_v21, %v2716_v43  ;;  %v2606_v7 = vld [vmem:[#allocation2 + $0xa6] sm:$0xff] }
 0x1ca   : > { %v2643_v35 = vld [vmem:[#allocation2 + $0x6f] sm:$0xff]  ;;  %v2644_v15 = vld [vmem:[#allocation2 + $0x87] sm:$0xff]  ;;  %3961 = vmatmul.mubr.msk.bf16.gmra.mrb[8].mxu1 %vm737_vm2, %v2315_v54  ;;  %v2316_v57 = vpack.c.bf16 %v2299_v30, %v2298_v23  ;;  %2593 = vst.msk [vmem:[#allocation2 + $0x210] sm:$0xff] %vm737_vm2, %v2299_v30  ;;  %v2759_v50 = vmax.f32 %v2679_v22, %v2719_v12 }
 0x1cb   : > { %v2605_v3 = vld [vmem:[#allocation2 + $0x8e] sm:$0xff]  ;;  %v2683_v40 = vmax.f32 %v2603_v52, %v2643_v35  ;;  %v2684_v46 = vmax.f32 %v2604_v26, %v2644_v15  ;;  %v5259_v44 = vmax.f32 %v2269_v55, %v5059_v32  ;;  %2594 = vst.msk [vmem:[#allocation2 + $0x228] sm:$0xff] %vm737_vm2, %v5254_v14  ;;  %v2608_v30 = vld [vmem:[#allocation2 + $0xc6] sm:$0xff] }
 0x1cc   : > { %v2645_v59 = vld [vmem:[#allocation2 + $0x8f] sm:$0xff]  ;;  %3964 = vmatprep.mubr.msk.bf16.mxu1 %vm737_vm2, %v2316_v57  ;;  %v2646_v12 = vld [vmem:[#allocation2 + $0xa7] sm:$0xff] }
 0x1cd   : > { %v2718_v38 = vld [vmem:[#allocation2 + $0x28] sm:$0xff]  ;;  %v2797_v6 = vld [vmem:[#allocation2 + $0x11] sm:$0xff]  ;;  %v2685_v1 = vmax.f32 %v2605_v3, %v2645_v59  ;;  %v2317_v61 = vpack.c.bf16 %v5259_v44, %v5254_v14  ;;  %2595 = vst.msk [vmem:[#allocation2 + $0x230] sm:$0xff] %vm737_vm2, %v5259_v44 }
 0x1ce   : > { %v2796_v27 = vld [vmem:[#allocation2 + $0x9] sm:$0xff]  ;;  %v2799_v20 = vld [vmem:[#allocation2 + $0x31] sm:$0xff]  ;;  %v2758_v48 = vmax.f32 %v2678_v19, %v2718_v38  ;;  %v2837_v26 = vmax.f32 %v2757_v17, %v2797_v6  ;;  %v2686_v17 = vmax.f32 %v2606_v7, %v2646_v12 }
 0x1cf   : > { %v5251_v33 = vld [vmem:[#allocation2 + $0x29] sm:$0xff]  ;;  %v2877_v49 = vld [vmem:[#allocation2 + $0x12] sm:$0xff]  ;;  %v2836_v52 = vmax.f32 %v2756_v56, %v2796_v27  ;;  %v2839_v21 = vmax.f32 %v2759_v50, %v2799_v20 }
 0x1d0   : > { %v2720_v39 = vld [vmem:[#allocation2 + $0x48] sm:$0xff]  ;;  %v2721_v29 = vld [vmem:[#allocation2 + $0x50] sm:$0xff]  ;;  %v2838_v35 = vmax.f32 %v2758_v48, %v5251_v33  ;;  %v2917_v38 = vmax.f32 %v2837_v26, %v2877_v49 }
 0x1d1   : > { %v2722_v42 = vld [vmem:[#allocation2 + $0x68] sm:$0xff]  ;;  %v5689_v58 = vld [vmem:[#allocation5_spill] sm:$0xff]  ;;  %v2760_v47 = vmax.f32 %v2680_v36, %v2720_v39  ;;  %v2761_v32 = vmax.f32 %v2681_v0, %v2721_v29 }
 0x1d2   : > { %v2876_v53 = vld [vmem:[#allocation2 + $0xa] sm:$0xff]  ;;  %v5691_v4 = vpack.c.bf16 %v5689_v58, %v5690_v9  ;;  %v2762_v24 = vmax.f32 %v2682_v51, %v2722_v42  ;;  %v2879_v45 = vld [vmem:[#allocation2 + $0x32] sm:$0xff]  ;;  %3965 = vmatmul.mubr.msk.bf16.gmra.mrb[12].mxu1 %vm737_vm2, %v2317_v61 }
 0x1d3   : > { %v2723_v28 = vld [vmem:[#allocation2 + $0x70] sm:$0xff]  ;;  %v2724_v13 = vld [vmem:[#allocation2 + $0x88] sm:$0xff]  ;;  %v2916_v37 = vmax.f32 %v2836_v52, %v2876_v53 }
 0x1d4   : > { %3915 = vmatmul.mubr.msk.bf16.gmra.mrb[44].mxu0 %vm737_vm2, %v5691_v4  ;;  %v2725_v16 = vld [vmem:[#allocation2 + $0x90] sm:$0xff]  ;;  %v2763_v11 = vmax.f32 %v2683_v40, %v2723_v28  ;;  %v2764_v60 = vmax.f32 %v2684_v46, %v2724_v13  ;;  %v2919_v40 = vmax.f32 %v2839_v21, %v2879_v45  ;;  %v2648_v14 = vld [vmem:[#allocation2 + $0xc7] sm:$0xff] }
 0x1d5   : > { %v2800_v2 = vld [vmem:[#allocation2 + $0x49] sm:$0xff]  ;;  %v2801_v41 = vld [vmem:[#allocation2 + $0x51] sm:$0xff]  ;;  %v2765_v10 = vmax.f32 %v2685_v1, %v2725_v16  ;;  %v2688_v49 = vmax.f32 %v2608_v30, %v2648_v14 }
 0x1d6   : > { %v2802_v18 = vld [vmem:[#allocation2 + $0x69] sm:$0xff]  ;;  %v2803_v62 = vld [vmem:[#allocation2 + $0x71] sm:$0xff]  ;;  %v2840_v22 = vmax.f32 %v2760_v47, %v2800_v2  ;;  %v2841_v25 = vmax.f32 %v2761_v32, %v2801_v41  ;;  %v2957_v57 = vmax.f32 %v2917_v38, %v2919_v40 }
 0x1d7   : > { %v2878_v34 = vld [vmem:[#allocation2 + $0x2a] sm:$0xff]  ;;  %v2881_v19 = vld [vmem:[#allocation2 + $0x52] sm:$0xff]  ;;  %v2842_v63 = vmax.f32 %v2762_v24, %v2802_v18  ;;  %v2843_v23 = vmax.f32 %v2763_v11, %v2803_v62 }
 0x1d8   : > { %v2804_v8 = vld [vmem:[#allocation2 + $0x89] sm:$0xff]  ;;  %v2805_v43 = vld [vmem:[#allocation2 + $0x91] sm:$0xff]  ;;  %v2918_v55 = vmax.f32 %v2838_v35, %v2878_v34  ;;  %v2921_v6 = vmax.f32 %v2841_v25, %v2881_v19 }
 0x1d9   : > { %v2880_v31 = vld [vmem:[#allocation2 + $0x4a] sm:$0xff]  ;;  %v2883_v3 = vld [vmem:[#allocation2 + $0x72] sm:$0xff]  ;;  %v2844_v0 = vmax.f32 %v2764_v60, %v2804_v8  ;;  %v2845_v51 = vmax.f32 %v2765_v10, %v2805_v43 }
 0x1da   : > { %v2882_v5 = vld [vmem:[#allocation2 + $0x6a] sm:$0xff]  ;;  %v2885_v59 = vld [vmem:[#allocation2 + $0x92] sm:$0xff]  ;;  %v2920_v27 = vmax.f32 %v2840_v22, %v2880_v31  ;;  %v5275_v39 = vmax.f32 %v2843_v23, %v2883_v3  ;;  %v2956_v20 = vmax.f32 %v2916_v37, %v2918_v55  ;;  %v2959_v42 = vmax.f32 %v2919_v40, %v2921_v6 }
 0x1db   : > { %v2884_v15 = vld [vmem:[#allocation2 + $0x8a] sm:$0xff]  ;;  %v5273_v1 = vmax.f32 %v2842_v63, %v2882_v5  ;;  %v5279_v56 = vmax.f32 %v2845_v51, %v2885_v59  ;;  %v2989_v4 = vmax.f32 %v2957_v57, %v2921_v6  ;;  %v2887_v34 = vld [vmem:[#allocation2 + $0xb2] sm:$0xff] }
 0x1dc   : > { %v2607_v36 = vld [vmem:[#allocation2 + $0xae] sm:$0xff]  ;;  %v5277_v29 = vmax.f32 %v2844_v0, %v2884_v15  ;;  %v2958_v44 = vmax.f32 %v2918_v55, %v2920_v27  ;;  %v2988_v9 = vmax.f32 %v2956_v20, %v2920_v27  ;;  %v2991_v13 = vmax.f32 %v2959_v42, %v5275_v39  ;;  %v2610_v19 = vld [vmem:[#allocation2 + $0xe6] sm:$0xff] }
 0x1dd   : > { %v2647_v54 = vld [vmem:[#allocation2 + $0xaf] sm:$0xff]  ;;  %v3021_v10 = vmax.f32 %v2989_v4, %v5275_v39  ;;  %v2650_v22 = vld [vmem:[#allocation2 + $0xe7] sm:$0xff]  ;;  %v2960_v5 = vmax.f32 %v2920_v27, %v5273_v1  ;;  %v2961_v3 = vmax.f32 %v2921_v6, %v5275_v39  ;;  %v2963_v42 = vmax.f32 %v5275_v39, %v5279_v56 }
 0x1de   : > { %v2609_v33 = vld [vmem:[#allocation2 + $0xce] sm:$0xff]  ;;  %v2687_v48 = vmax.f32 %v2607_v36, %v2647_v54  ;;  %v2990_v28 = vmax.f32 %v2958_v44, %v5273_v1  ;;  %v3020_v60 = vmax.f32 %v2988_v9, %v5273_v1  ;;  %v3023_v62 = vmax.f32 %v2991_v13, %v5279_v56  ;;  %v2612_v30 = vld [vmem:[#allocation2 + $0x106] sm:$0xff] }
 0x1df   : > { %v2649_v46 = vld [vmem:[#allocation2 + $0xcf] sm:$0xff]  ;;  %v3053_v63 = vmax.f32 %v3021_v10, %v5279_v56  ;;  %v2992_v38 = vmax.f32 %v2960_v5, %v5277_v29  ;;  %v2993_v12 = vmax.f32 %v2961_v3, %v5279_v56  ;;  %v2690_v54 = vmax.f32 %v2610_v19, %v2650_v22  ;;  %v2652_v55 = vld [vmem:[#allocation2 + $0x107] sm:$0xff] }
 0x1e0   : > { %v2726_v53 = vld [vmem:[#allocation2 + $0xa8] sm:$0xff]  ;;  %v2689_v58 = vmax.f32 %v2609_v33, %v2649_v46  ;;  %v2727_v16 = vld [vmem:[#allocation2 + $0xb0] sm:$0xff]  ;;  %v3022_v45 = vmax.f32 %v2990_v28, %v5277_v29  ;;  %v3052_v25 = vmax.f32 %v3020_v60, %v5277_v29  ;;  %v2962_v14 = vmax.f32 %v5273_v1, %v5277_v29 }
 0x1e1   : > { %v2728_v50 = vld [vmem:[#allocation2 + $0xc8] sm:$0xff]  ;;  %v2729_v47 = vld [vmem:[#allocation2 + $0xd0] sm:$0xff]  ;;  %v2766_v32 = vmax.f32 %v2686_v17, %v2726_v53  ;;  %v2767_v24 = vmax.f32 %v2687_v48, %v2727_v16  ;;  %v2692_v1 = vmax.f32 %v2612_v30, %v2652_v55 }
 0x1e2   : > { %v2806_v2 = vld [vmem:[#allocation2 + $0xa9] sm:$0xff]  ;;  %v2807_v41 = vld [vmem:[#allocation2 + $0xb1] sm:$0xff]  ;;  %v2768_v61 = vmax.f32 %v2688_v49, %v2728_v50  ;;  %v2769_v11 = vmax.f32 %v2689_v58, %v2729_v47  ;;  %v3084_v37 = vpack.c.bf16 %v3053_v63, %v3052_v25 }
 0x1e3   : > { %v2886_v18 = vld [vmem:[#allocation2 + $0xaa] sm:$0xff]  ;;  %v2846_v52 = vmax.f32 %v2766_v32, %v2806_v2  ;;  %v2847_v26 = vmax.f32 %v2767_v24, %v2807_v41  ;;  %v2889_v23 = vld [vmem:[#allocation2 + $0xd2] sm:$0xff] }
 0x1e4   : > { %v2808_v8 = vld [vmem:[#allocation2 + $0xc9] sm:$0xff]  ;;  %v2809_v43 = vld [vmem:[#allocation2 + $0xd1] sm:$0xff]  ;;  %3970 = vmatprep.mubr.msk.bf16.mxu1 %vm737_vm2, %v3084_v37 }
 0x1e5   : > { %v2848_v35 = vmax.f32 %v2768_v61, %v2808_v8  ;;  %v2849_v21 = vmax.f32 %v2769_v11, %v2809_v43  ;;  %v2888_v31 = vld [vmem:[#allocation2 + $0xca] sm:$0xff]  ;;  %v5292_v7 = vmax.f32 %v2846_v52, %v2886_v18  ;;  %v5294_v36 = vmax.f32 %v2847_v26, %v2887_v34  ;;  %v2891_v34 = vld [vmem:[#allocation2 + $0xf2] sm:$0xff] }
 0x1e6   : > { %v2611_v15 = vld [vmem:[#allocation2 + $0xee] sm:$0xff]  ;;  %v2614_v24 = vld [vmem:[#allocation2 + $0x126] sm:$0xff] }
 0x1e7   : > { %v2651_v59 = vld [vmem:[#allocation2 + $0xef] sm:$0xff]  ;;  %v5296_v0 = vmax.f32 %v2848_v35, %v2888_v31  ;;  %v5298_v51 = vmax.f32 %v2849_v21, %v2889_v23  ;;  %v3054_v40 = vmax.f32 %v3022_v45, %v5292_v7  ;;  %v3055_v27 = vmax.f32 %v3023_v62, %v5294_v36  ;;  %v2654_v60 = vld [vmem:[#allocation2 + $0x127] sm:$0xff] }
 0x1e8   : > { %v2691_v6 = vmax.f32 %v2611_v15, %v2651_v59  ;;  %v2730_v33 = vld [vmem:[#allocation2 + $0xe8] sm:$0xff]  ;;  %v3024_v46 = vmax.f32 %v2992_v38, %v5292_v7  ;;  %v3025_v20 = vmax.f32 %v2993_v12, %v5294_v36  ;;  %v2731_v57 = vld [vmem:[#allocation2 + $0xf0] sm:$0xff]  ;;  %v2994_v4 = vmax.f32 %v2962_v14, %v5292_v7 }
 0x1e9   : > { %v2770_v44 = vmax.f32 %v2690_v54, %v2730_v33  ;;  %v2613_v17 = vld [vmem:[#allocation2 + $0x10e] sm:$0xff]  ;;  %v3085_v53 = vpack.c.bf16 %v3055_v27, %v3054_v40  ;;  %v2995_v47 = vmax.f32 %v2963_v42, %v5294_v36  ;;  %v2964_v52 = vmax.f32 %v5277_v29, %v5292_v7  ;;  %v2616_v12 = vld [vmem:[#allocation2 + $0x146] sm:$0xff] }
 0x1ea   : > { %v2653_v48 = vld [vmem:[#allocation2 + $0x10f] sm:$0xff]  ;;  %v2771_v49 = vmax.f32 %v2691_v6, %v2731_v57  ;;  %v3056_v28 = vmax.f32 %v3024_v46, %v5296_v0  ;;  %v3057_v13 = vmax.f32 %v3025_v20, %v5298_v51  ;;  %v3026_v2 = vmax.f32 %v2994_v4, %v5296_v0  ;;  %v2656_v6 = vld [vmem:[#allocation2 + $0x147] sm:$0xff] }
 0x1eb   : > { %v2810_v58 = vld [vmem:[#allocation2 + $0xe9] sm:$0xff]  ;;  %v2811_v9 = vld [vmem:[#allocation2 + $0xf1] sm:$0xff]  ;;  %3971 = vmatmul.mubr.msk.bf16.vlgmr.msra.gmra.mrb[16].mxu1 %vm737_vm2, %v3085_v53  ;;  %v2693_v41 = vmax.f32 %v2613_v17, %v2653_v48  ;;  %v3027_v62 = vmax.f32 %v2995_v47, %v5298_v51  ;;  %v2965_v31 = vmax.f32 %v5279_v56, %v5294_v36  ;;  %v2996_v23 = vmax.f32 %v2964_v52, %v5296_v0 }
 0x1ec   : > { %v2850_v16 = vmax.f32 %v2770_v44, %v2810_v58  ;;  %v2890_v50 = vld [vmem:[#allocation2 + $0xea] sm:$0xff]  ;;  %v2851_v39 = vmax.f32 %v2771_v49, %v2811_v9  ;;  %v3086_v18 = vpack.c.bf16 %v3057_v13, %v3056_v28  ;;  %v2893_v63 = vld [vmem:[#allocation2 + $0x112] sm:$0xff]  ;;  %v2694_v5 = vmax.f32 %v2614_v24, %v2654_v60 }
 0x1ed   : > { %v2732_v32 = vld [vmem:[#allocation2 + $0x108] sm:$0xff]  ;;  %v2733_v8 = vld [vmem:[#allocation2 + $0x110] sm:$0xff]  ;;  %v2997_v37 = vmax.f32 %v2965_v31, %v5298_v51  ;;  %v2966_v40 = vmax.f32 %v5292_v7, %v5296_v0  ;;  %v2967_v42 = vmax.f32 %v5294_v36, %v5298_v51 }
 0x1ee   : > { %v2772_v61 = vmax.f32 %v2692_v1, %v2732_v32  ;;  %v2615_v11 = vld [vmem:[#allocation2 + $0x12e] sm:$0xff]  ;;  %v5317_v45 = vmax.f32 %v2850_v16, %v2890_v50  ;;  %v5322_v26 = vmax.f32 %v2851_v39, %v2891_v34  ;;  %v2773_v35 = vmax.f32 %v2693_v41, %v2733_v8  ;;  %3974 = vmatprep.mubr.msk.bf16.mxu1 %vm737_vm2, %v3086_v18  ;;  %v2618_v16 = vld [vmem:[#allocation2 + $0x166] sm:$0xff] }
 0x1ef   : > { %v2655_v10 = vld [vmem:[#allocation2 + $0x12f] sm:$0xff]  ;;  %v2696_v1 = vmax.f32 %v2616_v12, %v2656_v6  ;;  %v2658_v50 = vld [vmem:[#allocation2 + $0x167] sm:$0xff] }
 0x1f0   : > { %v2812_v43 = vld [vmem:[#allocation2 + $0x109] sm:$0xff]  ;;  %v3058_v19 = vmax.f32 %v3026_v2, %v5317_v45  ;;  %v2813_v22 = vld [vmem:[#allocation2 + $0x111] sm:$0xff]  ;;  %v2695_v3 = vmax.f32 %v2615_v11, %v2655_v10  ;;  %v3059_v29 = vmax.f32 %v3027_v62, %v5322_v26  ;;  %v3028_v54 = vmax.f32 %v2996_v23, %v5317_v45 }
 0x1f1   : > { %v2852_v21 = vmax.f32 %v2772_v61, %v2812_v43  ;;  %v2892_v25 = vld [vmem:[#allocation2 + $0x10a] sm:$0xff]  ;;  %v2853_v15 = vmax.f32 %v2773_v35, %v2813_v22  ;;  %v3029_v20 = vmax.f32 %v2997_v37, %v5322_v26  ;;  %v2895_v58 = vld [vmem:[#allocation2 + $0x132] sm:$0xff]  ;;  %v2998_v7 = vmax.f32 %v2966_v40, %v5317_v45 }
 0x1f2   : > { %v2734_v38 = vld [vmem:[#allocation2 + $0x128] sm:$0xff]  ;;  %v2735_v56 = vld [vmem:[#allocation2 + $0x130] sm:$0xff]  ;;  %v3087_v14 = vpack.c.bf16 %v3059_v29, %v3058_v19  ;;  %v2999_v4 = vmax.f32 %v2967_v42, %v5322_v26  ;;  %v2968_v39 = vmax.f32 %v5296_v0, %v5317_v45  ;;  %v2969_v52 = vmax.f32 %v5298_v51, %v5322_v26 }
 0x1f3   : > { %v5330_v59 = vmax.f32 %v2852_v21, %v2892_v25  ;;  %v2774_v30 = vmax.f32 %v2694_v5, %v2734_v38  ;;  %v2775_v55 = vmax.f32 %v2695_v3, %v2735_v56  ;;  %v2617_v27 = vld [vmem:[#allocation2 + $0x14e] sm:$0xff]  ;;  %v5336_v46 = vmax.f32 %v2853_v15, %v2893_v63  ;;  %v2620_v23 = vld [vmem:[#allocation2 + $0x186] sm:$0xff] }
 0x1f4   : > { %v2657_v33 = vld [vmem:[#allocation2 + $0x14f] sm:$0xff]  ;;  %3975 = vmatmul.mubr.msk.bf16.gmra.mrb[20].mxu1 %vm737_vm2, %v3087_v14  ;;  %v2698_v21 = vmax.f32 %v2618_v16, %v2658_v50  ;;  %v2660_v37 = vld [vmem:[#allocation2 + $0x187] sm:$0xff] }
 0x1f5   : > { %v2814_v57 = vld [vmem:[#allocation2 + $0x129] sm:$0xff]  ;;  %v2815_v44 = vld [vmem:[#allocation2 + $0x131] sm:$0xff]  ;;  %v3060_v17 = vmax.f32 %v3028_v54, %v5330_v59  ;;  %v3061_v9 = vmax.f32 %v3029_v20, %v5336_v46  ;;  %v2697_v28 = vmax.f32 %v2617_v27, %v2657_v33  ;;  %v3030_v32 = vmax.f32 %v2998_v7, %v5330_v59 }
 0x1f6   : > { %v2854_v48 = vmax.f32 %v2774_v30, %v2814_v57  ;;  %v2855_v53 = vmax.f32 %v2775_v55, %v2815_v44  ;;  %v2894_v49 = vld [vmem:[#allocation2 + $0x12a] sm:$0xff]  ;;  %v3031_v11 = vmax.f32 %v2999_v4, %v5336_v46  ;;  %v2897_v43 = vld [vmem:[#allocation2 + $0x152] sm:$0xff]  ;;  %v3000_v35 = vmax.f32 %v2968_v39, %v5330_v59 }
 0x1f7   : > { %v2736_v13 = vld [vmem:[#allocation2 + $0x148] sm:$0xff]  ;;  %v2737_v24 = vld [vmem:[#allocation2 + $0x150] sm:$0xff]  ;;  %v3088_v61 = vpack.c.bf16 %v3061_v9, %v3060_v17  ;;  %v3001_v5 = vmax.f32 %v2969_v52, %v5336_v46  ;;  %v2970_v51 = vmax.f32 %v5317_v45, %v5330_v59  ;;  %v2971_v33 = vmax.f32 %v5322_v26, %v5336_v46 }
 0x1f8   : > { %v5346_v36 = vmax.f32 %v2854_v48, %v2894_v49  ;;  %v5348_v47 = vmax.f32 %v2855_v53, %v2895_v58  ;;  %v2619_v2 = vld [vmem:[#allocation2 + $0x16e] sm:$0xff]  ;;  %v2776_v60 = vmax.f32 %v2696_v1, %v2736_v13  ;;  %v2777_v10 = vmax.f32 %v2697_v28, %v2737_v24  ;;  %v2622_v9 = vld [vmem:[#allocation2 + $0x1a6] sm:$0xff] }
 0x1f9   : > { %v2659_v41 = vld [vmem:[#allocation2 + $0x16f] sm:$0xff]  ;;  %3978 = vmatprep.mubr.msk.bf16.mxu1 %vm737_vm2, %v3088_v61  ;;  %v2700_v42 = vmax.f32 %v2620_v23, %v2660_v37  ;;  %v2662_v4 = vld [vmem:[#allocation2 + $0x1a7] sm:$0xff] }
 0x1fa   : > { %v2816_v18 = vld [vmem:[#allocation2 + $0x149] sm:$0xff]  ;;  %v3062_v34 = vmax.f32 %v3030_v32, %v5346_v36  ;;  %v2817_v62 = vld [vmem:[#allocation2 + $0x151] sm:$0xff]  ;;  %v3063_v0 = vmax.f32 %v3031_v11, %v5348_v47  ;;  %v2699_v22 = vmax.f32 %v2619_v2, %v2659_v41  ;;  %v3032_v3 = vmax.f32 %v3000_v35, %v5346_v36 }
 0x1fb   : > { %v2896_v8 = vld [vmem:[#allocation2 + $0x14a] sm:$0xff]  ;;  %v2856_v31 = vmax.f32 %v2776_v60, %v2816_v18  ;;  %v2857_v19 = vmax.f32 %v2777_v10, %v2817_v62  ;;  %v3033_v40 = vmax.f32 %v3001_v5, %v5348_v47  ;;  %v3002_v14 = vmax.f32 %v2970_v51, %v5346_v36  ;;  %v2899_v44 = vld [vmem:[#allocation2 + $0x172] sm:$0xff] }
 0x1fc   : > { %v2738_v25 = vld [vmem:[#allocation2 + $0x168] sm:$0xff]  ;;  %v2739_v63 = vld [vmem:[#allocation2 + $0x170] sm:$0xff]  ;;  %v3089_v56 = vpack.c.bf16 %v3063_v0, %v3062_v34  ;;  %v3003_v58 = vmax.f32 %v2971_v33, %v5348_v47  ;;  %v2972_v16 = vmax.f32 %v5330_v59, %v5346_v36  ;;  %v2973_v11 = vmax.f32 %v5336_v46, %v5348_v47 }
 0x1fd   : > { %v2778_v29 = vmax.f32 %v2698_v21, %v2738_v25  ;;  %v2621_v15 = vld [vmem:[#allocation2 + $0x18e] sm:$0xff]  ;;  %v5364_v12 = vmax.f32 %v2856_v31, %v2896_v8  ;;  %v5366_v54 = vmax.f32 %v2857_v19, %v2897_v43  ;;  %v2779_v30 = vmax.f32 %v2699_v22, %v2739_v63  ;;  %v2624_v0 = vld [vmem:[#allocation2 + $0x1c6] sm:$0xff] }
 0x1fe   : > { %v2661_v38 = vld [vmem:[#allocation2 + $0x18f] sm:$0xff]  ;;  %3979 = vmatmul.mubr.msk.bf16.gmra.mrb[24].mxu1 %vm737_vm2, %v3089_v56  ;;  %v2702_v8 = vmax.f32 %v2622_v9, %v2662_v4  ;;  %v2664_v46 = vld [vmem:[#allocation2 + $0x1c7] sm:$0xff] }
 0x1ff   : > { %v2818_v55 = vld [vmem:[#allocation2 + $0x169] sm:$0xff]  ;;  %v2819_v27 = vld [vmem:[#allocation2 + $0x171] sm:$0xff]  ;;  %v3064_v45 = vmax.f32 %v3032_v3, %v5364_v12  ;;  %v2701_v17 = vmax.f32 %v2621_v15, %v2661_v38  ;;  %v3065_v53 = vmax.f32 %v3033_v40, %v5366_v54  ;;  %v3034_v26 = vmax.f32 %v3002_v14, %v5364_v12 }
 0x200   : > { %v2858_v6 = vmax.f32 %v2778_v29, %v2818_v55  ;;  %v2859_v20 = vmax.f32 %v2779_v30, %v2819_v27  ;;  %v2898_v57 = vld [vmem:[#allocation2 + $0x16a] sm:$0xff]  ;;  %v3035_v39 = vmax.f32 %v3003_v58, %v5366_v54  ;;  %v2901_v34 = vld [vmem:[#allocation2 + $0x192] sm:$0xff]  ;;  %v3004_v62 = vmax.f32 %v2972_v16, %v5364_v12 }
 0x201   : > { %v2740_v48 = vld [vmem:[#allocation2 + $0x188] sm:$0xff]  ;;  %v2741_v7 = vld [vmem:[#allocation2 + $0x190] sm:$0xff]  ;;  %v3090_v24 = vpack.c.bf16 %v3065_v53, %v3064_v45  ;;  %v3005_v43 = vmax.f32 %v2973_v11, %v5366_v54  ;;  %v2974_v21 = vmax.f32 %v5346_v36, %v5364_v12  ;;  %v2975_v36 = vmax.f32 %v5348_v47, %v5366_v54 }
 0x202   : > { %v5375_v49 = vmax.f32 %v2858_v6, %v2898_v57  ;;  %v5379_v1 = vmax.f32 %v2859_v20, %v2899_v44  ;;  %v2780_v28 = vmax.f32 %v2700_v42, %v2740_v48  ;;  %v2781_v13 = vmax.f32 %v2701_v17, %v2741_v7  ;;  %v2623_v50 = vld [vmem:[#allocation2 + $0x1ae] sm:$0xff]  ;;  %v2626_v47 = vld [vmem:[#allocation2 + $0x1e6] sm:$0xff] }
 0x203   : > { %v2663_v32 = vld [vmem:[#allocation2 + $0x1af] sm:$0xff]  ;;  %3982 = vmatprep.mubr.msk.bf16.mxu1 %vm737_vm2, %v3090_v24  ;;  %v2704_v27 = vmax.f32 %v2624_v0, %v2664_v46  ;;  %v2666_v58 = vld [vmem:[#allocation2 + $0x1e7] sm:$0xff] }
 0x204   : > { %v3066_v2 = vmax.f32 %v3034_v26, %v5375_v49  ;;  %v2820_v41 = vld [vmem:[#allocation2 + $0x189] sm:$0xff]  ;;  %v2821_v61 = vld [vmem:[#allocation2 + $0x191] sm:$0xff]  ;;  %v3067_v59 = vmax.f32 %v3035_v39, %v5379_v1  ;;  %v2703_v52 = vmax.f32 %v2623_v50, %v2663_v32  ;;  %v3036_v22 = vmax.f32 %v3004_v62, %v5375_v49 }
 0x205   : > { %v2860_v60 = vmax.f32 %v2780_v28, %v2820_v41  ;;  %v2861_v10 = vmax.f32 %v2781_v13, %v2821_v61  ;;  %v2900_v18 = vld [vmem:[#allocation2 + $0x18a] sm:$0xff]  ;;  %v3037_v29 = vmax.f32 %v3005_v43, %v5379_v1  ;;  %v2903_v55 = vld [vmem:[#allocation2 + $0x1b2] sm:$0xff]  ;;  %v3006_v40 = vmax.f32 %v2974_v21, %v5375_v49 }
 0x206   : > { %v2742_v35 = vld [vmem:[#allocation2 + $0x1a8] sm:$0xff]  ;;  %v2743_v25 = vld [vmem:[#allocation2 + $0x1b0] sm:$0xff]  ;;  %v3091_v3 = vpack.c.bf16 %v3067_v59, %v3066_v2  ;;  %v3007_v14 = vmax.f32 %v2975_v36, %v5379_v1  ;;  %v2976_v48 = vmax.f32 %v5364_v12, %v5375_v49  ;;  %v2977_v2 = vmax.f32 %v5366_v54, %v5379_v1 }
 0x207   : > { %v5393_v31 = vmax.f32 %v2860_v60, %v2900_v18  ;;  %v5395_v19 = vmax.f32 %v2861_v10, %v2901_v34  ;;  %v2782_v63 = vmax.f32 %v2702_v8, %v2742_v35  ;;  %v2625_v23 = vld [vmem:[#allocation2 + $0x1ce] sm:$0xff]  ;;  %v2783_v51 = vmax.f32 %v2703_v52, %v2743_v25  ;;  %v2628_v34 = vld [vmem:[#allocation2 + $0x206] sm:$0xff] }
 0x208   : > { %v2665_v5 = vld [vmem:[#allocation2 + $0x1cf] sm:$0xff]  ;;  %3983 = vmatmul.mubr.msk.bf16.gmra.mrb[28].mxu1 %vm737_vm2, %v3091_v3  ;;  %v2706_v11 = vmax.f32 %v2626_v47, %v2666_v58  ;;  %v2668_v52 = vld [vmem:[#allocation2 + $0x207] sm:$0xff] }
 0x209   : > { %v2822_v15 = vld [vmem:[#allocation2 + $0x1a9] sm:$0xff]  ;;  %v3068_v37 = vmax.f32 %v3036_v22, %v5393_v31  ;;  %v2823_v38 = vld [vmem:[#allocation2 + $0x1b1] sm:$0xff]  ;;  %v3069_v6 = vmax.f32 %v3037_v29, %v5395_v19  ;;  %v2705_v45 = vmax.f32 %v2625_v23, %v2665_v5  ;;  %v3038_v42 = vmax.f32 %v3006_v40, %v5393_v31 }
 0x20a   : > { %v2862_v56 = vmax.f32 %v2782_v63, %v2822_v15  ;;  %v2902_v30 = vld [vmem:[#allocation2 + $0x1aa] sm:$0xff]  ;;  %v2863_v33 = vmax.f32 %v2783_v51, %v2823_v38  ;;  %v3039_v4 = vmax.f32 %v3007_v14, %v5395_v19  ;;  %v2905_v39 = vld [vmem:[#allocation2 + $0x1d2] sm:$0xff]  ;;  %v3008_v12 = vmax.f32 %v2976_v48, %v5393_v31 }
 0x20b   : > { %v2744_v20 = vld [vmem:[#allocation2 + $0x1c8] sm:$0xff]  ;;  %v2745_v57 = vld [vmem:[#allocation2 + $0x1d0] sm:$0xff]  ;;  %v3092_v7 = vpack.c.bf16 %v3069_v6, %v3068_v37  ;;  %v3009_v8 = vmax.f32 %v2977_v2, %v5395_v19  ;;  %v2978_v54 = vmax.f32 %v5375_v49, %v5393_v31  ;;  %v2979_v3 = vmax.f32 %v5379_v1, %v5395_v19 }
 0x20c   : > { %v5406_v44 = vmax.f32 %v2862_v56, %v2902_v30  ;;  %v2784_v17 = vmax.f32 %v2704_v27, %v2744_v20  ;;  %v2627_v53 = vld [vmem:[#allocation2 + $0x1ee] sm:$0xff]  ;;  %v5411_v9 = vmax.f32 %v2863_v33, %v2903_v55  ;;  %v2785_v28 = vmax.f32 %v2705_v45, %v2745_v57  ;;  %v2630_v6 = vld [vmem:[#allocation2 + $0x226] sm:$0xff] }
 0x20d   : > { %v2667_v26 = vld [vmem:[#allocation2 + $0x1ef] sm:$0xff]  ;;  %3986 = vmatprep.mubr.msk.bf16.mxu1 %vm737_vm2, %v3092_v7  ;;  %v2708_v37 = vmax.f32 %v2628_v34, %v2668_v52  ;;  %v2670_v33 = vld [vmem:[#allocation2 + $0x227] sm:$0xff] }
 0x20e   : > { %v2824_v13 = vld [vmem:[#allocation2 + $0x1c9] sm:$0xff]  ;;  %v3070_v16 = vmax.f32 %v3038_v42, %v5406_v44  ;;  %v2825_v50 = vld [vmem:[#allocation2 + $0x1d1] sm:$0xff]  ;;  %v3071_v41 = vmax.f32 %v3039_v4, %v5411_v9  ;;  %v2707_v60 = vmax.f32 %v2627_v53, %v2667_v26  ;;  %v3040_v59 = vmax.f32 %v3008_v12, %v5406_v44 }
 0x20f   : > { %v2864_v32 = vmax.f32 %v2784_v17, %v2824_v13  ;;  %v2904_v24 = vld [vmem:[#allocation2 + $0x1ca] sm:$0xff]  ;;  %v2865_v61 = vmax.f32 %v2785_v28, %v2825_v50  ;;  %v3041_v25 = vmax.f32 %v3009_v8, %v5411_v9  ;;  %v3010_v29 = vmax.f32 %v2978_v54, %v5406_v44  ;;  %v2907_v36 = vld [vmem:[#allocation2 + $0x1f2] sm:$0xff] }
 0x210   : > { %v2746_v10 = vld [vmem:[#allocation2 + $0x1e8] sm:$0xff]  ;;  %v2747_v18 = vld [vmem:[#allocation2 + $0x1f0] sm:$0xff]  ;;  %v3093_v21 = vpack.c.bf16 %v3071_v41, %v3070_v16  ;;  %v3011_v55 = vmax.f32 %v2979_v3, %v5411_v9  ;;  %v2980_v1 = vmax.f32 %v5393_v31, %v5406_v44  ;;  %v2981_v26 = vmax.f32 %v5395_v19, %v5411_v9 }
 0x211   : > { %v5420_v62 = vmax.f32 %v2864_v32, %v2904_v24  ;;  %v2629_v43 = vld [vmem:[#allocation2 + $0x20e] sm:$0xff]  ;;  %v5426_v0 = vmax.f32 %v2865_v61, %v2905_v39  ;;  %v2786_v46 = vmax.f32 %v2706_v11, %v2746_v10  ;;  %v2787_v22 = vmax.f32 %v2707_v60, %v2747_v18  ;;  %v2632_v16 = vld [vmem:[#allocation2 + $0x246] sm:$0xff] }
 0x212   : > { %v2669_v35 = vld [vmem:[#allocation2 + $0x20f] sm:$0xff]  ;;  %3987 = vmatmul.mubr.msk.bf16.gmra.mrb[0].mxu1 %vm737_vm2, %v3093_v21  ;;  %v2710_v13 = vmax.f32 %v2630_v6, %v2670_v33  ;;  %v2672_v50 = vld [vmem:[#allocation2 + $0x247] sm:$0xff] }
 0x213   : > { %v3072_v63 = vmax.f32 %v3040_v59, %v5420_v62  ;;  %v2826_v23 = vld [vmem:[#allocation2 + $0x1e9] sm:$0xff]  ;;  %v2827_v5 = vld [vmem:[#allocation2 + $0x1f1] sm:$0xff]  ;;  %v2709_v38 = vmax.f32 %v2629_v43, %v2669_v35  ;;  %v3073_v30 = vmax.f32 %v3041_v25, %v5426_v0  ;;  %v3042_v40 = vmax.f32 %v3010_v29, %v5420_v62 }
 0x214   : > { %v2866_v49 = vmax.f32 %v2786_v46, %v2826_v23  ;;  %v2867_v51 = vmax.f32 %v2787_v22, %v2827_v5  ;;  %v2906_v15 = vld [vmem:[#allocation2 + $0x1ea] sm:$0xff]  ;;  %v3043_v48 = vmax.f32 %v3011_v55, %v5426_v0  ;;  %v3012_v31 = vmax.f32 %v2980_v1, %v5420_v62  ;;  %v2909_v39 = vld [vmem:[#allocation2 + $0x212] sm:$0xff] }
 0x215   : > { %v2748_v56 = vld [vmem:[#allocation2 + $0x208] sm:$0xff]  ;;  %v2749_v27 = vld [vmem:[#allocation2 + $0x210] sm:$0xff]  ;;  %v3094_v17 = vpack.c.bf16 %v3073_v30, %v3072_v63  ;;  %v3013_v2 = vmax.f32 %v2981_v26, %v5426_v0  ;;  %v2982_v18 = vmax.f32 %v5406_v44, %v5420_v62  ;;  %v2983_v35 = vmax.f32 %v5411_v9, %v5426_v0 }
 0x216   : > { %v5439_v14 = vmax.f32 %v2866_v49, %v2906_v15  ;;  %v5441_v45 = vmax.f32 %v2867_v51, %v2907_v36  ;;  %v2788_v20 = vmax.f32 %v2708_v37, %v2748_v56  ;;  %v2789_v57 = vmax.f32 %v2709_v38, %v2749_v27  ;;  %v2631_v47 = vld [vmem:[#allocation2 + $0x22e] sm:$0xff]  ;;  %v2634_v36 = vld [vmem:[#allocation2 + $0x266] sm:$0xff] }
 0x217   : > { %v2671_v42 = vld [vmem:[#allocation2 + $0x22f] sm:$0xff]  ;;  %3990 = vmatprep.mubr.msk.bf16.mxu1 %vm737_vm2, %v3094_v17  ;;  %v2712_v5 = vmax.f32 %v2632_v16, %v2672_v50  ;;  %v2674_v27 = vld [vmem:[#allocation2 + $0x267] sm:$0xff] }
 0x218   : > { %v2828_v53 = vld [vmem:[#allocation2 + $0x209] sm:$0xff]  ;;  %v2829_v58 = vld [vmem:[#allocation2 + $0x211] sm:$0xff]  ;;  %v3074_v7 = vmax.f32 %v3042_v40, %v5439_v14  ;;  %v3075_v32 = vmax.f32 %v3043_v48, %v5441_v45  ;;  %v3044_v12 = vmax.f32 %v3012_v31, %v5439_v14  ;;  %v2711_v19 = vmax.f32 %v2631_v47, %v2671_v42 }
 0x219   : > { %v2868_v4 = vmax.f32 %v2788_v20, %v2828_v53  ;;  %v2869_v28 = vmax.f32 %v2789_v57, %v2829_v58  ;;  %v2908_v24 = vld [vmem:[#allocation2 + $0x20a] sm:$0xff]  ;;  %v3045_v54 = vmax.f32 %v3013_v2, %v5441_v45  ;;  %v3014_v23 = vmax.f32 %v2982_v18, %v5439_v14  ;;  %v2911_v38 = vld [vmem:[#allocation2 + $0x232] sm:$0xff] }
 0x21a   : > { %v2750_v41 = vld [vmem:[#allocation2 + $0x228] sm:$0xff]  ;;  %v2751_v60 = vld [vmem:[#allocation2 + $0x230] sm:$0xff]  ;;  %v3095_v59 = vpack.c.bf16 %v3075_v32, %v3074_v7  ;;  %v3015_v15 = vmax.f32 %v2983_v35, %v5441_v45  ;;  %v2984_v40 = vmax.f32 %v5420_v62, %v5439_v14  ;;  %v2985_v53 = vmax.f32 %v5426_v0, %v5441_v45 }
 0x21b   : > { %v5452_v61 = vmax.f32 %v2868_v4, %v2908_v24  ;;  %v5454_v11 = vmax.f32 %v2869_v28, %v2909_v39  ;;  %v2790_v10 = vmax.f32 %v2710_v13, %v2750_v41  ;;  %v2633_v34 = vld [vmem:[#allocation2 + $0x24e] sm:$0xff]  ;;  %v2791_v43 = vmax.f32 %v2711_v19, %v2751_v60 }
 0x21c   : > { %v2673_v8 = vld [vmem:[#allocation2 + $0x24f] sm:$0xff]  ;;  %3991 = vmatmul.mubr.msk.bf16.gmra.mrb[4].mxu1 %vm737_vm2, %v3095_v59  ;;  %v2714_v4 = vmax.f32 %v2634_v36, %v2674_v27 }
 0x21d   : > { %v2830_v52 = vld [vmem:[#allocation2 + $0x229] sm:$0xff]  ;;  %v3076_v22 = vmax.f32 %v3044_v12, %v5452_v61  ;;  %v2831_v25 = vld [vmem:[#allocation2 + $0x231] sm:$0xff]  ;;  %v3077_v29 = vmax.f32 %v3045_v54, %v5454_v11  ;;  %v2713_v9 = vmax.f32 %v2633_v34, %v2673_v8  ;;  %v3046_v30 = vmax.f32 %v3014_v23, %v5452_v61 }
 0x21e   : > { %v2752_v21 = vld [vmem:[#allocation2 + $0x248] sm:$0xff]  ;;  %v2753_v46 = vld [vmem:[#allocation2 + $0x250] sm:$0xff]  ;;  %v2870_v63 = vmax.f32 %v2790_v10, %v2830_v52  ;;  %v2871_v49 = vmax.f32 %v2791_v43, %v2831_v25  ;;  %v3047_v20 = vmax.f32 %v3015_v15, %v5454_v11  ;;  %v3016_v58 = vmax.f32 %v2984_v40, %v5452_v61 }
 0x21f   : > { %v2832_v44 = vld [vmem:[#allocation2 + $0x249] sm:$0xff]  ;;  %v2833_v3 = vld [vmem:[#allocation2 + $0x251] sm:$0xff]  ;;  %v2792_v55 = vmax.f32 %v2712_v5, %v2752_v21  ;;  %v3096_v6 = vpack.c.bf16 %v3077_v29, %v3076_v22  ;;  %v2793_v57 = vmax.f32 %v2713_v9, %v2753_v46  ;;  %v3017_v16 = vmax.f32 %v2985_v53, %v5454_v11 }
 0x220   : > { %v2910_v51 = vld [vmem:[#allocation2 + $0x22a] sm:$0xff]  ;;  %v2951_v33 = vmax.f32 %v2871_v49, %v2911_v38  ;;  %v2913_v48 = vld [vmem:[#allocation2 + $0x252] sm:$0xff]  ;;  %v2986_v39 = vmax.f32 %v5439_v14, %v5452_v61  ;;  %v2987_v18 = vmax.f32 %v5441_v45, %v5454_v11 }
 0x221   : > { %v2635_v37 = vld [vmem:[#allocation2 + $0x26e] sm:$0xff]  ;;  %v2950_v56 = vmax.f32 %v2870_v63, %v2910_v51  ;;  %v2872_v17 = vmax.f32 %v2792_v55, %v2832_v44  ;;  %3994 = vmatprep.mubr.msk.bf16.mxu1 %vm737_vm2, %v3096_v6  ;;  %v2873_v7 = vmax.f32 %v2793_v57, %v2833_v3 }
 0x222   : > { %v2675_v1 = vld [vmem:[#allocation2 + $0x26f] sm:$0xff]  ;;  %v3079_v62 = vmax.f32 %v3047_v20, %v2951_v33  ;;  %v3049_v41 = vmax.f32 %v3017_v16, %v2951_v33  ;;  %v3019_v52 = vmax.f32 %v2987_v18, %v2951_v33 }
 0x223   : > { %v2912_v47 = vld [vmem:[#allocation2 + $0x24a] sm:$0xff]  ;;  %v3078_v42 = vmax.f32 %v3046_v30, %v2950_v56  ;;  %v2715_v28 = vmax.f32 %v2635_v37, %v2675_v1  ;;  %v3048_v50 = vmax.f32 %v3016_v58, %v2950_v56  ;;  %v2953_v2 = vmax.f32 %v2873_v7, %v2913_v48  ;;  %v2915_v10 = vld [vmem:[#allocation2 + $0x272] sm:$0xff]  ;;  %v5533_v7 = vld [vmem:[%s5668_s4] ss:$0 sm:$0xff] }
 0x224   : > { %v2754_v26 = vld [vmem:[#allocation2 + $0x268] sm:$0xff]  ;;  %v2755_v31 = vld [vmem:[#allocation2 + $0x270] sm:$0xff]  ;;  %v2952_v13 = vmax.f32 %v2872_v17, %v2912_v47  ;;  %v3018_v34 = vmax.f32 %v2986_v39, %v2950_v56 }
 0x225   : > { %v2834_v32 = vld [vmem:[#allocation2 + $0x269] sm:$0xff]  ;;  %v2835_v24 = vld [vmem:[#allocation2 + $0x271] sm:$0xff]  ;;  %v3097_v0 = vpack.c.bf16 %v3079_v62, %v3078_v42  ;;  %v2794_v12 = vmax.f32 %v2714_v4, %v2754_v26  ;;  %v2795_v19 = vmax.f32 %v2715_v28, %v2755_v31  ;;  %v3081_v43 = vmax.f32 %v3049_v41, %v2953_v2 }
 0x226   : > { %v2914_v60 = vld [vmem:[#allocation2 + $0x26a] sm:$0xff]  ;;  %v3080_v54 = vmax.f32 %v3048_v50, %v2952_v13  ;;  %v3050_v35 = vmax.f32 %v3018_v34, %v2952_v13  ;;  %v3051_v46 = vmax.f32 %v3019_v52, %v2953_v2 }
 0x227   : > { %3995 = vmatmul.mubr.msk.bf16.gmra.mrb[8].mxu1 %vm737_vm2, %v3097_v0  ;;  %v2874_v8 = vmax.f32 %v2794_v12, %v2834_v32  ;;  %v2875_v59 = vmax.f32 %v2795_v19, %v2835_v24 }
 0x228   : > { %v3098_v21 = vpack.c.bf16 %v3081_v43, %v3080_v54 }
 0x229   : > { %v2954_v14 = vmax.f32 %v2874_v8, %v2914_v60  ;;  %v2955_v61 = vmax.f32 %v2875_v59, %v2915_v10 }
 0x22a   : > { %3998 = vmatprep.mubr.msk.bf16.mxu1 %vm737_vm2, %v3098_v21 }
 0x22b   : > { %v3082_v22 = vmax.f32 %v3050_v35, %v2954_v14  ;;  %v3083_v25 = vmax.f32 %v3051_v46, %v2955_v61 }
 0x22d   : > { %v3099_v63 = vpack.c.bf16 %v3083_v25, %v3082_v22 }
 0x22f   : > { %3999 = vmatmul.mubr.msk.bf16.gmra.mrb[12].mxu1 %vm737_vm2, %v3099_v63 }
 0x23b   : > { %v5482_v45 = vpop.f32.mrb[48].mxu0 }
 0x23c   : > { %v5484_v11 = vpop.f32.mrb[49].mxu0 }
 0x23d   : > { %v5486_v23 = vpop.f32.mrb[50].mxu0 }
 0x23e   : > { %v5488_v5 = vpop.f32.mrb[51].mxu0 }
 0x251   : > { %v5490_v44 = vpop.f32.mrb[52].mxu0 }
 0x252   : > { %v5492_v3 = vpop.f32.mrb[53].mxu0 }
 0x253   : > { %v5494_v29 = vpop.f32.mrb[54].mxu0 }
 0x254   : > { %v5496_v49 = vpop.f32.mrb[55].mxu0 }
 0x265   : > { %v5498_v51 = vpop.f32.mrb[56].mxu0 }
 0x266   : > { %v5500_v15 = vpop.f32.mrb[57].mxu0 }
 0x267   : > { %v5502_v9 = vpop.f32.mrb[58].mxu0 }
 0x268   : > { %v5504_v36 = vpop.f32.mrb[59].mxu0 }
 0x279   : > { %v5506_v37 = vpop.f32.mrb[60].mxu0 }
 0x27a   : > { %v5508_v38 = vpop.f32.mrb[61].mxu0 }
 0x27b   : > { %v5510_v56 = vpop.f32.mrb[62].mxu0 }
 0x27c   : > { %v5512_v30 = vpop.f32.mrb[63].mxu0 }
 0x281   : > { %v3904_v55 = vpop.f32.mrb[32].mxu0 }
 0x282   : > { %v1655_v40 = vpop.f32.mrb[33].mxu0 }
 0x283   : > { %v3905_v27 = vpop.f32.mrb[34].mxu0 }
 0x284   : > { %v1658_v1 = vpop.f32.mrb[35].mxu0 }
 0x28a   : > { %v3908_v6 = vpop.f32.mrb[36].mxu0 }
 0x28b   : > { %v1671_v33 = vpop.f32.mrb[37].mxu0 }
 0x28c   : > { %v3909_v20 = vpop.f32.mrb[38].mxu0 }
 0x28d   : > { %v1674_v57 = vpop.f32.mrb[39].mxu0 }
 0x294   : > { %v5514_v47 = vpop.f32.mrb[40].mxu0 }
 0x295   : > { %v5516_v42 = vpop.f32.mrb[41].mxu0 }
 0x296   : > { %v5518_v17 = vpop.f32.mrb[42].mxu0 }
 0x297   : > { %v5520_v48 = vpop.f32.mrb[43].mxu0 }
 0x2a7   : > { %v5522_v53 = vpop.f32.mrb[44].mxu0 }
 0x2a8   : > { %v5524_v58 = vpop.f32.mrb[45].mxu0 }
 0x2a9   : > { %v5526_v26 = vpop.f32.mrb[46].mxu0 }
 0x2aa   : > { %v5528_v31 = vpop.f32.mrb[47].mxu0 }
 0x2be   : > { %v3972_v62 = vpop.f32.mrb[16].mxu1 }
 0x2bf   : > { %v4004_v4 = vadd.f32 %v3972_v62, %v3904_v55  ;;  %v3187_v28 = vpop.f32.mrb[17].mxu1 }
 0x2c0   : > { %v4005_v13 = vadd.f32 %v3187_v28, %v1655_v40  ;;  %v3973_v16 = vpop.f32.mrb[18].mxu1 }
 0x2c1   : > { %v3355_v50 = vadd.f32 %v4004_v4, %v5533_v7  ;;  %v4006_v32 = vadd.f32 %v3973_v16, %v3905_v27  ;;  %v3190_v24 = vpop.f32.mrb[19].mxu1 }
 0x2c2   : > { %v3353_v39 = vadd.f32 %v4005_v13, %v5533_v7  ;;  %v4007_v0 = vadd.f32 %v3190_v24, %v1658_v1 }
 0x2c3   : > { %v3387_v2 = vadd.f32 3.0, %v3355_v50  ;;  %v3356_v12 = vadd.f32 %v4006_v32, %v5533_v7 }
 0x2c4   : > { %v3385_v19 = vadd.f32 3.0, %v3353_v39  ;;  %v3354_v41 = vadd.f32 %v4007_v0, %v5533_v7 }
 0x2c5   : > { %v3419_v60 = vmax.f32 %v3387_v2, 0.0  ;;  %v3388_v10 = vadd.f32 3.0, %v3356_v12 }
 0x2c6   : > { %v3417_v18 = vmax.f32 %v3385_v19, 0.0  ;;  %v3386_v34 = vadd.f32 3.0, %v3354_v41 }
 0x2c7   : > { %v3976_v8 = vpop.f32.mrb[20].mxu1  ;;  %v3451_v59 = vmin.f32 %v3419_v60, 6.0  ;;  %v3420_v54 = vmax.f32 %v3388_v10, 0.0 }
 0x2c8   : > { %v4008_v43 = vadd.f32 %v3976_v8, %v3908_v6  ;;  %v3203_v52 = vpop.f32.mrb[21].mxu1  ;;  %v3449_v35 = vmin.f32 %v3417_v18, 6.0  ;;  %v3418_v14 = vmax.f32 %v3386_v34, 0.0 }
 0x2c9   : > { %v4009_v61 = vadd.f32 %v3203_v52, %v1671_v33  ;;  %v3977_v21 = vpop.f32.mrb[22].mxu1  ;;  %v3483_v46 = vmul.f32 %v3451_v59, %v3355_v50  ;;  %v3452_v22 = vmin.f32 %v3420_v54, 6.0 }
 0x2ca   : > { %v3359_v25 = vadd.f32 %v4008_v43, %v5533_v7  ;;  %v4010_v63 = vadd.f32 %v3977_v21, %v3909_v20  ;;  %v3206_v55 = vpop.f32.mrb[23].mxu1  ;;  %v3481_v40 = vmul.f32 %v3449_v35, %v3353_v39  ;;  %v3450_v27 = vmin.f32 %v3418_v14, 6.0 }
 0x2cb   : > { %v3357_v1 = vadd.f32 %v4009_v61, %v5533_v7  ;;  %v4011_v6 = vadd.f32 %v3206_v55, %v1674_v57  ;;  %v3515_v33 = vmul.f32 0.16666667, %v3483_v46  ;;  %v3484_v62 = vmul.f32 %v3452_v22, %v3356_v12 }
 0x2cc   : > { %v3391_v4 = vadd.f32 3.0, %v3359_v25  ;;  %v3360_v28 = vadd.f32 %v4010_v63, %v5533_v7  ;;  %v3513_v20 = vmul.f32 0.16666667, %v3481_v40  ;;  %v3482_v13 = vmul.f32 %v3450_v27, %v3354_v41 }
 0x2cd   : > { %v3389_v16 = vadd.f32 3.0, %v3357_v1  ;;  %v3358_v50 = vadd.f32 %v4011_v6, %v5533_v7  ;;  %3548 = vst.msk [vmem:[%s5544_s16 + $0x10] sm:$0xff] %vm3545_vm4, %v3515_v33  ;;  %v3516_v32 = vmul.f32 0.16666667, %v3484_v62 }
 0x2ce   : > { %v3423_v24 = vmax.f32 %v3391_v4, 0.0  ;;  %v3392_v39 = vadd.f32 3.0, %v3360_v28  ;;  %3546 = vst.msk [vmem:[%s5544_s16] sm:$0xff] %vm3545_vm4, %v3513_v20  ;;  %v3514_v57 = vmul.f32 0.16666667, %v3482_v13 }
 0x2cf   : > { %v3421_v0 = vmax.f32 %v3389_v16, 0.0  ;;  %v3390_v2 = vadd.f32 3.0, %v3358_v50  ;;  %3549 = vst.msk [vmem:[%s5544_s16 + $0x18] sm:$0xff] %vm3545_vm4, %v3516_v32 }
 0x2d0   : > { %v3455_v19 = vmin.f32 %v3423_v24, 6.0  ;;  %v3424_v60 = vmax.f32 %v3392_v39, 0.0  ;;  %3547 = vst.msk [vmem:[%s5544_s16 + $0x8] sm:$0xff] %vm3545_vm4, %v3514_v57 }
 0x2d1   : > { %v3980_v12 = vpop.f32.mrb[24].mxu1  ;;  %v3453_v18 = vmin.f32 %v3421_v0, 6.0  ;;  %v3422_v34 = vmax.f32 %v3390_v2, 0.0 }
 0x2d2   : > { %v4012_v41 = vadd.f32 %v3980_v12, %v5514_v47  ;;  %v3219_v10 = vpop.f32.mrb[25].mxu1  ;;  %v3487_v54 = vmul.f32 %v3455_v19, %v3359_v25  ;;  %v3456_v43 = vmin.f32 %v3424_v60, 6.0 }
 0x2d3   : > { %v4013_v8 = vadd.f32 %v3219_v10, %v5516_v42  ;;  %v3981_v59 = vpop.f32.mrb[26].mxu1  ;;  %v3485_v61 = vmul.f32 %v3453_v18, %v3357_v1  ;;  %v3454_v21 = vmin.f32 %v3422_v34, 6.0 }
 0x2d4   : > { %v3363_v52 = vadd.f32 %v4012_v41, %v5533_v7  ;;  %v4014_v35 = vadd.f32 %v3981_v59, %v5518_v17  ;;  %v3222_v14 = vpop.f32.mrb[27].mxu1  ;;  %v3519_v22 = vmul.f32 0.16666667, %v3487_v54  ;;  %v3488_v63 = vmul.f32 %v3456_v43, %v3360_v28 }
 0x2d5   : > { %v3361_v47 = vadd.f32 %v4013_v8, %v5533_v7  ;;  %v4015_v46 = vadd.f32 %v3222_v14, %v5520_v48  ;;  %v3517_v55 = vmul.f32 0.16666667, %v3485_v61  ;;  %v3486_v40 = vmul.f32 %v3454_v21, %v3358_v50 }
 0x2d6   : > { %v3395_v42 = vadd.f32 3.0, %v3363_v52  ;;  %v3364_v25 = vadd.f32 %v4014_v35, %v5533_v7  ;;  %3552 = vst.msk [vmem:[%s5544_s16 + $0x30] sm:$0xff] %vm3545_vm4, %v3519_v22  ;;  %v3520_v1 = vmul.f32 0.16666667, %v3488_v63 }
 0x2d7   : > { %v3393_v27 = vadd.f32 3.0, %v3361_v47  ;;  %v3362_v17 = vadd.f32 %v4015_v46, %v5533_v7  ;;  %3550 = vst.msk [vmem:[%s5544_s16 + $0x20] sm:$0xff] %vm3545_vm4, %v3517_v55  ;;  %v3518_v48 = vmul.f32 0.16666667, %v3486_v40 }
 0x2d8   : > { %v3427_v6 = vmax.f32 %v3395_v42, 0.0  ;;  %v3396_v33 = vadd.f32 3.0, %v3364_v25  ;;  %3553 = vst.msk [vmem:[%s5544_s16 + $0x38] sm:$0xff] %vm3545_vm4, %v3520_v1 }
 0x2d9   : > { %v3425_v62 = vmax.f32 %v3393_v27, 0.0  ;;  %v3394_v4 = vadd.f32 3.0, %v3362_v17  ;;  %3551 = vst.msk [vmem:[%s5544_s16 + $0x28] sm:$0xff] %vm3545_vm4, %v3518_v48 }
 0x2da   : > { %v3459_v28 = vmin.f32 %v3427_v6, 6.0  ;;  %v3428_v20 = vmax.f32 %v3396_v33, 0.0 }
 0x2db   : > { %v3984_v13 = vpop.f32.mrb[28].mxu1  ;;  %v3457_v16 = vmin.f32 %v3425_v62, 6.0  ;;  %v3426_v50 = vmax.f32 %v3394_v4, 0.0 }
 0x2dc   : > { %v4016_v32 = vadd.f32 %v3984_v13, %v5522_v53  ;;  %v3235_v24 = vpop.f32.mrb[29].mxu1  ;;  %v3491_v39 = vmul.f32 %v3459_v28, %v3363_v52  ;;  %v3460_v57 = vmin.f32 %v3428_v20, 6.0 }
 0x2dd   : > { %v4017_v0 = vadd.f32 %v3235_v24, %v5524_v58  ;;  %v3985_v2 = vpop.f32.mrb[30].mxu1  ;;  %v3489_v12 = vmul.f32 %v3457_v16, %v3361_v47  ;;  %v3458_v19 = vmin.f32 %v3426_v50, 6.0 }
 0x2de   : > { %v3367_v60 = vadd.f32 %v4016_v32, %v5533_v7  ;;  %v4018_v41 = vadd.f32 %v3985_v2, %v5526_v26  ;;  %v3238_v10 = vpop.f32.mrb[31].mxu1  ;;  %v3523_v18 = vmul.f32 0.16666667, %v3491_v39  ;;  %v3492_v34 = vmul.f32 %v3460_v57, %v3364_v25 }
 0x2df   : > { %v3365_v53 = vadd.f32 %v4017_v0, %v5533_v7  ;;  %v4019_v8 = vadd.f32 %v3238_v10, %v5528_v31  ;;  %v3521_v59 = vmul.f32 0.16666667, %v3489_v12  ;;  %v3490_v54 = vmul.f32 %v3458_v19, %v3362_v17 }
 0x2e0   : > { %v3399_v58 = vadd.f32 3.0, %v3367_v60  ;;  %v3368_v43 = vadd.f32 %v4018_v41, %v5533_v7  ;;  %3556 = vst.msk [vmem:[%s5544_s16 + $0x50] sm:$0xff] %vm3545_vm4, %v3523_v18  ;;  %v3524_v52 = vmul.f32 0.16666667, %v3492_v34 }
 0x2e1   : > { %v3397_v35 = vadd.f32 3.0, %v3365_v53  ;;  %v3366_v26 = vadd.f32 %v4019_v8, %v5533_v7  ;;  %3554 = vst.msk [vmem:[%s5544_s16 + $0x40] sm:$0xff] %vm3545_vm4, %v3521_v59  ;;  %v3522_v14 = vmul.f32 0.16666667, %v3490_v54 }
 0x2e2   : > { %v3431_v61 = vmax.f32 %v3399_v58, 0.0  ;;  %v3400_v21 = vadd.f32 3.0, %v3368_v43  ;;  %3557 = vst.msk [vmem:[%s5544_s16 + $0x58] sm:$0xff] %vm3545_vm4, %v3524_v52 }
 0x2e3   : > { %v3429_v31 = vmax.f32 %v3397_v35, 0.0  ;;  %v3398_v47 = vadd.f32 3.0, %v3366_v26  ;;  %3555 = vst.msk [vmem:[%s5544_s16 + $0x48] sm:$0xff] %vm3545_vm4, %v3522_v14 }
 0x2e4   : > { %v3463_v22 = vmin.f32 %v3431_v61, 6.0  ;;  %v3432_v63 = vmax.f32 %v3400_v21, 0.0 }
 0x2e5   : > { %v3988_v46 = vpop.f32.mrb[0].mxu1  ;;  %v3461_v55 = vmin.f32 %v3429_v31, 6.0  ;;  %v3430_v40 = vmax.f32 %v3398_v47, 0.0 }
 0x2e6   : > { %v4020_v42 = vadd.f32 %v3988_v46, %v5482_v45  ;;  %v3251_v25 = vpop.f32.mrb[1].mxu1  ;;  %v3495_v1 = vmul.f32 %v3463_v22, %v3367_v60  ;;  %v3464_v6 = vmin.f32 %v3432_v63, 6.0 }
 0x2e7   : > { %v4021_v27 = vadd.f32 %v3251_v25, %v5484_v11  ;;  %v3989_v17 = vpop.f32.mrb[2].mxu1  ;;  %v3493_v4 = vmul.f32 %v3461_v55, %v3365_v53  ;;  %v3462_v28 = vmin.f32 %v3430_v40, 6.0 }
 0x2e8   : > { %v3371_v33 = vadd.f32 %v4020_v42, %v5533_v7  ;;  %v4022_v48 = vadd.f32 %v3989_v17, %v5486_v23  ;;  %v3254_v62 = vpop.f32.mrb[3].mxu1  ;;  %v3527_v13 = vmul.f32 0.16666667, %v3495_v1  ;;  %v3496_v16 = vmul.f32 %v3464_v6, %v3368_v43 }
 0x2e9   : > { %v3369_v20 = vadd.f32 %v4021_v27, %v5533_v7  ;;  %v4023_v45 = vadd.f32 %v3254_v62, %v5488_v5  ;;  %v3525_v32 = vmul.f32 0.16666667, %v3493_v4  ;;  %v3494_v24 = vmul.f32 %v3462_v28, %v3366_v26 }
 0x2ea   : > { %v3403_v11 = vadd.f32 3.0, %v3371_v33  ;;  %v3372_v50 = vadd.f32 %v4022_v48, %v5533_v7  ;;  %3560 = vst.msk [vmem:[%s5544_s16 + $0x70] sm:$0xff] %vm3545_vm4, %v3527_v13  ;;  %v3528_v57 = vmul.f32 0.16666667, %v3496_v16 }
 0x2eb   : > { %v3401_v39 = vadd.f32 3.0, %v3369_v20  ;;  %v3370_v23 = vadd.f32 %v4023_v45, %v5533_v7  ;;  %3558 = vst.msk [vmem:[%s5544_s16 + $0x60] sm:$0xff] %vm3545_vm4, %v3525_v32  ;;  %v3526_v5 = vmul.f32 0.16666667, %v3494_v24 }
 0x2ec   : > { %v3435_v0 = vmax.f32 %v3403_v11, 0.0  ;;  %v3404_v2 = vadd.f32 3.0, %v3372_v50  ;;  %3561 = vst.msk [vmem:[%s5544_s16 + $0x78] sm:$0xff] %vm3545_vm4, %v3528_v57 }
 0x2ed   : > { %v3433_v12 = vmax.f32 %v3401_v39, 0.0  ;;  %v3402_v19 = vadd.f32 3.0, %v3370_v23  ;;  %3559 = vst.msk [vmem:[%s5544_s16 + $0x68] sm:$0xff] %vm3545_vm4, %v3526_v5 }
 0x2ee   : > { %v3467_v60 = vmin.f32 %v3435_v0, 6.0  ;;  %v3436_v41 = vmax.f32 %v3404_v2, 0.0 }
 0x2ef   : > { %v3992_v10 = vpop.f32.mrb[4].mxu1  ;;  %v3465_v18 = vmin.f32 %v3433_v12, 6.0  ;;  %v3434_v34 = vmax.f32 %v3402_v19, 0.0 }
 0x2f0   : > { %v4024_v53 = vadd.f32 %v3992_v10, %v5490_v44  ;;  %v3267_v8 = vpop.f32.mrb[5].mxu1  ;;  %v3499_v59 = vmul.f32 %v3467_v60, %v3371_v33  ;;  %v3468_v54 = vmin.f32 %v3436_v41, 6.0 }
 0x2f1   : > { %v4025_v58 = vadd.f32 %v3267_v8, %v5492_v3  ;;  %v3993_v43 = vpop.f32.mrb[6].mxu1  ;;  %v3497_v52 = vmul.f32 %v3465_v18, %v3369_v20  ;;  %v3466_v35 = vmin.f32 %v3434_v34, 6.0 }
 0x2f2   : > { %v3375_v26 = vadd.f32 %v4024_v53, %v5533_v7  ;;  %v4026_v14 = vadd.f32 %v3993_v43, %v5494_v29  ;;  %v3270_v61 = vpop.f32.mrb[7].mxu1  ;;  %v3531_v21 = vmul.f32 0.16666667, %v3499_v59  ;;  %v3500_v31 = vmul.f32 %v3468_v54, %v3372_v50 }
 0x2f3   : > { %v3373_v44 = vadd.f32 %v4025_v58, %v5533_v7  ;;  %v4027_v47 = vadd.f32 %v3270_v61, %v5496_v49  ;;  %v3529_v46 = vmul.f32 0.16666667, %v3497_v52  ;;  %v3498_v22 = vmul.f32 %v3466_v35, %v3370_v23 }
 0x2f4   : > { %v3407_v3 = vadd.f32 3.0, %v3375_v26  ;;  %v3376_v63 = vadd.f32 %v4026_v14, %v5533_v7  ;;  %3564 = vst.msk [vmem:[%s5544_s16 + $0x90] sm:$0xff] %vm3545_vm4, %v3531_v21  ;;  %v3532_v42 = vmul.f32 0.16666667, %v3500_v31 }
 0x2f5   : > { %v3405_v25 = vadd.f32 3.0, %v3373_v44  ;;  %v3374_v29 = vadd.f32 %v4027_v47, %v5533_v7  ;;  %3562 = vst.msk [vmem:[%s5544_s16 + $0x80] sm:$0xff] %vm3545_vm4, %v3529_v46  ;;  %v3530_v55 = vmul.f32 0.16666667, %v3498_v22 }
 0x2f6   : > { %v3439_v40 = vmax.f32 %v3407_v3, 0.0  ;;  %v3408_v27 = vadd.f32 3.0, %v3376_v63  ;;  %3565 = vst.msk [vmem:[%s5544_s16 + $0x98] sm:$0xff] %vm3545_vm4, %v3532_v42 }
 0x2f7   : > { %v3437_v49 = vmax.f32 %v3405_v25, 0.0  ;;  %v3406_v17 = vadd.f32 3.0, %v3374_v29  ;;  %3563 = vst.msk [vmem:[%s5544_s16 + $0x88] sm:$0xff] %vm3545_vm4, %v3530_v55 }
 0x2f8   : > { %v3471_v6 = vmin.f32 %v3439_v40, 6.0  ;;  %v3440_v33 = vmax.f32 %v3408_v27, 0.0 }
 0x2f9   : > { %v3469_v4 = vmin.f32 %v3437_v49, 6.0  ;;  %v3438_v28 = vmax.f32 %v3406_v17, 0.0 }
 0x2fa   : > { %v3996_v1 = vpop.f32.mrb[8].mxu1  ;;  %v3503_v13 = vmul.f32 %v3471_v6, %v3375_v26  ;;  %v3472_v16 = vmin.f32 %v3440_v33, 6.0 }
 0x2fb   : > { %v4028_v48 = vadd.f32 %v3996_v1, %v5498_v51  ;;  %v3283_v62 = vpop.f32.mrb[9].mxu1  ;;  %v3501_v24 = vmul.f32 %v3469_v4, %v3373_v44  ;;  %v3470_v39 = vmin.f32 %v3438_v28, 6.0 }
 0x2fc   : > { %v4029_v20 = vadd.f32 %v3283_v62, %v5500_v15  ;;  %v3997_v45 = vpop.f32.mrb[10].mxu1  ;;  %v3535_v57 = vmul.f32 0.16666667, %v3503_v13  ;;  %v3504_v0 = vmul.f32 %v3472_v16, %v3376_v63 }
 0x2fd   : > { %v3379_v11 = vadd.f32 %v4028_v48, %v5533_v7  ;;  %v4030_v50 = vadd.f32 %v3997_v45, %v5502_v9  ;;  %v3286_v32 = vpop.f32.mrb[11].mxu1  ;;  %v3533_v5 = vmul.f32 0.16666667, %v3501_v24  ;;  %v3502_v12 = vmul.f32 %v3470_v39, %v3374_v29 }
 0x2fe   : > { %v3377_v23 = vadd.f32 %v4029_v20, %v5533_v7  ;;  %v4031_v51 = vadd.f32 %v3286_v32, %v5504_v36  ;;  %3568 = vst.msk [vmem:[%s5544_s16 + $0xb0] sm:$0xff] %vm3545_vm4, %v3535_v57  ;;  %v3536_v60 = vmul.f32 0.16666667, %v3504_v0 }
 0x2ff   : > { %v3411_v15 = vadd.f32 3.0, %v3379_v11  ;;  %v3380_v2 = vadd.f32 %v4030_v50, %v5533_v7  ;;  %3566 = vst.msk [vmem:[%s5544_s16 + $0xa0] sm:$0xff] %vm3545_vm4, %v3533_v5  ;;  %v3534_v36 = vmul.f32 0.16666667, %v3502_v12 }
 0x300   : > { %v3409_v19 = vadd.f32 3.0, %v3377_v23  ;;  %v3378_v9 = vadd.f32 %v4031_v51, %v5533_v7  ;;  %3569 = vst.msk [vmem:[%s5544_s16 + $0xb8] sm:$0xff] %vm3545_vm4, %v3536_v60 }
 0x301   : > { %v3443_v41 = vmax.f32 %v3411_v15, 0.0  ;;  %v3412_v10 = vadd.f32 3.0, %v3380_v2  ;;  %3567 = vst.msk [vmem:[%s5544_s16 + $0xa8] sm:$0xff] %vm3545_vm4, %v3534_v36 }
 0x302   : > { %v3441_v18 = vmax.f32 %v3409_v19, 0.0  ;;  %v3410_v34 = vadd.f32 3.0, %v3378_v9  ;;  %v4000_v59 = vpop.f32.mrb[12].mxu1 }
 0x303   : > { %v3475_v53 = vmin.f32 %v3443_v41, 6.0  ;;  %v3444_v8 = vmax.f32 %v3412_v10, 0.0  ;;  %v4032_v43 = vadd.f32 %v4000_v59, %v5506_v37  ;;  %v3299_v52 = vpop.f32.mrb[13].mxu1 }
 0x304   : > { %v3473_v54 = vmin.f32 %v3441_v18, 6.0  ;;  %v3442_v58 = vmax.f32 %v3410_v34, 0.0  ;;  %v4033_v14 = vadd.f32 %v3299_v52, %v5508_v38  ;;  %v4001_v61 = vpop.f32.mrb[14].mxu1 }
 0x305   : > { %v3507_v35 = vmul.f32 %v3475_v53, %v3379_v11  ;;  %v3476_v26 = vmin.f32 %v3444_v8, 6.0  ;;  %v3383_v44 = vadd.f32 %v4032_v43, %v5533_v7  ;;  %v4034_v47 = vadd.f32 %v4001_v61, %v5510_v56  ;;  %v3302_v46 = vpop.f32.mrb[15].mxu1 }
 0x306   : > { %v3505_v21 = vmul.f32 %v3473_v54, %v3377_v23  ;;  %v3474_v31 = vmin.f32 %v3442_v58, 6.0  ;;  %v3381_v37 = vadd.f32 %v4033_v14, %v5533_v7  ;;  %v4035_v63 = vadd.f32 %v3302_v46, %v5512_v30 }
 0x307   : > { %v3539_v22 = vmul.f32 0.16666667, %v3507_v35  ;;  %v3508_v3 = vmul.f32 %v3476_v26, %v3380_v2  ;;  %v3415_v38 = vadd.f32 3.0, %v3383_v44  ;;  %v3384_v29 = vadd.f32 %v4034_v47, %v5533_v7 }
 0x308   : > { %v3537_v42 = vmul.f32 0.16666667, %v3505_v21  ;;  %v3506_v25 = vmul.f32 %v3474_v31, %v3378_v9  ;;  %v3413_v40 = vadd.f32 3.0, %v3381_v37  ;;  %v3382_v56 = vadd.f32 %v4035_v63, %v5533_v7 }
 0x309   : > { %3572 = vst.msk [vmem:[%s5544_s16 + $0xd0] sm:$0xff] %vm3545_vm4, %v3539_v22  ;;  %v3540_v55 = vmul.f32 0.16666667, %v3508_v3  ;;  %v3447_v49 = vmax.f32 %v3415_v38, 0.0  ;;  %v3416_v17 = vadd.f32 3.0, %v3384_v29 }
 0x30a   : > { %3570 = vst.msk [vmem:[%s5544_s16 + $0xc0] sm:$0xff] %vm3545_vm4, %v3537_v42  ;;  %v3538_v27 = vmul.f32 0.16666667, %v3506_v25  ;;  %v3445_v30 = vmax.f32 %v3413_v40, 0.0  ;;  %v3414_v1 = vadd.f32 3.0, %v3382_v56 }
 0x30b   : > { %3573 = vst.msk [vmem:[%s5544_s16 + $0xd8] sm:$0xff] %vm3545_vm4, %v3540_v55  ;;  %v3479_v6 = vmin.f32 %v3447_v49, 6.0  ;;  %v3448_v33 = vmax.f32 %v3416_v17, 0.0 }
 0x30c   : > { %3571 = vst.msk [vmem:[%s5544_s16 + $0xc8] sm:$0xff] %vm3545_vm4, %v3538_v27  ;;  %v3477_v48 = vmin.f32 %v3445_v30, 6.0  ;;  %v3446_v62 = vmax.f32 %v3414_v1, 0.0 }
 0x30d   : > { %v3511_v7 = vmul.f32 %v3479_v6, %v3383_v44  ;;  %v3480_v4 = vmin.f32 %v3448_v33, 6.0 }
 0x30e   : > { %v3509_v28 = vmul.f32 %v3477_v48, %v3381_v37  ;;  %v3478_v20 = vmin.f32 %v3446_v62, 6.0 }
 0x30f   : > { %v3543_v45 = vmul.f32 0.16666667, %v3511_v7  ;;  %v3512_v13 = vmul.f32 %v3480_v4, %v3384_v29 }
 0x310   : > { %v3541_v16 = vmul.f32 0.16666667, %v3509_v28  ;;  %v3510_v11 = vmul.f32 %v3478_v20, %v3382_v56 }
 0x311   : > { %3576 = vst.msk [vmem:[%s5544_s16 + $0xf0] sm:$0xff] %vm3545_vm4, %v3543_v45  ;;  %v3544_v50 = vmul.f32 0.16666667, %v3512_v13 }
 0x312   : > { %3574 = vst.msk [vmem:[%s5544_s16 + $0xe0] sm:$0xff] %vm3545_vm4, %v3541_v16  ;;  %v3542_v32 = vmul.f32 0.16666667, %v3510_v11 }
 0x313   : > { %3577 = vst.msk [vmem:[%s5544_s16 + $0xf8] sm:$0xff] %vm3545_vm4, %v3544_v50 }
 0x314   : > { %3575 = vst.msk [vmem:[%s5544_s16 + $0xe8] sm:$0xff] %vm3545_vm4, %v3542_v32 }
 0x315 PF: > { %s15_s18 = sadd.s32 1, %s4137_s18  }
 0x316   : > { %p12_p4 = scmp.ge.s32.totalorder %s15_s18, 4  }
 0x318   :  { %14 = sbr.rel (!%p12_p4) target bundleno = 1 (0x1), region = 74 }

</bundles_post_ra>
